<compile_context>
chip_gen: v6e
topology: v6e:2x2x1
jax: 0.10.0
libtpu: 0.0.40
codegen_flags: <defaults>
</compile_context>

<pallas_src>
import functools

import jax
import jax.numpy as jnp
from jax import lax
from jax.experimental import pallas as pl
from jax.experimental.pallas import tpu as pltpu


# ----------------------------- in-kernel helpers -----------------------------

def _gelu_tanh(x):
    # tanh-approx GELU: tanh goes to the EUP (separate bundle slot); error vs
    # exact erf-GELU is ~3e-3 abs, well within the mixed-precision tolerance.
    c = 0.7978845608028654  # sqrt(2/pi)
    return 0.5 * x * (1.0 + jnp.tanh(c * (x + 0.044715 * x * x * x)))


def _rmsnorm(z, gamma, alpha):
    # Matches the PyTorch reference exactly: g * z / (sqrt(mean(z^2)) + 1e-8) + a
    rms = jnp.sqrt(jnp.mean(z * z, axis=-1, keepdims=True))
    inv = 1.0 / (rms + 1e-8)          # tiny (rows, 1) tensor -> cheap exact recip
    return gamma * z * inv + alpha


# --------------------------------- the kernel --------------------------------

def attention_block_kernel(n_heads, kv_block, ffn_block,
                           x_ref, mask_ref,
                           wq_ref, bq_ref, wk_ref, bk_ref, wv_ref, bv_ref,
                           wproj_ref, bproj_ref, g1_ref, a1_ref,
                           w1_ref, b1_ref, w2_ref, b2_ref, g2_ref, a2_ref,
                           o_ref):
    Bt, S, E = x_ref.shape
    H = n_heads
    D = E // H
    BH = Bt * H

    x_f32 = x_ref[...].reshape(Bt * S, E)            # f32 residual path
    x_bf = x_f32.astype(jnp.bfloat16)                # bf16 matmul operand

    # --- QKV projections: bf16 operands, f32 accumulation.
    # 1/sqrt(D) is already folded into wq / bq by the wrapper.
    q = jnp.dot(x_bf, wq_ref[...], preferred_element_type=jnp.float32) + bq_ref[0]
    k = jnp.dot(x_bf, wk_ref[...], preferred_element_type=jnp.float32) + bk_ref[0]
    v = jnp.dot(x_bf, wv_ref[...], preferred_element_type=jnp.float32) + bv_ref[0]

    def to_heads(t):
        # (Bt*S, E) -> (Bt*H, S, D): single relayout feeding one batched
        # (leading batch dim) matmul per attention step.
        return (t.reshape(Bt, S, H, D).transpose(0, 2, 1, 3)
                 .reshape(BH, S, D).astype(jnp.bfloat16))

    qh = to_heads(q)
    kh = to_heads(k)
    vh = to_heads(v)

    # --- causal attention, flash-style over KV chunks (online softmax) ---
    # Live score tile is (Bt*H, S, kv_block); stats stay f32, the probability
    # tile is cast to bf16 only for the p @ v MXU op.
    m_i = jnp.full((BH, S, 1), -jnp.inf, dtype=jnp.float32)
    l_i = jnp.zeros((BH, S, 1), dtype=jnp.float32)
    acc = jnp.zeros((BH, S, D), dtype=jnp.float32)

    n_kv = S // kv_block
    for c in range(n_kv):                            # static unroll (trace time)
        c0 = c * kv_block
        kc = kh[:, c0:c0 + kv_block, :]
        vc = vh[:, c0:c0 + kv_block, :]
        s = jnp.einsum('bqd,bkd->bqk', qh, kc,
                       preferred_element_type=jnp.float32)     # (BH, S, kvb) f32
        mask_c = mask_ref[:, c0:c0 + kv_block]                 # (S, kvb) f32
        s = s + mask_c[None, :, :]
        m_new = jnp.maximum(m_i, jnp.max(s, axis=-1, keepdims=True))
        alpha = jnp.exp(m_i - m_new)
        p = jnp.exp(s - m_new)
        l_i = alpha * l_i + jnp.sum(p, axis=-1, keepdims=True)
        acc = alpha * acc + jnp.einsum('bqk,bkd->bqd',
                                       p.astype(jnp.bfloat16), vc,
                                       preferred_element_type=jnp.float32)
        m_i = m_new

    # Fold the softmax denominator into the small (S, D) output (EUP recip).
    o = acc * pl.reciprocal(l_i, approx=True)

    # --- merge heads + output projection + residual + RMSNorm ---
    y = (o.reshape(Bt, H, S, D).transpose(0, 2, 1, 3)
          .reshape(Bt * S, E).astype(jnp.bfloat16))
    y = jnp.dot(y, wproj_ref[...], preferred_element_type=jnp.float32) + bproj_ref[0]
    y = _rmsnorm(y + x_f32, g1_ref[0], a1_ref[0])              # f32

    # --- feedforward, hidden dim processed in chunks (never full (Bt*S, 4E)) ---
    y_bf = y.astype(jnp.bfloat16)
    ff = jnp.zeros((Bt * S, E), dtype=jnp.float32)
    hidden = w1_ref.shape[1]
    n_ff = hidden // ffn_block
    for c in range(n_ff):                            # static unroll (trace time)
        c0 = c * ffn_block
        h = (jnp.dot(y_bf, w1_ref[:, c0:c0 + ffn_block],
                     preferred_element_type=jnp.float32)
             + b1_ref[0, c0:c0 + ffn_block])
        h = _gelu_tanh(h)
        ff = ff + jnp.dot(h.astype(jnp.bfloat16), w2_ref[c0:c0 + ffn_block, :],
                          preferred_element_type=jnp.float32)
    ff = ff + b2_ref[0]

    out = _rmsnorm(ff + y, g2_ref[0], a2_ref[0])
    o_ref[...] = out.reshape(Bt, S, E).astype(o_ref.dtype)


# --------------------------------- wrapper ------------------------------------

def _pick_block(n, target, min_block=128):
    """Largest divisor of n that is <= target (falls back to n)."""
    if n <= target:
        return n
    for b in range(target, min_block - 1, -1):
        if n % b == 0:
            return b
    return n


def _choose_batch_block(B, S):
    """Grow Bt*S toward the 256-row MXU fill while keeping >= 2 grid steps
    (v7x megacore) and a bounded activation tile."""
    best = 1
    for bt in range(1, B + 1):
        if B % bt:
            continue
        if B > 1 and B // bt < 2:      # keep >= 2 parallel steps for megacore
            continue
        if bt * S > 1024:              # VMEM guard on the activation tile
            continue
        best = bt
    return best


def _default_vmem_limit_bytes():
    # Generation-aware: v7x has 64 MiB physical VMEM per TC, v5e/v6e have 128 MiB.
    try:
        kind = jax.devices()[0].device_kind.lower()
    except Exception:
        kind = ""
    if "v7" in kind or "7x" in kind:
        return 56 * 1024 * 1024
    return 100 * 1024 * 1024


def attention_block(x, params, n_heads, *, batch_block=None, kv_block=None,
                    ffn_block=None, vmem_limit_bytes=None):
    B, S, E = x.shape
    (wqkv, bqkv, wproj, bproj, g1, a1, w1, b1, w2, b2, g2, a2) = params
    D = E // n_heads
    scale = 1.0 / (D ** 0.5)

    Bt = batch_block if batch_block is not None else _choose_batch_block(B, S)
    assert B % Bt == 0
    kvb = kv_block if kv_block is not None else _pick_block(S, 512)
    ffb = ffn_block if ffn_block is not None else _pick_block(4 * E, 512)
    vlim = vmem_limit_bytes if vmem_limit_bytes is not None else _default_vmem_limit_bytes()

    # Split the fused qkv weight/bias at trace time; fold the 1/sqrt(D) scale
    # into wq/bq; cast matmul weights to bf16 (biases / norm params stay f32).
    bf = jnp.bfloat16
    wq = (wqkv[:, :E] * scale).astype(bf)
    wk = wqkv[:, E:2 * E].astype(bf)
    wv = wqkv[:, 2 * E:].astype(bf)
    bq = bqkv[:, :E] * scale
    bk = bqkv[:, E:2 * E]
    bv = bqkv[:, 2 * E:]
    wp = wproj.astype(bf)
    w1b = w1.astype(bf)
    w2b = w2.astype(bf)

    # Precomputed additive causal mask (0 / -1e30), constant kernel input.
    row = jnp.arange(S)[:, None]
    col = jnp.arange(S)[None, :]
    mask = jnp.where(row >= col, 0.0, -1e30).astype(jnp.float32)

    ins = (x, mask, wq, bq, wk, bk, wv, bv, wp, bproj,
           g1, a1, w1b, b1, w2b, b2, g2, a2)

    def build(single_buffer_weights):
        def rep(shape):
            # Full block, constant index_map -> single-buffer it (no point in
            # double-buffering a block that never changes).
            nd = len(shape)
            kw = {}
            if single_buffer_weights:
                kw["pipeline_mode"] = pl.Buffered(1)
            return pl.BlockSpec(shape, lambda b, _nd=nd: (0,) * _nd, **kw)

        in_specs = [pl.BlockSpec((Bt, S, E), lambda b: (b, 0, 0))] + \
                   [rep(a.shape) for a in ins[1:]]

        return pl.pallas_call(
            functools.partial(attention_block_kernel, n_heads, kvb, ffb),
            out_shape=jax.ShapeDtypeStruct((B, S, E), x.dtype),
            grid=(B // Bt,),
            in_specs=in_specs,
            out_specs=pl.BlockSpec((Bt, S, E), lambda b: (b, 0, 0)),
            compiler_params=pltpu.CompilerParams(
                dimension_semantics=("parallel",),
                vmem_limit_bytes=vlim),
        )

    try:
        return build(True)(*ins)
    except Exception:
        # Fallback for jax versions without pipeline_mode=pl.Buffered(1); the
        # kernel itself is identical, weights just get default double-buffering.
        return build(False)(*ins)


# ------------------------- parameter init (deterministic) ---------------------

def init_params(key, E):
    ks = jax.random.split(key, 4)

    def linear(k, fan_in, fan_out):
        kw, kb = jax.random.split(k)
        bound = 1.0 / (fan_in ** 0.5)
        w = jax.random.uniform(kw, (fan_in, fan_out), jnp.float32, -bound, bound)
        b = jax.random.uniform(kb, (1, fan_out), jnp.float32, -bound, bound)
        return w, b

    wqkv, bqkv = linear(ks[0], E, 3 * E)     # nn.Linear(E, 3E) (stored transposed)
    wproj, bproj = linear(ks[1], E, E)       # nn.Linear(E, E)
    w1, b1 = linear(ks[2], E, 4 * E)         # feedforward[0]
    w2, b2 = linear(ks[3], 4 * E, E)         # feedforward[2]
    g1 = jnp.ones((1, E), jnp.float32)       # norm1.gamma
    a1 = jnp.zeros((1, E), jnp.float32)      # norm1.alpha
    g2 = jnp.ones((1, E), jnp.float32)       # norm2.gamma
    a2 = jnp.zeros((1, E), jnp.float32)      # norm2.alpha
    return (wqkv, bqkv, wproj, bproj, g1, a1, w1, b1, w2, b2, g2, a2)


# ------------------------- plain-JAX reference (for check) --------------------

def reference(x, params, n_heads):
    (wqkv, bqkv, wproj, bproj, g1, a1, w1, b1, w2, b2, g2, a2) = params
    B, S, E = x.shape
    H, D = n_heads, E // n_heads

    def rms(z, g, a):
        r = jnp.sqrt(jnp.mean(z * z, axis=-1, keepdims=True))
        return g[0] * z / (r + 1e-8) + a[0]

    qkv = x @ wqkv + bqkv[0]
    q, k, v = jnp.split(qkv, 3, axis=-1)
    q = q.reshape(B, S, H, D).transpose(0, 2, 1, 3)
    k = k.reshape(B, S, H, D).transpose(0, 2, 1, 3)
    v = v.reshape(B, S, H, D).transpose(0, 2, 1, 3)
    scores = jnp.einsum('bhqd,bhkd->bhqk', q, k) / (D ** 0.5)
    mask = jnp.tril(jnp.ones((S, S), bool))
    scores = jnp.where(mask, scores, -jnp.inf)
    p = jax.nn.softmax(scores, axis=-1)
    y = jnp.einsum('bhqk,bhkd->bhqd', p, v).transpose(0, 2, 1, 3).reshape(B, S, E)
    y = y @ wproj + bproj[0]
    y = rms(y + x, g1, a1)
    h1 = jax.nn.gelu(y @ w1 + b1[0], approximate=False)
    ff = h1 @ w2 + b2[0]
    return rms(ff + y, g2, a2)


# ----------------------------------- main --------------------------------------

if __name__ == "__main__":
    B, S, E, H = 2, 8, 32, 4

    key = jax.random.PRNGKey(0)
    kx, kp = jax.random.split(key)
    x = jax.random.normal(kx, (B, S, E), jnp.float32)
    params = init_params(kp, E)

    out = attention_block(x, params, H)
    out = jax.block_until_ready(out)

    ref = reference(x, params, H)
    max_err = float(jnp.max(jnp.abs(out - ref)))
    assert out.shape == (B, S, E)
    # Kernel uses bf16 MXU operands (f32 accumulation) + tanh-GELU, so allow a
    # mixed-precision tolerance against the exact f32 reference.
    assert max_err < 5e-2, f"max abs err too large: {max_err}"
    print("KERNEL_OK")
</pallas_src>

<mosaic_0001>
module attributes {stable_mosaic.version = 11 : i64} {
  func.func @attention_block_kernel(%arg0: i32, %arg1: memref<1x8x32xf32, #tpu.memory_space<vmem>>, %arg2: memref<8x8xf32, #tpu.memory_space<vmem>>, %arg3: memref<32x32xbf16, #tpu.memory_space<vmem>>, %arg4: memref<1x32xf32, #tpu.memory_space<vmem>>, %arg5: memref<32x32xbf16, #tpu.memory_space<vmem>>, %arg6: memref<1x32xf32, #tpu.memory_space<vmem>>, %arg7: memref<32x32xbf16, #tpu.memory_space<vmem>>, %arg8: memref<1x32xf32, #tpu.memory_space<vmem>>, %arg9: memref<32x32xbf16, #tpu.memory_space<vmem>>, %arg10: memref<1x32xf32, #tpu.memory_space<vmem>>, %arg11: memref<1x32xf32, #tpu.memory_space<vmem>>, %arg12: memref<1x32xf32, #tpu.memory_space<vmem>>, %arg13: memref<32x128xbf16, #tpu.memory_space<vmem>>, %arg14: memref<1x128xf32, #tpu.memory_space<vmem>>, %arg15: memref<128x32xbf16, #tpu.memory_space<vmem>>, %arg16: memref<1x32xf32, #tpu.memory_space<vmem>>, %arg17: memref<1x32xf32, #tpu.memory_space<vmem>>, %arg18: memref<1x32xf32, #tpu.memory_space<vmem>>, %arg19: memref<1x8x32xf32, #tpu.memory_space<vmem>>) attributes {dimension_semantics = [#tpu.dimension_semantics<parallel>], iteration_bounds = array<i64: 2>, scalar_prefetch = 0 : i64, scratch_operands = 0 : i64, tpu.core_type = #tpu.core_type<tc>, window_params = [{transform_indices = @transform_0, window_bounds = array<i64: 1, 8, 32>}, {pipeline_mode = #tpu.pipeline_mode<synchronous>, transform_indices = @transform_1, window_bounds = array<i64: 8, 8>}, {pipeline_mode = #tpu.pipeline_mode<synchronous>, transform_indices = @transform_2, window_bounds = array<i64: 32, 32>}, {pipeline_mode = #tpu.pipeline_mode<synchronous>, transform_indices = @transform_3, window_bounds = array<i64: 1, 32>}, {pipeline_mode = #tpu.pipeline_mode<synchronous>, transform_indices = @transform_4, window_bounds = array<i64: 32, 32>}, {pipeline_mode = #tpu.pipeline_mode<synchronous>, transform_indices = @transform_5, window_bounds = array<i64: 1, 32>}, {pipeline_mode = #tpu.pipeline_mode<synchronous>, transform_indices = @transform_6, window_bounds = array<i64: 32, 32>}, {pipeline_mode = #tpu.pipeline_mode<synchronous>, transform_indices = @transform_7, window_bounds = array<i64: 1, 32>}, {pipeline_mode = #tpu.pipeline_mode<synchronous>, transform_indices = @transform_8, window_bounds = array<i64: 32, 32>}, {pipeline_mode = #tpu.pipeline_mode<synchronous>, transform_indices = @transform_9, window_bounds = array<i64: 1, 32>}, {pipeline_mode = #tpu.pipeline_mode<synchronous>, transform_indices = @transform_10, window_bounds = array<i64: 1, 32>}, {pipeline_mode = #tpu.pipeline_mode<synchronous>, transform_indices = @transform_11, window_bounds = array<i64: 1, 32>}, {pipeline_mode = #tpu.pipeline_mode<synchronous>, transform_indices = @transform_12, window_bounds = array<i64: 32, 128>}, {pipeline_mode = #tpu.pipeline_mode<synchronous>, transform_indices = @transform_13, window_bounds = array<i64: 1, 128>}, {pipeline_mode = #tpu.pipeline_mode<synchronous>, transform_indices = @transform_14, window_bounds = array<i64: 128, 32>}, {pipeline_mode = #tpu.pipeline_mode<synchronous>, transform_indices = @transform_15, window_bounds = array<i64: 1, 32>}, {pipeline_mode = #tpu.pipeline_mode<synchronous>, transform_indices = @transform_16, window_bounds = array<i64: 1, 32>}, {pipeline_mode = #tpu.pipeline_mode<synchronous>, transform_indices = @transform_17, window_bounds = array<i64: 1, 32>}, {transform_indices = @transform_18, window_bounds = array<i64: 1, 8, 32>}]} {
    %c0 = arith.constant 0 : index
    %c0_0 = arith.constant 0 : index
    %c0_1 = arith.constant 0 : index
    %0 = vector.load %arg1[%c0, %c0_0, %c0_1] : memref<1x8x32xf32, #tpu.memory_space<vmem>>, vector<1x8x32xf32>
    %1 = vector.shape_cast %0 : vector<1x8x32xf32> to vector<8x32xf32>
    %2 = arith.truncf %1 : vector<8x32xf32> to vector<8x32xbf16>
    %c0_2 = arith.constant 0 : index
    %c0_3 = arith.constant 0 : index
    %3 = vector.load %arg3[%c0_2, %c0_3] : memref<32x32xbf16, #tpu.memory_space<vmem>>, vector<32x32xbf16>
    %cst = arith.constant dense<0.000000e+00> : vector<8x32xf32>
    %4 = tpu.matmul %2, %3, %cst {dimension_numbers = #tpu.dot_dimension_numbers<[1], [0], [0], [1], [0, 0, 1, 1], [], []>} : vector<8x32xbf16>, vector<32x32xbf16>, vector<8x32xf32> -> vector<8x32xf32>
    %c0_4 = arith.constant 0 : index
    %c0_5 = arith.constant 0 : index
    %5 = vector.load %arg4[%c0_4, %c0_5] : memref<1x32xf32, #tpu.memory_space<vmem>>, vector<1x32xf32>
    %6 = vector.shape_cast %5 : vector<1x32xf32> to vector<32xf32>
    %7 = vector.shape_cast %6 : vector<32xf32> to vector<1x32xf32>
    %8 = vector.broadcast %7 : vector<1x32xf32> to vector<8x32xf32>
    %9 = arith.addf %4, %8 : vector<8x32xf32>
    %c0_6 = arith.constant 0 : index
    %c0_7 = arith.constant 0 : index
    %10 = vector.load %arg5[%c0_6, %c0_7] : memref<32x32xbf16, #tpu.memory_space<vmem>>, vector<32x32xbf16>
    %cst_8 = arith.constant dense<0.000000e+00> : vector<8x32xf32>
    %11 = tpu.matmul %2, %10, %cst_8 {dimension_numbers = #tpu.dot_dimension_numbers<[1], [0], [0], [1], [0, 0, 1, 1], [], []>} : vector<8x32xbf16>, vector<32x32xbf16>, vector<8x32xf32> -> vector<8x32xf32>
    %c0_9 = arith.constant 0 : index
    %c0_10 = arith.constant 0 : index
    %12 = vector.load %arg6[%c0_9, %c0_10] : memref<1x32xf32, #tpu.memory_space<vmem>>, vector<1x32xf32>
    %13 = vector.shape_cast %12 : vector<1x32xf32> to vector<32xf32>
    %14 = vector.shape_cast %13 : vector<32xf32> to vector<1x32xf32>
    %15 = vector.broadcast %14 : vector<1x32xf32> to vector<8x32xf32>
    %16 = arith.addf %11, %15 : vector<8x32xf32>
    %c0_11 = arith.constant 0 : index
    %c0_12 = arith.constant 0 : index
    %17 = vector.load %arg7[%c0_11, %c0_12] : memref<32x32xbf16, #tpu.memory_space<vmem>>, vector<32x32xbf16>
    %cst_13 = arith.constant dense<0.000000e+00> : vector<8x32xf32>
    %18 = tpu.matmul %2, %17, %cst_13 {dimension_numbers = #tpu.dot_dimension_numbers<[1], [0], [0], [1], [0, 0, 1, 1], [], []>} : vector<8x32xbf16>, vector<32x32xbf16>, vector<8x32xf32> -> vector<8x32xf32>
    %c0_14 = arith.constant 0 : index
    %c0_15 = arith.constant 0 : index
    %19 = vector.load %arg8[%c0_14, %c0_15] : memref<1x32xf32, #tpu.memory_space<vmem>>, vector<1x32xf32>
    %20 = vector.shape_cast %19 : vector<1x32xf32> to vector<32xf32>
    %21 = vector.shape_cast %20 : vector<32xf32> to vector<1x32xf32>
    %22 = vector.broadcast %21 : vector<1x32xf32> to vector<8x32xf32>
    %23 = arith.addf %18, %22 : vector<8x32xf32>
    %24 = vector.shape_cast %9 : vector<8x32xf32> to vector<1x8x4x8xf32>
    %25 = tpu.transpose %24, [0, 2, 1, 3] : vector<1x8x4x8xf32> -> vector<1x4x8x8xf32>
    %26 = vector.shape_cast %25 : vector<1x4x8x8xf32> to vector<4x8x8xf32>
    %27 = arith.truncf %26 : vector<4x8x8xf32> to vector<4x8x8xbf16>
    %28 = vector.shape_cast %16 : vector<8x32xf32> to vector<1x8x4x8xf32>
    %29 = tpu.transpose %28, [0, 2, 1, 3] : vector<1x8x4x8xf32> -> vector<1x4x8x8xf32>
    %30 = vector.shape_cast %29 : vector<1x4x8x8xf32> to vector<4x8x8xf32>
    %31 = arith.truncf %30 : vector<4x8x8xf32> to vector<4x8x8xbf16>
    %32 = vector.shape_cast %23 : vector<8x32xf32> to vector<1x8x4x8xf32>
    %33 = tpu.transpose %32, [0, 2, 1, 3] : vector<1x8x4x8xf32> -> vector<1x4x8x8xf32>
    %34 = vector.shape_cast %33 : vector<1x4x8x8xf32> to vector<4x8x8xf32>
    %35 = arith.truncf %34 : vector<4x8x8xf32> to vector<4x8x8xbf16>
    %cst_16 = arith.constant 0xFF800000 : f32
    %36 = vector.broadcast %cst_16 : f32 to vector<4x8x1xf32>
    %cst_17 = arith.constant 0.000000e+00 : f32
    %37 = vector.broadcast %cst_17 : f32 to vector<4x8x1xf32>
    %cst_18 = arith.constant 0.000000e+00 : f32
    %38 = vector.broadcast %cst_18 : f32 to vector<4x8x8xf32>
    "tpu.trace_start"() <{level = 10 : i32, message = "bqd,bkd->bqk"}> : () -> ()
    %cst_19 = arith.constant dense<0.000000e+00> : vector<4x8x8xf32>
    %39 = tpu.matmul %27, %31, %cst_19 {dimension_numbers = #tpu.dot_dimension_numbers<[2], [2], [1], [1], [0, 0, 0, 1, 1, 1], [0], [0]>} : vector<4x8x8xbf16>, vector<4x8x8xbf16>, vector<4x8x8xf32> -> vector<4x8x8xf32>
    "tpu.trace_stop"() : () -> ()
    %c0_20 = arith.constant 0 : index
    %c0_21 = arith.constant 0 : index
    %40 = vector.load %arg2[%c0_20, %c0_21] : memref<8x8xf32, #tpu.memory_space<vmem>>, vector<8x8xf32>
    %41 = vector.shape_cast %40 : vector<8x8xf32> to vector<1x8x8xf32>
    %42 = vector.broadcast %41 : vector<1x8x8xf32> to vector<4x8x8xf32>
    %43 = arith.addf %39, %42 : vector<4x8x8xf32>
    %cst_22 = arith.constant dense<0xFF800000> : vector<4x8xf32>
    %44 = vector.multi_reduction <maximumf>, %43, %cst_22 [2] : vector<4x8x8xf32> to vector<4x8xf32>
    %45 = vector.shape_cast %44 : vector<4x8xf32> to vector<4x8x1xf32>
    %46 = arith.maximumf %36, %45 : vector<4x8x1xf32>
    %47 = arith.subf %36, %46 : vector<4x8x1xf32>
    %48 = math.exp %47 : vector<4x8x1xf32>
    %49 = vector.broadcast %46 : vector<4x8x1xf32> to vector<4x8x8xf32>
    %50 = arith.subf %43, %49 : vector<4x8x8xf32>
    %51 = math.exp %50 : vector<4x8x8xf32>
    %52 = arith.mulf %48, %37 : vector<4x8x1xf32>
    %cst_23 = arith.constant dense<0.000000e+00> : vector<4x8xf32>
    %53 = vector.multi_reduction <add>, %51, %cst_23 [2] : vector<4x8x8xf32> to vector<4x8xf32>
    %54 = vector.shape_cast %53 : vector<4x8xf32> to vector<4x8x1xf32>
    %55 = arith.addf %52, %54 : vector<4x8x1xf32>
    %56 = vector.broadcast %48 : vector<4x8x1xf32> to vector<4x8x8xf32>
    %57 = arith.mulf %56, %38 : vector<4x8x8xf32>
    %58 = arith.truncf %51 : vector<4x8x8xf32> to vector<4x8x8xbf16>
    "tpu.trace_start"() <{level = 10 : i32, message = "bqk,bkd->bqd"}> : () -> ()
    %cst_24 = arith.constant dense<0.000000e+00> : vector<4x8x8xf32>
    %59 = tpu.matmul %58, %35, %cst_24 {dimension_numbers = #tpu.dot_dimension_numbers<[2], [1], [1], [2], [0, 0, 0, 1, 1, 2], [0], [0]>} : vector<4x8x8xbf16>, vector<4x8x8xbf16>, vector<4x8x8xf32> -> vector<4x8x8xf32>
    "tpu.trace_stop"() : () -> ()
    %60 = arith.addf %57, %59 : vector<4x8x8xf32>
    %61 = tpu.reciprocal %55 {approx = true} : vector<4x8x1xf32> -> vector<4x8x1xf32>
    %62 = vector.broadcast %61 : vector<4x8x1xf32> to vector<4x8x8xf32>
    %63 = arith.mulf %60, %62 : vector<4x8x8xf32>
    %64 = vector.shape_cast %63 : vector<4x8x8xf32> to vector<1x4x8x8xf32>
    %65 = tpu.transpose %64, [0, 2, 1, 3] : vector<1x4x8x8xf32> -> vector<1x8x4x8xf32>
    %66 = vector.shape_cast %65 : vector<1x8x4x8xf32> to vector<8x32xf32>
    %67 = arith.truncf %66 : vector<8x32xf32> to vector<8x32xbf16>
    %c0_25 = arith.constant 0 : index
    %c0_26 = arith.constant 0 : index
    %68 = vector.load %arg9[%c0_25, %c0_26] : memref<32x32xbf16, #tpu.memory_space<vmem>>, vector<32x32xbf16>
    %cst_27 = arith.constant dense<0.000000e+00> : vector<8x32xf32>
    %69 = tpu.matmul %67, %68, %cst_27 {dimension_numbers = #tpu.dot_dimension_numbers<[1], [0], [0], [1], [0, 0, 1, 1], [], []>} : vector<8x32xbf16>, vector<32x32xbf16>, vector<8x32xf32> -> vector<8x32xf32>
    %c0_28 = arith.constant 0 : index
    %c0_29 = arith.constant 0 : index
    %70 = vector.load %arg10[%c0_28, %c0_29] : memref<1x32xf32, #tpu.memory_space<vmem>>, vector<1x32xf32>
    %71 = vector.shape_cast %70 : vector<1x32xf32> to vector<32xf32>
    %72 = vector.shape_cast %71 : vector<32xf32> to vector<1x32xf32>
    %73 = vector.broadcast %72 : vector<1x32xf32> to vector<8x32xf32>
    %74 = arith.addf %69, %73 : vector<8x32xf32>
    %75 = arith.addf %74, %1 : vector<8x32xf32>
    %c0_30 = arith.constant 0 : index
    %c0_31 = arith.constant 0 : index
    %76 = vector.load %arg11[%c0_30, %c0_31] : memref<1x32xf32, #tpu.memory_space<vmem>>, vector<1x32xf32>
    %77 = vector.shape_cast %76 : vector<1x32xf32> to vector<32xf32>
    %c0_32 = arith.constant 0 : index
    %c0_33 = arith.constant 0 : index
    %78 = vector.load %arg12[%c0_32, %c0_33] : memref<1x32xf32, #tpu.memory_space<vmem>>, vector<1x32xf32>
    %79 = vector.shape_cast %78 : vector<1x32xf32> to vector<32xf32>
    %80 = arith.mulf %75, %75 : vector<8x32xf32>
    %cst_34 = arith.constant dense<0.000000e+00> : vector<8xf32>
    %81 = vector.multi_reduction <add>, %80, %cst_34 [1] : vector<8x32xf32> to vector<8xf32>
    %82 = vector.shape_cast %81 : vector<8xf32> to vector<8x1xf32>
    %cst_35 = arith.constant 3.200000e+01 : f32
    %83 = vector.broadcast %cst_35 : f32 to vector<8x1xf32>
    %84 = arith.divf %82, %83 : vector<8x1xf32>
    %85 = math.sqrt %84 : vector<8x1xf32>
    %cst_36 = arith.constant 9.99999993E-9 : f32
    %86 = vector.broadcast %cst_36 : f32 to vector<8x1xf32>
    %87 = arith.addf %85, %86 : vector<8x1xf32>
    %cst_37 = arith.constant 1.000000e+00 : f32
    %88 = vector.broadcast %cst_37 : f32 to vector<8x1xf32>
    %89 = arith.divf %88, %87 : vector<8x1xf32>
    %90 = vector.shape_cast %77 : vector<32xf32> to vector<1x32xf32>
    %91 = vector.broadcast %90 : vector<1x32xf32> to vector<8x32xf32>
    %92 = arith.mulf %91, %75 : vector<8x32xf32>
    %93 = vector.broadcast %89 : vector<8x1xf32> to vector<8x32xf32>
    %94 = arith.mulf %92, %93 : vector<8x32xf32>
    %95 = vector.shape_cast %79 : vector<32xf32> to vector<1x32xf32>
    %96 = vector.broadcast %95 : vector<1x32xf32> to vector<8x32xf32>
    %97 = arith.addf %94, %96 : vector<8x32xf32>
    %98 = arith.truncf %97 : vector<8x32xf32> to vector<8x32xbf16>
    %cst_38 = arith.constant 0.000000e+00 : f32
    %99 = vector.broadcast %cst_38 : f32 to vector<8x32xf32>
    %c0_39 = arith.constant 0 : index
    %c0_40 = arith.constant 0 : index
    %100 = vector.load %arg13[%c0_39, %c0_40] : memref<32x128xbf16, #tpu.memory_space<vmem>>, vector<32x128xbf16>
    %cst_41 = arith.constant dense<0.000000e+00> : vector<8x128xf32>
    %101 = tpu.matmul %98, %100, %cst_41 {dimension_numbers = #tpu.dot_dimension_numbers<[1], [0], [0], [1], [0, 0, 1, 1], [], []>} : vector<8x32xbf16>, vector<32x128xbf16>, vector<8x128xf32> -> vector<8x128xf32>
    %c0_42 = arith.constant 0 : index
    %c0_43 = arith.constant 0 : index
    %102 = vector.load %arg14[%c0_42, %c0_43] : memref<1x128xf32, #tpu.memory_space<vmem>>, vector<1x128xf32>
    %103 = vector.shape_cast %102 : vector<1x128xf32> to vector<128xf32>
    %104 = vector.shape_cast %103 : vector<128xf32> to vector<1x128xf32>
    %105 = vector.broadcast %104 : vector<1x128xf32> to vector<8x128xf32>
    %106 = arith.addf %101, %105 : vector<8x128xf32>
    %cst_44 = arith.constant 5.000000e-01 : f32
    %107 = vector.broadcast %cst_44 : f32 to vector<8x128xf32>
    %108 = arith.mulf %107, %106 : vector<8x128xf32>
    %cst_45 = arith.constant 4.471500e-02 : f32
    %109 = vector.broadcast %cst_45 : f32 to vector<8x128xf32>
    %110 = arith.mulf %109, %106 : vector<8x128xf32>
    %111 = arith.mulf %110, %106 : vector<8x128xf32>
    %112 = arith.mulf %111, %106 : vector<8x128xf32>
    %113 = arith.addf %106, %112 : vector<8x128xf32>
    %cst_46 = arith.constant 0.797884583 : f32
    %114 = vector.broadcast %cst_46 : f32 to vector<8x128xf32>
    %115 = arith.mulf %114, %113 : vector<8x128xf32>
    %116 = math.tanh %115 : vector<8x128xf32>
    %cst_47 = arith.constant 1.000000e+00 : f32
    %117 = vector.broadcast %cst_47 : f32 to vector<8x128xf32>
    %118 = arith.addf %117, %116 : vector<8x128xf32>
    %119 = arith.mulf %108, %118 : vector<8x128xf32>
    %120 = arith.truncf %119 : vector<8x128xf32> to vector<8x128xbf16>
    %c0_48 = arith.constant 0 : index
    %c0_49 = arith.constant 0 : index
    %121 = vector.load %arg15[%c0_48, %c0_49] : memref<128x32xbf16, #tpu.memory_space<vmem>>, vector<128x32xbf16>
    %cst_50 = arith.constant dense<0.000000e+00> : vector<8x32xf32>
    %122 = tpu.matmul %120, %121, %cst_50 {dimension_numbers = #tpu.dot_dimension_numbers<[1], [0], [0], [1], [0, 0, 1, 1], [], []>} : vector<8x128xbf16>, vector<128x32xbf16>, vector<8x32xf32> -> vector<8x32xf32>
    %123 = arith.addf %99, %122 : vector<8x32xf32>
    %c0_51 = arith.constant 0 : index
    %c0_52 = arith.constant 0 : index
    %124 = vector.load %arg16[%c0_51, %c0_52] : memref<1x32xf32, #tpu.memory_space<vmem>>, vector<1x32xf32>
    %125 = vector.shape_cast %124 : vector<1x32xf32> to vector<32xf32>
    %126 = vector.shape_cast %125 : vector<32xf32> to vector<1x32xf32>
    %127 = vector.broadcast %126 : vector<1x32xf32> to vector<8x32xf32>
    %128 = arith.addf %123, %127 : vector<8x32xf32>
    %129 = arith.addf %128, %97 : vector<8x32xf32>
    %c0_53 = arith.constant 0 : index
    %c0_54 = arith.constant 0 : index
    %130 = vector.load %arg17[%c0_53, %c0_54] : memref<1x32xf32, #tpu.memory_space<vmem>>, vector<1x32xf32>
    %131 = vector.shape_cast %130 : vector<1x32xf32> to vector<32xf32>
    %c0_55 = arith.constant 0 : index
    %c0_56 = arith.constant 0 : index
    %132 = vector.load %arg18[%c0_55, %c0_56] : memref<1x32xf32, #tpu.memory_space<vmem>>, vector<1x32xf32>
    %133 = vector.shape_cast %132 : vector<1x32xf32> to vector<32xf32>
    %134 = arith.mulf %129, %129 : vector<8x32xf32>
    %cst_57 = arith.constant dense<0.000000e+00> : vector<8xf32>
    %135 = vector.multi_reduction <add>, %134, %cst_57 [1] : vector<8x32xf32> to vector<8xf32>
    %136 = vector.shape_cast %135 : vector<8xf32> to vector<8x1xf32>
    %cst_58 = arith.constant 3.200000e+01 : f32
    %137 = vector.broadcast %cst_58 : f32 to vector<8x1xf32>
    %138 = arith.divf %136, %137 : vector<8x1xf32>
    %139 = math.sqrt %138 : vector<8x1xf32>
    %cst_59 = arith.constant 9.99999993E-9 : f32
    %140 = vector.broadcast %cst_59 : f32 to vector<8x1xf32>
    %141 = arith.addf %139, %140 : vector<8x1xf32>
    %cst_60 = arith.constant 1.000000e+00 : f32
    %142 = vector.broadcast %cst_60 : f32 to vector<8x1xf32>
    %143 = arith.divf %142, %141 : vector<8x1xf32>
    %144 = vector.shape_cast %131 : vector<32xf32> to vector<1x32xf32>
    %145 = vector.broadcast %144 : vector<1x32xf32> to vector<8x32xf32>
    %146 = arith.mulf %145, %129 : vector<8x32xf32>
    %147 = vector.broadcast %143 : vector<8x1xf32> to vector<8x32xf32>
    %148 = arith.mulf %146, %147 : vector<8x32xf32>
    %149 = vector.shape_cast %133 : vector<32xf32> to vector<1x32xf32>
    %150 = vector.broadcast %149 : vector<1x32xf32> to vector<8x32xf32>
    %151 = arith.addf %148, %150 : vector<8x32xf32>
    %152 = vector.shape_cast %151 : vector<8x32xf32> to vector<1x8x32xf32>
    %c0_61 = arith.constant 0 : index
    %c0_62 = arith.constant 0 : index
    %c0_63 = arith.constant 0 : index
    %153 = vector.load %arg19[%c0_61, %c0_62, %c0_63] : memref<1x8x32xf32, #tpu.memory_space<vmem>>, vector<1x8x32xf32>
    tpu.vector_store %arg19[%c0_61, %c0_62, %c0_63], %152 {strides = array<i32>} : memref<1x8x32xf32, #tpu.memory_space<vmem>>, vector<1x8x32xf32>,
    return
  }
  func.func @transform_0(%arg0: i32) -> (i32, i32, i32) {
    %c0_i32 = arith.constant 0 : i32
    %c0_i32_0 = arith.constant 0 : i32
    %c0_i32_1 = arith.constant 0 : i32
    return %arg0, %c0_i32, %c0_i32_0 : i32, i32, i32
  }
  func.func @transform_1(%arg0: i32) -> (i32, i32) {
    %c0_i32 = arith.constant 0 : i32
    %c0_i32_0 = arith.constant 0 : i32
    %c0_i32_1 = arith.constant 0 : i32
    return %c0_i32, %c0_i32_0 : i32, i32
  }
  func.func @transform_2(%arg0: i32) -> (i32, i32) {
    %c0_i32 = arith.constant 0 : i32
    %c0_i32_0 = arith.constant 0 : i32
    %c0_i32_1 = arith.constant 0 : i32
    return %c0_i32, %c0_i32_0 : i32, i32
  }
  func.func @transform_3(%arg0: i32) -> (i32, i32) {
    %c0_i32 = arith.constant 0 : i32
    %c0_i32_0 = arith.constant 0 : i32
    %c0_i32_1 = arith.constant 0 : i32
    return %c0_i32, %c0_i32_0 : i32, i32
  }
  func.func @transform_4(%arg0: i32) -> (i32, i32) {
    %c0_i32 = arith.constant 0 : i32
    %c0_i32_0 = arith.constant 0 : i32
    %c0_i32_1 = arith.constant 0 : i32
    return %c0_i32, %c0_i32_0 : i32, i32
  }
  func.func @transform_5(%arg0: i32) -> (i32, i32) {
    %c0_i32 = arith.constant 0 : i32
    %c0_i32_0 = arith.constant 0 : i32
    %c0_i32_1 = arith.constant 0 : i32
    return %c0_i32, %c0_i32_0 : i32, i32
  }
  func.func @transform_6(%arg0: i32) -> (i32, i32) {
    %c0_i32 = arith.constant 0 : i32
    %c0_i32_0 = arith.constant 0 : i32
    %c0_i32_1 = arith.constant 0 : i32
    return %c0_i32, %c0_i32_0 : i32, i32
  }
  func.func @transform_7(%arg0: i32) -> (i32, i32) {
    %c0_i32 = arith.constant 0 : i32
    %c0_i32_0 = arith.constant 0 : i32
    %c0_i32_1 = arith.constant 0 : i32
    return %c0_i32, %c0_i32_0 : i32, i32
  }
  func.func @transform_8(%arg0: i32) -> (i32, i32) {
    %c0_i32 = arith.constant 0 : i32
    %c0_i32_0 = arith.constant 0 : i32
    %c0_i32_1 = arith.constant 0 : i32
    return %c0_i32, %c0_i32_0 : i32, i32
  }
  func.func @transform_9(%arg0: i32) -> (i32, i32) {
    %c0_i32 = arith.constant 0 : i32
    %c0_i32_0 = arith.constant 0 : i32
    %c0_i32_1 = arith.constant 0 : i32
    return %c0_i32, %c0_i32_0 : i32, i32
  }
  func.func @transform_10(%arg0: i32) -> (i32, i32) {
    %c0_i32 = arith.constant 0 : i32
    %c0_i32_0 = arith.constant 0 : i32
    %c0_i32_1 = arith.constant 0 : i32
    return %c0_i32, %c0_i32_0 : i32, i32
  }
  func.func @transform_11(%arg0: i32) -> (i32, i32) {
    %c0_i32 = arith.constant 0 : i32
    %c0_i32_0 = arith.constant 0 : i32
    %c0_i32_1 = arith.constant 0 : i32
    return %c0_i32, %c0_i32_0 : i32, i32
  }
  func.func @transform_12(%arg0: i32) -> (i32, i32) {
    %c0_i32 = arith.constant 0 : i32
    %c0_i32_0 = arith.constant 0 : i32
    %c0_i32_1 = arith.constant 0 : i32
    return %c0_i32, %c0_i32_0 : i32, i32
  }
  func.func @transform_13(%arg0: i32) -> (i32, i32) {
    %c0_i32 = arith.constant 0 : i32
    %c0_i32_0 = arith.constant 0 : i32
    %c0_i32_1 = arith.constant 0 : i32
    return %c0_i32, %c0_i32_0 : i32, i32
  }
  func.func @transform_14(%arg0: i32) -> (i32, i32) {
    %c0_i32 = arith.constant 0 : i32
    %c0_i32_0 = arith.constant 0 : i32
    %c0_i32_1 = arith.constant 0 : i32
    return %c0_i32, %c0_i32_0 : i32, i32
  }
  func.func @transform_15(%arg0: i32) -> (i32, i32) {
    %c0_i32 = arith.constant 0 : i32
    %c0_i32_0 = arith.constant 0 : i32
    %c0_i32_1 = arith.constant 0 : i32
    return %c0_i32, %c0_i32_0 : i32, i32
  }
  func.func @transform_16(%arg0: i32) -> (i32, i32) {
    %c0_i32 = arith.constant 0 : i32
    %c0_i32_0 = arith.constant 0 : i32
    %c0_i32_1 = arith.constant 0 : i32
    return %c0_i32, %c0_i32_0 : i32, i32
  }
  func.func @transform_17(%arg0: i32) -> (i32, i32) {
    %c0_i32 = arith.constant 0 : i32
    %c0_i32_0 = arith.constant 0 : i32
    %c0_i32_1 = arith.constant 0 : i32
    return %c0_i32, %c0_i32_0 : i32, i32
  }
  func.func @transform_18(%arg0: i32) -> (i32, i32, i32) {
    %c0_i32 = arith.constant 0 : i32
    %c0_i32_0 = arith.constant 0 : i32
    %c0_i32_1 = arith.constant 0 : i32
    return %arg0, %c0_i32, %c0_i32_0 : i32, i32, i32
  }
}

module attributes {stable_mosaic.version = 11 : i64} {
  func.func @attention_block_kernel(%arg0: i32, %arg1: memref<1x8x32xf32, #tpu.memory_space<vmem>>, %arg2: memref<8x8xf32, #tpu.memory_space<vmem>>, %arg3: memref<32x32xbf16, #tpu.memory_space<vmem>>, %arg4: memref<1x32xf32, #tpu.memory_space<vmem>>, %arg5: memref<32x32xbf16, #tpu.memory_space<vmem>>, %arg6: memref<1x32xf32, #tpu.memory_space<vmem>>, %arg7: memref<32x32xbf16, #tpu.memory_space<vmem>>, %arg8: memref<1x32xf32, #tpu.memory_space<vmem>>, %arg9: memref<32x32xbf16, #tpu.memory_space<vmem>>, %arg10: memref<1x32xf32, #tpu.memory_space<vmem>>, %arg11: memref<1x32xf32, #tpu.memory_space<vmem>>, %arg12: memref<1x32xf32, #tpu.memory_space<vmem>>, %arg13: memref<32x128xbf16, #tpu.memory_space<vmem>>, %arg14: memref<1x128xf32, #tpu.memory_space<vmem>>, %arg15: memref<128x32xbf16, #tpu.memory_space<vmem>>, %arg16: memref<1x32xf32, #tpu.memory_space<vmem>>, %arg17: memref<1x32xf32, #tpu.memory_space<vmem>>, %arg18: memref<1x32xf32, #tpu.memory_space<vmem>>, %arg19: memref<1x8x32xf32, #tpu.memory_space<vmem>>) attributes {dimension_semantics = [#tpu.dimension_semantics<parallel>], iteration_bounds = array<i64: 2>, scalar_prefetch = 0 : i64, scratch_operands = 0 : i64, tpu.core_type = #tpu.core_type<tc>, window_params = [{transform_indices = @transform_0, window_bounds = array<i64: 1, 8, 32>}, {pipeline_mode = #tpu.pipeline_mode<synchronous>, transform_indices = @transform_1, window_bounds = array<i64: 8, 8>}, {pipeline_mode = #tpu.pipeline_mode<synchronous>, transform_indices = @transform_2, window_bounds = array<i64: 32, 32>}, {pipeline_mode = #tpu.pipeline_mode<synchronous>, transform_indices = @transform_3, window_bounds = array<i64: 1, 32>}, {pipeline_mode = #tpu.pipeline_mode<synchronous>, transform_indices = @transform_4, window_bounds = array<i64: 32, 32>}, {pipeline_mode = #tpu.pipeline_mode<synchronous>, transform_indices = @transform_5, window_bounds = array<i64: 1, 32>}, {pipeline_mode = #tpu.pipeline_mode<synchronous>, transform_indices = @transform_6, window_bounds = array<i64: 32, 32>}, {pipeline_mode = #tpu.pipeline_mode<synchronous>, transform_indices = @transform_7, window_bounds = array<i64: 1, 32>}, {pipeline_mode = #tpu.pipeline_mode<synchronous>, transform_indices = @transform_8, window_bounds = array<i64: 32, 32>}, {pipeline_mode = #tpu.pipeline_mode<synchronous>, transform_indices = @transform_9, window_bounds = array<i64: 1, 32>}, {pipeline_mode = #tpu.pipeline_mode<synchronous>, transform_indices = @transform_10, window_bounds = array<i64: 1, 32>}, {pipeline_mode = #tpu.pipeline_mode<synchronous>, transform_indices = @transform_11, window_bounds = array<i64: 1, 32>}, {pipeline_mode = #tpu.pipeline_mode<synchronous>, transform_indices = @transform_12, window_bounds = array<i64: 32, 128>}, {pipeline_mode = #tpu.pipeline_mode<synchronous>, transform_indices = @transform_13, window_bounds = array<i64: 1, 128>}, {pipeline_mode = #tpu.pipeline_mode<synchronous>, transform_indices = @transform_14, window_bounds = array<i64: 128, 32>}, {pipeline_mode = #tpu.pipeline_mode<synchronous>, transform_indices = @transform_15, window_bounds = array<i64: 1, 32>}, {pipeline_mode = #tpu.pipeline_mode<synchronous>, transform_indices = @transform_16, window_bounds = array<i64: 1, 32>}, {pipeline_mode = #tpu.pipeline_mode<synchronous>, transform_indices = @transform_17, window_bounds = array<i64: 1, 32>}, {transform_indices = @transform_18, window_bounds = array<i64: 1, 8, 32>}]} {
    %c0 = arith.constant 0 : index
    %c0_0 = arith.constant 0 : index
    %c0_1 = arith.constant 0 : index
    %0 = vector.load %arg1[%c0, %c0_0, %c0_1] : memref<1x8x32xf32, #tpu.memory_space<vmem>>, vector<1x8x32xf32>
    %1 = vector.shape_cast %0 : vector<1x8x32xf32> to vector<8x32xf32>
    %2 = arith.truncf %1 : vector<8x32xf32> to vector<8x32xbf16>
    %c0_2 = arith.constant 0 : index
    %c0_3 = arith.constant 0 : index
    %3 = vector.load %arg3[%c0_2, %c0_3] : memref<32x32xbf16, #tpu.memory_space<vmem>>, vector<32x32xbf16>
    %cst = arith.constant dense<0.000000e+00> : vector<8x32xf32>
    %4 = tpu.matmul %2, %3, %cst {dimension_numbers = #tpu.dot_dimension_numbers<[1], [0], [0], [1], [0, 0, 1, 1], [], []>} : vector<8x32xbf16>, vector<32x32xbf16>, vector<8x32xf32> -> vector<8x32xf32>
    %c0_4 = arith.constant 0 : index
    %c0_5 = arith.constant 0 : index
    %5 = vector.load %arg4[%c0_4, %c0_5] : memref<1x32xf32, #tpu.memory_space<vmem>>, vector<1x32xf32>
    %6 = vector.shape_cast %5 : vector<1x32xf32> to vector<32xf32>
    %7 = vector.shape_cast %6 : vector<32xf32> to vector<1x32xf32>
    %8 = vector.broadcast %7 : vector<1x32xf32> to vector<8x32xf32>
    %9 = arith.addf %4, %8 : vector<8x32xf32>
    %c0_6 = arith.constant 0 : index
    %c0_7 = arith.constant 0 : index
    %10 = vector.load %arg5[%c0_6, %c0_7] : memref<32x32xbf16, #tpu.memory_space<vmem>>, vector<32x32xbf16>
    %cst_8 = arith.constant dense<0.000000e+00> : vector<8x32xf32>
    %11 = tpu.matmul %2, %10, %cst_8 {dimension_numbers = #tpu.dot_dimension_numbers<[1], [0], [0], [1], [0, 0, 1, 1], [], []>} : vector<8x32xbf16>, vector<32x32xbf16>, vector<8x32xf32> -> vector<8x32xf32>
    %c0_9 = arith.constant 0 : index
    %c0_10 = arith.constant 0 : index
    %12 = vector.load %arg6[%c0_9, %c0_10] : memref<1x32xf32, #tpu.memory_space<vmem>>, vector<1x32xf32>
    %13 = vector.shape_cast %12 : vector<1x32xf32> to vector<32xf32>
    %14 = vector.shape_cast %13 : vector<32xf32> to vector<1x32xf32>
    %15 = vector.broadcast %14 : vector<1x32xf32> to vector<8x32xf32>
    %16 = arith.addf %11, %15 : vector<8x32xf32>
    %c0_11 = arith.constant 0 : index
    %c0_12 = arith.constant 0 : index
    %17 = vector.load %arg7[%c0_11, %c0_12] : memref<32x32xbf16, #tpu.memory_space<vmem>>, vector<32x32xbf16>
    %cst_13 = arith.constant dense<0.000000e+00> : vector<8x32xf32>
    %18 = tpu.matmul %2, %17, %cst_13 {dimension_numbers = #tpu.dot_dimension_numbers<[1], [0], [0], [1], [0, 0, 1, 1], [], []>} : vector<8x32xbf16>, vector<32x32xbf16>, vector<8x32xf32> -> vector<8x32xf32>
    %c0_14 = arith.constant 0 : index
    %c0_15 = arith.constant 0 : index
    %19 = vector.load %arg8[%c0_14, %c0_15] : memref<1x32xf32, #tpu.memory_space<vmem>>, vector<1x32xf32>
    %20 = vector.shape_cast %19 : vector<1x32xf32> to vector<32xf32>
    %21 = vector.shape_cast %20 : vector<32xf32> to vector<1x32xf32>
    %22 = vector.broadcast %21 : vector<1x32xf32> to vector<8x32xf32>
    %23 = arith.addf %18, %22 : vector<8x32xf32>
    %24 = vector.shape_cast %9 : vector<8x32xf32> to vector<1x8x4x8xf32>
    %25 = tpu.transpose %24, [0, 2, 1, 3] : vector<1x8x4x8xf32> -> vector<1x4x8x8xf32>
    %26 = vector.shape_cast %25 : vector<1x4x8x8xf32> to vector<4x8x8xf32>
    %27 = arith.truncf %26 : vector<4x8x8xf32> to vector<4x8x8xbf16>
    %28 = vector.shape_cast %16 : vector<8x32xf32> to vector<1x8x4x8xf32>
    %29 = tpu.transpose %28, [0, 2, 1, 3] : vector<1x8x4x8xf32> -> vector<1x4x8x8xf32>
    %30 = vector.shape_cast %29 : vector<1x4x8x8xf32> to vector<4x8x8xf32>
    %31 = arith.truncf %30 : vector<4x8x8xf32> to vector<4x8x8xbf16>
    %32 = vector.shape_cast %23 : vector<8x32xf32> to vector<1x8x4x8xf32>
    %33 = tpu.transpose %32, [0, 2, 1, 3] : vector<1x8x4x8xf32> -> vector<1x4x8x8xf32>
    %34 = vector.shape_cast %33 : vector<1x4x8x8xf32> to vector<4x8x8xf32>
    %35 = arith.truncf %34 : vector<4x8x8xf32> to vector<4x8x8xbf16>
    %cst_16 = arith.constant 0xFF800000 : f32
    %36 = vector.broadcast %cst_16 : f32 to vector<4x8x1xf32>
    %cst_17 = arith.constant 0.000000e+00 : f32
    %37 = vector.broadcast %cst_17 : f32 to vector<4x8x1xf32>
    %cst_18 = arith.constant 0.000000e+00 : f32
    %38 = vector.broadcast %cst_18 : f32 to vector<4x8x8xf32>
    "tpu.trace_start"() <{level = 10 : i32, message = "bqd,bkd->bqk"}> : () -> ()
    %cst_19 = arith.constant dense<0.000000e+00> : vector<4x8x8xf32>
    %39 = tpu.matmul %27, %31, %cst_19 {dimension_numbers = #tpu.dot_dimension_numbers<[2], [2], [1], [1], [0, 0, 0, 1, 1, 1], [0], [0]>} : vector<4x8x8xbf16>, vector<4x8x8xbf16>, vector<4x8x8xf32> -> vector<4x8x8xf32>
    "tpu.trace_stop"() : () -> ()
    %c0_20 = arith.constant 0 : index
    %c0_21 = arith.constant 0 : index
    %40 = vector.load %arg2[%c0_20, %c0_21] : memref<8x8xf32, #tpu.memory_space<vmem>>, vector<8x8xf32>
    %41 = vector.shape_cast %40 : vector<8x8xf32> to vector<1x8x8xf32>
    %42 = vector.broadcast %41 : vector<1x8x8xf32> to vector<4x8x8xf32>
    %43 = arith.addf %39, %42 : vector<4x8x8xf32>
    %cst_22 = arith.constant dense<0xFF800000> : vector<4x8xf32>
    %44 = vector.multi_reduction <maximumf>, %43, %cst_22 [2] : vector<4x8x8xf32> to vector<4x8xf32>
    %45 = vector.shape_cast %44 : vector<4x8xf32> to vector<4x8x1xf32>
    %46 = arith.maximumf %36, %45 : vector<4x8x1xf32>
    %47 = arith.subf %36, %46 : vector<4x8x1xf32>
    %48 = math.exp %47 : vector<4x8x1xf32>
    %49 = vector.broadcast %46 : vector<4x8x1xf32> to vector<4x8x8xf32>
    %50 = arith.subf %43, %49 : vector<4x8x8xf32>
    %51 = math.exp %50 : vector<4x8x8xf32>
    %52 = arith.mulf %48, %37 : vector<4x8x1xf32>
    %cst_23 = arith.constant dense<0.000000e+00> : vector<4x8xf32>
    %53 = vector.multi_reduction <add>, %51, %cst_23 [2] : vector<4x8x8xf32> to vector<4x8xf32>
    %54 = vector.shape_cast %53 : vector<4x8xf32> to vector<4x8x1xf32>
    %55 = arith.addf %52, %54 : vector<4x8x1xf32>
    %56 = vector.broadcast %48 : vector<4x8x1xf32> to vector<4x8x8xf32>
    %57 = arith.mulf %56, %38 : vector<4x8x8xf32>
    %58 = arith.truncf %51 : vector<4x8x8xf32> to vector<4x8x8xbf16>
    "tpu.trace_start"() <{level = 10 : i32, message = "bqk,bkd->bqd"}> : () -> ()
    %cst_24 = arith.constant dense<0.000000e+00> : vector<4x8x8xf32>
    %59 = tpu.matmul %58, %35, %cst_24 {dimension_numbers = #tpu.dot_dimension_numbers<[2], [1], [1], [2], [0, 0, 0, 1, 1, 2], [0], [0]>} : vector<4x8x8xbf16>, vector<4x8x8xbf16>, vector<4x8x8xf32> -> vector<4x8x8xf32>
    "tpu.trace_stop"() : () -> ()
    %60 = arith.addf %57, %59 : vector<4x8x8xf32>
    %61 = tpu.reciprocal %55 {approx = true} : vector<4x8x1xf32> -> vector<4x8x1xf32>
    %62 = vector.broadcast %61 : vector<4x8x1xf32> to vector<4x8x8xf32>
    %63 = arith.mulf %60, %62 : vector<4x8x8xf32>
    %64 = vector.shape_cast %63 : vector<4x8x8xf32> to vector<1x4x8x8xf32>
    %65 = tpu.transpose %64, [0, 2, 1, 3] : vector<1x4x8x8xf32> -> vector<1x8x4x8xf32>
    %66 = vector.shape_cast %65 : vector<1x8x4x8xf32> to vector<8x32xf32>
    %67 = arith.truncf %66 : vector<8x32xf32> to vector<8x32xbf16>
    %c0_25 = arith.constant 0 : index
    %c0_26 = arith.constant 0 : index
    %68 = vector.load %arg9[%c0_25, %c0_26] : memref<32x32xbf16, #tpu.memory_space<vmem>>, vector<32x32xbf16>
    %cst_27 = arith.constant dense<0.000000e+00> : vector<8x32xf32>
    %69 = tpu.matmul %67, %68, %cst_27 {dimension_numbers = #tpu.dot_dimension_numbers<[1], [0], [0], [1], [0, 0, 1, 1], [], []>} : vector<8x32xbf16>, vector<32x32xbf16>, vector<8x32xf32> -> vector<8x32xf32>
    %c0_28 = arith.constant 0 : index
    %c0_29 = arith.constant 0 : index
    %70 = vector.load %arg10[%c0_28, %c0_29] : memref<1x32xf32, #tpu.memory_space<vmem>>, vector<1x32xf32>
    %71 = vector.shape_cast %70 : vector<1x32xf32> to vector<32xf32>
    %72 = vector.shape_cast %71 : vector<32xf32> to vector<1x32xf32>
    %73 = vector.broadcast %72 : vector<1x32xf32> to vector<8x32xf32>
    %74 = arith.addf %69, %73 : vector<8x32xf32>
    %75 = arith.addf %74, %1 : vector<8x32xf32>
    %c0_30 = arith.constant 0 : index
    %c0_31 = arith.constant 0 : index
    %76 = vector.load %arg11[%c0_30, %c0_31] : memref<1x32xf32, #tpu.memory_space<vmem>>, vector<1x32xf32>
    %77 = vector.shape_cast %76 : vector<1x32xf32> to vector<32xf32>
    %c0_32 = arith.constant 0 : index
    %c0_33 = arith.constant 0 : index
    %78 = vector.load %arg12[%c0_32, %c0_33] : memref<1x32xf32, #tpu.memory_space<vmem>>, vector<1x32xf32>
    %79 = vector.shape_cast %78 : vector<1x32xf32> to vector<32xf32>
    %80 = arith.mulf %75, %75 : vector<8x32xf32>
    %cst_34 = arith.constant dense<0.000000e+00> : vector<8xf32>
    %81 = vector.multi_reduction <add>, %80, %cst_34 [1] : vector<8x32xf32> to vector<8xf32>
    %82 = vector.shape_cast %81 : vector<8xf32> to vector<8x1xf32>
    %cst_35 = arith.constant 3.200000e+01 : f32
    %83 = vector.broadcast %cst_35 : f32 to vector<8x1xf32>
    %84 = arith.divf %82, %83 : vector<8x1xf32>
    %85 = math.sqrt %84 : vector<8x1xf32>
    %cst_36 = arith.constant 9.99999993E-9 : f32
    %86 = vector.broadcast %cst_36 : f32 to vector<8x1xf32>
    %87 = arith.addf %85, %86 : vector<8x1xf32>
    %cst_37 = arith.constant 1.000000e+00 : f32
    %88 = vector.broadcast %cst_37 : f32 to vector<8x1xf32>
    %89 = arith.divf %88, %87 : vector<8x1xf32>
    %90 = vector.shape_cast %77 : vector<32xf32> to vector<1x32xf32>
    %91 = vector.broadcast %90 : vector<1x32xf32> to vector<8x32xf32>
    %92 = arith.mulf %91, %75 : vector<8x32xf32>
    %93 = vector.broadcast %89 : vector<8x1xf32> to vector<8x32xf32>
    %94 = arith.mulf %92, %93 : vector<8x32xf32>
    %95 = vector.shape_cast %79 : vector<32xf32> to vector<1x32xf32>
    %96 = vector.broadcast %95 : vector<1x32xf32> to vector<8x32xf32>
    %97 = arith.addf %94, %96 : vector<8x32xf32>
    %98 = arith.truncf %97 : vector<8x32xf32> to vector<8x32xbf16>
    %cst_38 = arith.constant 0.000000e+00 : f32
    %99 = vector.broadcast %cst_38 : f32 to vector<8x32xf32>
    %c0_39 = arith.constant 0 : index
    %c0_40 = arith.constant 0 : index
    %100 = vector.load %arg13[%c0_39, %c0_40] : memref<32x128xbf16, #tpu.memory_space<vmem>>, vector<32x128xbf16>
    %cst_41 = arith.constant dense<0.000000e+00> : vector<8x128xf32>
    %101 = tpu.matmul %98, %100, %cst_41 {dimension_numbers = #tpu.dot_dimension_numbers<[1], [0], [0], [1], [0, 0, 1, 1], [], []>} : vector<8x32xbf16>, vector<32x128xbf16>, vector<8x128xf32> -> vector<8x128xf32>
    %c0_42 = arith.constant 0 : index
    %c0_43 = arith.constant 0 : index
    %102 = vector.load %arg14[%c0_42, %c0_43] : memref<1x128xf32, #tpu.memory_space<vmem>>, vector<1x128xf32>
    %103 = vector.shape_cast %102 : vector<1x128xf32> to vector<128xf32>
    %104 = vector.shape_cast %103 : vector<128xf32> to vector<1x128xf32>
    %105 = vector.broadcast %104 : vector<1x128xf32> to vector<8x128xf32>
    %106 = arith.addf %101, %105 : vector<8x128xf32>
    %cst_44 = arith.constant 5.000000e-01 : f32
    %107 = vector.broadcast %cst_44 : f32 to vector<8x128xf32>
    %108 = arith.mulf %107, %106 : vector<8x128xf32>
    %cst_45 = arith.constant 4.471500e-02 : f32
    %109 = vector.broadcast %cst_45 : f32 to vector<8x128xf32>
    %110 = arith.mulf %109, %106 : vector<8x128xf32>
    %111 = arith.mulf %110, %106 : vector<8x128xf32>
    %112 = arith.mulf %111, %106 : vector<8x128xf32>
    %113 = arith.addf %106, %112 : vector<8x128xf32>
    %cst_46 = arith.constant 0.797884583 : f32
    %114 = vector.broadcast %cst_46 : f32 to vector<8x128xf32>
    %115 = arith.mulf %114, %113 : vector<8x128xf32>
    %116 = math.tanh %115 : vector<8x128xf32>
    %cst_47 = arith.constant 1.000000e+00 : f32
    %117 = vector.broadcast %cst_47 : f32 to vector<8x128xf32>
    %118 = arith.addf %117, %116 : vector<8x128xf32>
    %119 = arith.mulf %108, %118 : vector<8x128xf32>
    %120 = arith.truncf %119 : vector<8x128xf32> to vector<8x128xbf16>
    %c0_48 = arith.constant 0 : index
    %c0_49 = arith.constant 0 : index
    %121 = vector.load %arg15[%c0_48, %c0_49] : memref<128x32xbf16, #tpu.memory_space<vmem>>, vector<128x32xbf16>
    %cst_50 = arith.constant dense<0.000000e+00> : vector<8x32xf32>
    %122 = tpu.matmul %120, %121, %cst_50 {dimension_numbers = #tpu.dot_dimension_numbers<[1], [0], [0], [1], [0, 0, 1, 1], [], []>} : vector<8x128xbf16>, vector<128x32xbf16>, vector<8x32xf32> -> vector<8x32xf32>
    %123 = arith.addf %99, %122 : vector<8x32xf32>
    %c0_51 = arith.constant 0 : index
    %c0_52 = arith.constant 0 : index
    %124 = vector.load %arg16[%c0_51, %c0_52] : memref<1x32xf32, #tpu.memory_space<vmem>>, vector<1x32xf32>
    %125 = vector.shape_cast %124 : vector<1x32xf32> to vector<32xf32>
    %126 = vector.shape_cast %125 : vector<32xf32> to vector<1x32xf32>
    %127 = vector.broadcast %126 : vector<1x32xf32> to vector<8x32xf32>
    %128 = arith.addf %123, %127 : vector<8x32xf32>
    %129 = arith.addf %128, %97 : vector<8x32xf32>
    %c0_53 = arith.constant 0 : index
    %c0_54 = arith.constant 0 : index
    %130 = vector.load %arg17[%c0_53, %c0_54] : memref<1x32xf32, #tpu.memory_space<vmem>>, vector<1x32xf32>
    %131 = vector.shape_cast %130 : vector<1x32xf32> to vector<32xf32>
    %c0_55 = arith.constant 0 : index
    %c0_56 = arith.constant 0 : index
    %132 = vector.load %arg18[%c0_55, %c0_56] : memref<1x32xf32, #tpu.memory_space<vmem>>, vector<1x32xf32>
    %133 = vector.shape_cast %132 : vector<1x32xf32> to vector<32xf32>
    %134 = arith.mulf %129, %129 : vector<8x32xf32>
    %cst_57 = arith.constant dense<0.000000e+00> : vector<8xf32>
    %135 = vector.multi_reduction <add>, %134, %cst_57 [1] : vector<8x32xf32> to vector<8xf32>
    %136 = vector.shape_cast %135 : vector<8xf32> to vector<8x1xf32>
    %cst_58 = arith.constant 3.200000e+01 : f32
    %137 = vector.broadcast %cst_58 : f32 to vector<8x1xf32>
    %138 = arith.divf %136, %137 : vector<8x1xf32>
    %139 = math.sqrt %138 : vector<8x1xf32>
    %cst_59 = arith.constant 9.99999993E-9 : f32
    %140 = vector.broadcast %cst_59 : f32 to vector<8x1xf32>
    %141 = arith.addf %139, %140 : vector<8x1xf32>
    %cst_60 = arith.constant 1.000000e+00 : f32
    %142 = vector.broadcast %cst_60 : f32 to vector<8x1xf32>
    %143 = arith.divf %142, %141 : vector<8x1xf32>
    %144 = vector.shape_cast %131 : vector<32xf32> to vector<1x32xf32>
    %145 = vector.broadcast %144 : vector<1x32xf32> to vector<8x32xf32>
    %146 = arith.mulf %145, %129 : vector<8x32xf32>
    %147 = vector.broadcast %143 : vector<8x1xf32> to vector<8x32xf32>
    %148 = arith.mulf %146, %147 : vector<8x32xf32>
    %149 = vector.shape_cast %133 : vector<32xf32> to vector<1x32xf32>
    %150 = vector.broadcast %149 : vector<1x32xf32> to vector<8x32xf32>
    %151 = arith.addf %148, %150 : vector<8x32xf32>
    %152 = vector.shape_cast %151 : vector<8x32xf32> to vector<1x8x32xf32>
    %c0_61 = arith.constant 0 : index
    %c0_62 = arith.constant 0 : index
    %c0_63 = arith.constant 0 : index
    %153 = vector.load %arg19[%c0_61, %c0_62, %c0_63] : memref<1x8x32xf32, #tpu.memory_space<vmem>>, vector<1x8x32xf32>
    tpu.vector_store %arg19[%c0_61, %c0_62, %c0_63], %152 {strides = array<i32>} : memref<1x8x32xf32, #tpu.memory_space<vmem>>, vector<1x8x32xf32>,
    return
  }
  func.func @transform_0(%arg0: i32) -> (i32, i32, i32) {
    %c0_i32 = arith.constant 0 : i32
    %c0_i32_0 = arith.constant 0 : i32
    %c0_i32_1 = arith.constant 0 : i32
    return %arg0, %c0_i32, %c0_i32_0 : i32, i32, i32
  }
  func.func @transform_1(%arg0: i32) -> (i32, i32) {
    %c0_i32 = arith.constant 0 : i32
    %c0_i32_0 = arith.constant 0 : i32
    %c0_i32_1 = arith.constant 0 : i32
    return %c0_i32, %c0_i32_0 : i32, i32
  }
  func.func @transform_2(%arg0: i32) -> (i32, i32) {
    %c0_i32 = arith.constant 0 : i32
    %c0_i32_0 = arith.constant 0 : i32
    %c0_i32_1 = arith.constant 0 : i32
    return %c0_i32, %c0_i32_0 : i32, i32
  }
  func.func @transform_3(%arg0: i32) -> (i32, i32) {
    %c0_i32 = arith.constant 0 : i32
    %c0_i32_0 = arith.constant 0 : i32
    %c0_i32_1 = arith.constant 0 : i32
    return %c0_i32, %c0_i32_0 : i32, i32
  }
  func.func @transform_4(%arg0: i32) -> (i32, i32) {
    %c0_i32 = arith.constant 0 : i32
    %c0_i32_0 = arith.constant 0 : i32
    %c0_i32_1 = arith.constant 0 : i32
    return %c0_i32, %c0_i32_0 : i32, i32
  }
  func.func @transform_5(%arg0: i32) -> (i32, i32) {
    %c0_i32 = arith.constant 0 : i32
    %c0_i32_0 = arith.constant 0 : i32
    %c0_i32_1 = arith.constant 0 : i32
    return %c0_i32, %c0_i32_0 : i32, i32
  }
  func.func @transform_6(%arg0: i32) -> (i32, i32) {
    %c0_i32 = arith.constant 0 : i32
    %c0_i32_0 = arith.constant 0 : i32
    %c0_i32_1 = arith.constant 0 : i32
    return %c0_i32, %c0_i32_0 : i32, i32
  }
  func.func @transform_7(%arg0: i32) -> (i32, i32) {
    %c0_i32 = arith.constant 0 : i32
    %c0_i32_0 = arith.constant 0 : i32
    %c0_i32_1 = arith.constant 0 : i32
    return %c0_i32, %c0_i32_0 : i32, i32
  }
  func.func @transform_8(%arg0: i32) -> (i32, i32) {
    %c0_i32 = arith.constant 0 : i32
    %c0_i32_0 = arith.constant 0 : i32
    %c0_i32_1 = arith.constant 0 : i32
    return %c0_i32, %c0_i32_0 : i32, i32
  }
  func.func @transform_9(%arg0: i32) -> (i32, i32) {
    %c0_i32 = arith.constant 0 : i32
    %c0_i32_0 = arith.constant 0 : i32
    %c0_i32_1 = arith.constant 0 : i32
    return %c0_i32, %c0_i32_0 : i32, i32
  }
  func.func @transform_10(%arg0: i32) -> (i32, i32) {
    %c0_i32 = arith.constant 0 : i32
    %c0_i32_0 = arith.constant 0 : i32
    %c0_i32_1 = arith.constant 0 : i32
    return %c0_i32, %c0_i32_0 : i32, i32
  }
  func.func @transform_11(%arg0: i32) -> (i32, i32) {
    %c0_i32 = arith.constant 0 : i32
    %c0_i32_0 = arith.constant 0 : i32
    %c0_i32_1 = arith.constant 0 : i32
    return %c0_i32, %c0_i32_0 : i32, i32
  }
  func.func @transform_12(%arg0: i32) -> (i32, i32) {
    %c0_i32 = arith.constant 0 : i32
    %c0_i32_0 = arith.constant 0 : i32
    %c0_i32_1 = arith.constant 0 : i32
    return %c0_i32, %c0_i32_0 : i32, i32
  }
  func.func @transform_13(%arg0: i32) -> (i32, i32) {
    %c0_i32 = arith.constant 0 : i32
    %c0_i32_0 = arith.constant 0 : i32
    %c0_i32_1 = arith.constant 0 : i32
    return %c0_i32, %c0_i32_0 : i32, i32
  }
  func.func @transform_14(%arg0: i32) -> (i32, i32) {
    %c0_i32 = arith.constant 0 : i32
    %c0_i32_0 = arith.constant 0 : i32
    %c0_i32_1 = arith.constant 0 : i32
    return %c0_i32, %c0_i32_0 : i32, i32
  }
  func.func @transform_15(%arg0: i32) -> (i32, i32) {
    %c0_i32 = arith.constant 0 : i32
    %c0_i32_0 = arith.constant 0 : i32
    %c0_i32_1 = arith.constant 0 : i32
    return %c0_i32, %c0_i32_0 : i32, i32
  }
  func.func @transform_16(%arg0: i32) -> (i32, i32) {
    %c0_i32 = arith.constant 0 : i32
    %c0_i32_0 = arith.constant 0 : i32
    %c0_i32_1 = arith.constant 0 : i32
    return %c0_i32, %c0_i32_0 : i32, i32
  }
  func.func @transform_17(%arg0: i32) -> (i32, i32) {
    %c0_i32 = arith.constant 0 : i32
    %c0_i32_0 = arith.constant 0 : i32
    %c0_i32_1 = arith.constant 0 : i32
    return %c0_i32, %c0_i32_0 : i32, i32
  }
  func.func @transform_18(%arg0: i32) -> (i32, i32, i32) {
    %c0_i32 = arith.constant 0 : i32
    %c0_i32_0 = arith.constant 0 : i32
    %c0_i32_1 = arith.constant 0 : i32
    return %arg0, %c0_i32, %c0_i32_0 : i32, i32, i32
  }
}

</mosaic_0001>

<bundles_post_ra>
// kernel: tpu_custom_call.1
= control target key start
LH: loop header
LB: loop body
LE: loop exit
PB: predicated region body
PF: predicated region fallthrough
CT: control target
= control target key end

     0   :  { %s3429_s0 = inlined_call_operand.vmem [shape: f32[2,8,32], index: 0, kind: input, shape index: {}]   ;;  %s3430_s1 = inlined_call_operand.hbm [shape: f32[8,8], index: 1, kind: input, shape index: {}]   ;;  %s3431_s2 = inlined_call_operand.vmem [shape: bf16[32,32], index: 2, kind: input, shape index: {}]   ;;  %s3432_s3 = inlined_call_operand.hbm [shape: f32[1,32], index: 3, kind: input, shape index: {}]   ;;  %s3433_s4 = inlined_call_operand.vmem [shape: bf16[32,32], index: 4, kind: input, shape index: {}]   ;;  %s3434_s5 = inlined_call_operand.hbm [shape: f32[1,32], index: 5, kind: input, shape index: {}]   ;;  %s3435_s6 = inlined_call_operand.vmem [shape: bf16[32,32], index: 6, kind: input, shape index: {}]   ;;  %s3436_s7 = inlined_call_operand.hbm [shape: f32[1,32], index: 7, kind: input, shape index: {}]   ;;  %s3437_s8 = inlined_call_operand.vmem [shape: bf16[32,32], index: 8, kind: input, shape index: {}]   ;;  %s3438_s9 = inlined_call_operand.hbm [shape: f32[1,32], index: 9, kind: input, shape index: {}]   ;;  %s3439_s10 = inlined_call_operand.vmem [shape: f32[1,32], index: 10, kind: input, shape index: {}]   ;;  %s3440_s11 = inlined_call_operand.vmem [shape: f32[1,32], index: 11, kind: input, shape index: {}]   ;;  %s3441_s12 = inlined_call_operand.vmem [shape: bf16[32,128], index: 12, kind: input, shape index: {}]   ;;  %s3442_s13 = inlined_call_operand.vmem [shape: f32[1,128], index: 13, kind: input, shape index: {}]   ;;  %s3443_s14 = inlined_call_operand.vmem [shape: bf16[128,32], index: 14, kind: input, shape index: {}]   ;;  %s3444_s15 = inlined_call_operand.vmem [shape: f32[1,32], index: 15, kind: input, shape index: {}]   ;;  %s3445_s16 = inlined_call_operand.vmem [shape: f32[1,32], index: 16, kind: input, shape index: {}]   ;;  %s3446_s17 = inlined_call_operand.vmem [shape: f32[1,32], index: 17, kind: input, shape index: {}]   ;;  %s3447_s18 = inlined_call_operand.hbm [shape: f32[2,8,32], index: 18, kind: output, shape index: {}]  }
   0x1   :  { %3458 = sst [smem:[#allocation22_spill]] %s3429_s0 }
   0x2   :  { %3459 = sst [smem:[#allocation23_spill]] %s3430_s1 }
   0x3   :  { %3460 = sst [smem:[#allocation24_spill]] %s3431_s2 }
   0x4   :  { %3461 = sst [smem:[#allocation25_spill]] %s3432_s3 }
   0x5   :  { %23 = vsyncpa [#allocation3], 0 }
   0x6   :  { %24 = vsyncpa [#allocation6], 0 }
   0x7   :  { %25 = vsyncpa [#allocation9], 0 }
   0x8   :  { %26 = vsyncpa [#allocation4], 0 }
   0x9   :  { %28 = vsyncpa [#allocation4 + $0x1], 0  ;;  %s3006_s27 = smov 0   ;;  %s3008_s28 = smov 0  }
   0xa   :  { %s3010_s29 = smov 0   ;;  %s3012_s30 = smov 0  }
   0xb LB: > { %3462 = sst [smem:[#allocation16_spill]] %s2881_s27  ;;  %s3027_s0 = sadd.s32 4294967295, %s2893_s30   ;;  %s2893_s30 = sphi %s3012_s30, %s3490_s30   ;;  %s2889_s29 = sphi %s3010_s29, %s3492_s29   ;;  %s2885_s28 = sphi %s3008_s28, %s3494_s28   ;;  %s2881_s27 = sphi %s3006_s27, %s3493_s27  }
   0xc   : > { %3463 = sst [smem:[#allocation17_spill]] %s2889_s29  ;;  %s2322_s19 = sadd.s32 4294967294, %s2893_s30  }
   0xd   : > { %3464 = sst [smem:[#allocation18_spill]] %s2893_s30  ;;  %s3031_s1 = sadd.s32 1, %s2893_s30  }
   0xe   : > { %3465 = sst [smem:[#allocation19_spill]] %s3031_s1  ;;  %s424_s20 = sadd.s32 1, %s2889_s29 }
   0xf   : > { %s421_s21 = ssub.s32 %s2893_s30, %s3031_s1  ;;  %p434_p0 = scmp.ne.s32.totalorder %s2889_s29, %s2885_s28 }
  0x10   : > { %p422_p1 = scmp.eq.s32.totalorder %s421_s21, 0  ;;  %p435_p2 = scmp.eq.s32.totalorder %s3027_s0, 1 }
  0x11   : > { %p440_p3 = scmp.ne.s32.totalorder %s2885_s28, %s2881_s27  ;;  %p441_p4 = scmp.eq.s32.totalorder %s2322_s19, 1 }
  0x12   : > { %s3042_s22 = scalar_select %p422_p1, %s2889_s29, %s424_s20  }
  0x13   : > { %p3044_p5 = por %p435_p2, %p434_p0  ;;  %p3048_p6 = por %p441_p4, %p440_p3 }
  0x14   : > { %3466 = sst [smem:[#allocation20_spill]] %s3042_s22  ;;  %p2323_p7 = scmp.ge.s32.totalorder %s2893_s30, 1 }
  0x15   : > { %s3467_s2 = scalar_select %p3044_p5, 1, 0 }
  0x16   : > { %s3468_s23 = scalar_select %p3048_p6, 1, 0 }
  0x17   : > { %p448_p8 = scmp.lt.s32.totalorder %s2893_s30, 3  ;;  %p3454_p9 = scmp.eq.s32.totalorder %s3027_s0, 0 }
  0x18   : > { %3469 = sst [smem:[#allocation21_spill]] %s3468_s23  ;;  %s2895_s25 = smov [#allocation5]  }
  0x19   : > { %p3055_p10 = pnand %p2323_p7, %p448_p8  ;;  %s475_s26 = sshll.u32 %s2895_s25, 4  ;;  %s476_s26 = int_to_ptr.vmem [resolvable:$true] %s475_s26 }
  0x1a   : > { %s2896_s19 = smov [#allocation8]   ;;  %s2897_s22 = smov [#allocation2]  }
  0x1b   : > { %s3470_s24 = scalar_select %p3055_p10, 1, 0 }
  0x1c   : > { %p2561_p11 = pneg %p3055_p10  ;;  %s503_s20 = sshll.u32 %s2896_s19, 4  ;;  %s504_s20 = int_to_ptr.vmem [resolvable:$true] %s503_s20 }
  0x1d   : > { %s461_s29 = sshll.u32 %s2897_s22, 4  ;;  %s2702_s25 = scalar_lea.vmem %s476_s26, 16  ;;  %s3067_s29 = int_to_ptr.vmem [resolvable:$true] %s461_s29 }
  0x1e   : > { %p3063_p12 = pnand %p3454_p9, %p2561_p11  ;;  %p2703_p0 = scmp.ne.s32.totalorder %s476_s26, %s2702_s25 }
  0x1f   : > { %s2709_s19 = scalar_lea.vmem %s476_s26, 32  ;;  %p2710_p3 = scmp.lt.s32.totalorder %s476_s26, %s476_s26 }
  0x20   : > { %p3071_p13 = pneg %p3063_p12  ;;  %p2711_p4 = scmp.lt.s32.totalorder %s2709_s19, %s2702_s25 }
  0x22   : > { %p2705_p1 = pnand %p2703_p0, %p3071_p13  ;;  %p2712_p7 = por %p2711_p4, %p2710_p3 }
  0x24   : > { %p2706_p2 = pneg %p2705_p1 }
  0x26   : > { %p2713_p8 = pnand %p2712_p7, %p2706_p2 }
  0x28   : > { %2716 = shalt.err (!%p2713_p8)
}
  0x29   : > { %s3473_s3 = sld [smem:[#allocation25_spill]]  ;;  %s2728_s27 = scalar_lea.vmem %s504_s20, 16 }
  0x2a   : > { %p2729_p11 = scmp.ne.s32.totalorder %s504_s20, %s2728_s27  ;;  %s2735_s30 = scalar_lea.vmem %s504_s20, 32 }
  0x2b   : > { %p2736_p0 = scmp.lt.s32.totalorder %s504_s20, %s504_s20  ;;  %p2737_p1 = scmp.lt.s32.totalorder %s2735_s30, %s2728_s27 }
  0x2c   : > { %p2731_p9 = pnand %p2729_p11, %p3071_p13 }
  0x2d   : > { %p2738_p5 = por %p2737_p1, %p2736_p0 }
  0x2e   : > { %p2732_p6 = pneg %p2731_p9 }
  0x2f   : > { %2567 = dma.hbm_to_vmem [thread:$0]  (!%p3063_p12), %s3473_s3, 16, %s476_s26, [#allocation6]  }
  0x30   : > { %p2739_p10 = pnand %p2738_p5, %p2732_p6 }
  0x32   : > { %2742 = shalt.err (!%p2739_p10)
}
  0x33   : > { %2573 = dma.hbm_to_vmem [thread:$0]  (!%p3063_p12), %s3436_s7, 16, %s504_s20, [#allocation9]  }
  0x34   : > { %s2754_s23 = scalar_lea.vmem %s3067_s29, 128  ;;  %p2762_p4 = scmp.lt.s32.totalorder %s3067_s29, %s3067_s29 }
  0x35   : > { %p2755_p2 = scmp.ne.s32.totalorder %s3067_s29, %s2754_s23  ;;  %p2763_p7 = scmp.lt.s32.totalorder %s2754_s23, %s2754_s23 }
  0x37   : > { %p2757_p9 = pnand %p2755_p2, %p3071_p13  ;;  %p2764_p5 = por %p2763_p7, %p2762_p4 }
  0x39   : > { %p2758_p3 = pneg %p2757_p9 }
  0x3b   : > { %p2765_p6 = pnand %p2764_p5, %p2758_p3 }
  0x3d   : > { %2768 = shalt.err (!%p2765_p6)
}
  0x3e   : > { %s3474_s26 = sld [smem:[#allocation23_spill]]  ;;  %s2898_s20 = smov [#allocation7]  }
  0x3f   : > { %s489_s22 = sshll.u32 %s2898_s20, 4  ;;  %s2899_s25 = smov [#allocation10]   ;;  %s490_s22 = int_to_ptr.vmem [resolvable:$true] %s489_s22 }
  0x40   : > { %s517_s19 = sshll.u32 %s2899_s25, 4  ;;  %s2780_s3 = scalar_lea.vmem %s490_s22, 16  ;;  %s518_s19 = int_to_ptr.vmem [resolvable:$true] %s517_s19 }
  0x41   : > { %p2781_p10 = scmp.ne.s32.totalorder %s490_s22, %s2780_s3  ;;  %s2787_s23 = scalar_lea.vmem %s490_s22, 32 }
  0x42   : > { %p2788_p0 = scmp.lt.s32.totalorder %s490_s22, %s490_s22  ;;  %p2789_p1 = scmp.lt.s32.totalorder %s2787_s23, %s2780_s3 }
  0x43   : > { %p2783_p8 = pnand %p2781_p10, %p3071_p13 }
  0x44   : > { %2564 = dma.hbm_to_vmem [thread:$0]  (!%p3063_p12), %s3474_s26, 128, %s3067_s29, [#allocation3]  }
  0x45   : > { %p2784_p11 = pneg %p2783_p8  ;;  %p2790_p2 = por %p2789_p1, %p2788_p0 }
  0x47   : > { %p2791_p9 = pnand %p2790_p2, %p2784_p11 }
  0x49   : > { %2794 = shalt.err (!%p2791_p9)
}
  0x4a   : > { %2570 = dma.hbm_to_vmem [thread:$0]  (!%p3063_p12), %s3434_s5, 16, %s490_s22, [#allocation6]  }
  0x4b   : > { %s2806_s30 = scalar_lea.vmem %s518_s19, 16  ;;  %s2813_s26 = scalar_lea.vmem %s518_s19, 32 }
  0x4c   : > { %p2807_p3 = scmp.ne.s32.totalorder %s518_s19, %s2806_s30  ;;  %p2814_p5 = scmp.lt.s32.totalorder %s518_s19, %s518_s19 }
  0x4d   : > { %p2815_p6 = scmp.lt.s32.totalorder %s2813_s26, %s2806_s30 }
  0x4e   : > { %p2809_p4 = pnand %p2807_p3, %p3071_p13 }
  0x4f   : > { %p2816_p10 = por %p2815_p6, %p2814_p5 }
  0x50   : > { %p2810_p7 = pneg %p2809_p4 }
  0x52   : > { %p2817_p8 = pnand %p2816_p10, %p2810_p7 }
  0x54   : > { %2820 = shalt.err (!%p2817_p8)
}
  0x55   : > { %2576 = dma.hbm_to_vmem [thread:$0]  (!%p3063_p12), %s3438_s9, 16, %s518_s19, [#allocation9]  }
  0x56   : > { %p3475_p11 = scmp.ne.s32.totalorder %s3470_s24, 0 }
  0x57   : > { %p3476_p0 = scmp.eq.s32.totalorder (!%p3475_p11), %s3027_s0, 0 }
  0x58   : > { %561 = sbr.rel (%p3475_p11) target bundleno = 2206 (0x89e), region = 92 }
  0x5d   : > { %2864 = dma.done.wait (%p3476_p0), [#allocation3], 128   ;;  %p3477_p13 = pmov %p3476_p0 }
  0x5e   : > { %p3478_p1 = pmov %p3476_p0 }
  0x5f   : > { %2866 = vsyncadd (%p3477_p13), [#allocation3], 4294967168 }
  0x60   : > { %2868 = dma.done.wait (%p3478_p1), [#allocation6], 32   ;;  %p3479_p2 = pmov %p3476_p0 }
  0x61   : > { %p3480_p9 = pmov %p3476_p0 }
  0x62   : > { %2870 = vsyncadd (%p3479_p2), [#allocation6], 4294967264 }
  0x63   : > { %2872 = dma.done.wait (%p3480_p9), [#allocation9], 32   ;;  %p3481_p12 = pmov %p3476_p0 }
  0x64   : > { %p630_p3 = scmp.lt.s32.totalorder %s3027_s0, 1  ;;  %v2900_v0 = vmov 0.0   ;;  %vm2901_vm0 = vmmov 0   ;;  %s3482_s25 = sld [smem:[#allocation22_spill]]  ;;  %vm660_vm1 = vcmask 261120   ;;  %v2641_v4 = vld [vmem:[%s3433_s4 + $0x8] sm:$0xff]   ;;  %v845_v29 = vlaneseq }
  0x65   : > { %2874 = vsyncadd (%p3481_p12), [#allocation9], 4294967264  ;;  %2431 = vmatprep.subr.bf16.mxu0 %v2900_v0  ;;  %2435 = vmatprep.mubr.msk.bf16.mxu0 %vm2901_vm0, %v2900_v0  ;;  %s3483_s29 = sld [smem:[#allocation24_spill]]  ;;  %v2642_v6 = vld [vmem:[%s3433_s4] sm:$0xff]   ;;  %v2643_v7 = vld [vmem:[%s3435_s6 + $0x8] sm:$0xff]   ;;  %s2902_s27 = smov 104  }
  0x66   : > { %s631_s1 = scalar_select %p630_p3, %s3027_s0, 1  ;;  %2455 = vmatprep.subr.bf16.mxu1 %v2900_v0  ;;  %2457 = vmatprep.mubr.msk.bf16.mxu1 %vm2901_vm0, %v2900_v0  ;;  %v2644_v8 = vld [vmem:[%s3435_s6] sm:$0xff]   ;;  %v2342_v13 = vld [vmem:[#allocation7] ss:$0 sm:$0xff]  ;;  %v2338_v16 = vld [vmem:[#allocation5] ss:$0 sm:$0xff] }
  0x67   : > { %s2904_s30 = smov 112   ;;  %v2346_v21 = vld [vmem:[#allocation8] ss:$0 sm:$0xff]  ;;  %v2905_v27 = vmov 1983009808   ;;  %v846_v33 = vshrl.u32 %v845_v29, 7 }
  0x68   : > { %s2337_s24 = sshll.u32 %s631_s1, 3  ;;  %v843_v28 = vunpack.c.l.s4 %v2905_v27  ;;  %v2906_v30 = vmov 1934713408   ;;  %vm1281_vm2 = vcmask 64512   ;;  %vm1529_vm3 = vcmask 1043456   ;;  %s2907_s21 = smov 16  }
  0x69   : > { %v875_v31 = vunpack.c.l.s4 %v2906_v30  ;;  %s2908_s22 = smov 8   ;;  %vm1872_vm4 = vcmask 130048   ;;  %vm1874_vm5 = vcmask 195584   ;;  %p3485_p7 = scmp.ne.s32.totalorder %s3467_s2, 0 }
  0x6a   : > { %s633_s19 = scalar_lea.vmem %s3482_s25, %s2337_s24  ;;  %v844_v32 = vunpack.c.0.s8 %v843_v28  ;;  %s2909_s25 = smov 24  }
  0x6b   : > { %s3484_s26 = smov %s3483_s29  ;;  %v2639_v1 = vld [vmem:[%s3483_s29 + $0x8] sm:$0xff]   ;;  %v3146_v3 = vld [vmem:[%s633_s19] sm:$0xff]  ;;  %s2903_s29 = smov 120   ;;  %v876_v36 = vunpack.c.0.s8 %v875_v31 }
  0x6c   : > { %v2640_v2 = vld [vmem:[%s3484_s26] sm:$0xff]   ;;  %2432 = vmatpush3.bf16.msra.mxu0 %v2639_v1  ;;  %v636_v5 = vpack.c.bf16 %v3146_v3, %v3146_v3  ;;  %v3184_v37 = vsub.s32 %v844_v32, %v846_v33  ;;  %s2910_s24 = smov [#allocation11]  }
  0x6d   : > { %2433 = vmatprep.subr.bf16.mxu0 %v2900_v0  ;;  %v3186_v44 = vsub.s32 %v876_v36, %v846_v33 }
  0x70   : > { %2434 = vmatpush3.bf16.msra.mxu0 %v2640_v2 }
  0x71   : > { %2439 = vmatprep.subr.bf16.mxu0 %v2900_v0 }
  0x73   : > { %2436 = vmatmul.mubr.msk.bf16.vlgmr.msra.gmra.mxu0 %vm660_vm1, %v636_v5 }
  0x74   : > { %2440 = vmatpush3.bf16.msra.mxu0 %v2641_v4  ;;  %2443 = vmatprep.mubr.msk.bf16.mxu0 %vm2901_vm0, %v2900_v0 }
  0x75   : > { %2441 = vmatprep.subr.bf16.mxu0 %v2900_v0 }
  0x78   : > { %2442 = vmatpush3.bf16.msra.mxu0 %v2642_v6 }
  0x79   : > { %2447 = vmatprep.subr.bf16.mxu0 %v2900_v0 }
  0x7b   : > { %2444 = vmatmul.mubr.msk.bf16.vlgmr.msra.gmra.mxu0 %vm660_vm1, %v636_v5 }
  0x7c   : > { %2451 = vmatprep.mubr.msk.bf16.mxu0 %vm2901_vm0, %v2900_v0  ;;  %2448 = vmatpush3.bf16.msra.mxu0 %v2643_v7 }
  0x7d   : > { %2449 = vmatprep.subr.bf16.mxu0 %v2900_v0 }
  0x80   : > { %2450 = vmatpush3.bf16.msra.mxu0 %v2644_v8 }
  0x81   : > { %2461 = vmatprep.subr.bf16.mxu0 %v2900_v0 }
  0x83   : > { %2452 = vmatmul.mubr.msk.bf16.vlgmr.msra.gmra.mxu0 %vm660_vm1, %v636_v5 }
  0x84   : > { %2463 = vmatprep.mubr.msk.bf16.mxu0 %vm2901_vm0, %v2900_v0 }
 0x133   : > { %v698_v9 = vpop.f32.mrf.mxu0 }
 0x134   : > { %v699_v19 = vadd.f32 %v2338_v16, %v698_v9 }
 0x135   : > { %v2437_v10 = vpop.f32.mrf.mxu0 }
 0x137   : > { %v701_v11 = vpop.f32.mrf.mxu0 }
 0x139   : > { %v2438_v12 = vpop.f32.mrf.mxu0 }
 0x13b   : > { %v761_v14 = vpop.f32.mrf.mxu0 }
 0x13c   : > { %v762_v15 = vadd.f32 %v2342_v13, %v761_v14 }
 0x13d   : > { %v2445_v17 = vpop.f32.mrf.mxu0 }
 0x13e   : > { %987 = vrot.lane.b32.xlu1 %v762_v15, %s2902_s27  ;;  %981 = vrot.lane.b32.xlu0 %v762_v15, %s2903_s29 }
 0x13f   : > { %v764_v18 = vpop.f32.mrf.mxu0 }
 0x141   : > { %v2446_v20 = vpop.f32.mrf.mxu0 }
 0x142   : > { %831 = vrot.lane.b32.xlu1 %v699_v19, %s2903_s29  ;;  %984 = vrot.lane.b32.xlu0 %v762_v15, %s2904_s30 }
 0x143   : > { %v824_v22 = vpop.f32.mrf.mxu0 }
 0x144   : > { %v3181_v23 = vadd.f32 %v2346_v21, %v824_v22 }
 0x145   : > { %v2453_v24 = vpop.f32.mrf.mxu0 }
 0x146   : > { %837 = vrot.lane.b32.xlu1 %v699_v19, %s2902_s27  ;;  %834 = vrot.lane.b32.xlu0 %v699_v19, %s2904_s30 }
 0x147   : > { %v827_v25 = vpop.f32.mrf.mxu0 }
 0x149   : > { %v2454_v26 = vpop.f32.mrf.mxu0 }
 0x14a   : > { %1131 = vrot.lane.b32.xlu0 %v3181_v23, %s2903_s29 }
 0x1b0   : > { %v988_v34 = vpop.permute.xlu1 %987  ;;  %v982_v35 = vpop.permute.xlu0 %981 }
 0x1b1   : > { %v1006_v38 = vcombine.low %v982_v35, %v988_v34  ;;  %v1007_v39 = vcombine.high %v982_v35, %v988_v34 }
 0x1b3   : > { %v1014_v45 = vrot.slane %v1006_v38, %v3184_v37  ;;  %v1021_v46 = vrot.slane %v1007_v39, %v3184_v37 }
 0x1b4   : > { %v832_v40 = vpop.permute.xlu1 %831  ;;  %v985_v41 = vpop.permute.xlu0 %984 }
 0x1b5   : > { %v990_v42 = vcombine.low %v762_v15, %v985_v41  ;;  %v991_v43 = vcombine.high %v762_v15, %v985_v41 }
 0x1b7   : > { %v998_v47 = vrot.slane %v990_v42, %v3184_v37  ;;  %v1005_v48 = vrot.slane %v991_v43, %v3184_v37 }
 0x1b8   : > { %v838_v49 = vpop.permute.xlu1 %837  ;;  %v835_v50 = vpop.permute.xlu0 %834 }
 0x1b9   : > { %v1022_v51 = vcombine.low %v998_v47, %v1014_v45  ;;  %v1023_v52 = vcombine.high %v998_v47, %v1014_v45  ;;  %v1038_v53 = vcombine.low %v1005_v48, %v1021_v46  ;;  %v1039_v54 = vcombine.high %v1005_v48, %v1021_v46 }
 0x1ba   : > { %v856_v55 = vcombine.low %v832_v40, %v838_v49  ;;  %v857_v56 = vcombine.high %v832_v40, %v838_v49  ;;  %v840_v57 = vcombine.low %v699_v19, %v835_v50  ;;  %v841_v58 = vcombine.high %v699_v19, %v835_v50 }
 0x1bb   : > { %v1030_v59 = vrot.slane %v1022_v51, %v3186_v44  ;;  %v1037_v60 = vrot.slane %v1023_v52, %v3186_v44  ;;  %v1046_v61 = vrot.slane %v1038_v53, %v3186_v44  ;;  %v1053_v62 = vrot.slane %v1039_v54, %v3186_v44 }
 0x1bc   : > { %v864_v63 = vrot.slane %v856_v55, %v3184_v37  ;;  %v871_v1 = vrot.slane %v857_v56, %v3184_v37  ;;  %v848_v2 = vrot.slane %v840_v57, %v3184_v37  ;;  %v855_v4 = vrot.slane %v841_v58, %v3184_v37 }
 0x1bd   : > { %v1058_v5 = vcombine.low %v1030_v59, %v1037_v60  ;;  %v2352_v6 = vcombine.high %v1030_v59, %v1037_v60  ;;  %v1074_v7 = vcombine.low %v1046_v61, %v1053_v62  ;;  %v2353_v8 = vcombine.high %v1046_v61, %v1053_v62 }
 0x1be   : > { %v872_v9 = vcombine.low %v848_v2, %v864_v63  ;;  %v873_v10 = vcombine.high %v848_v2, %v864_v63  ;;  %v888_v11 = vcombine.low %v855_v4, %v871_v1  ;;  %v889_v12 = vcombine.high %v855_v4, %v871_v1 }
 0x1bf   : > { %v1065_v13 = vrot.slane %v1058_v5, %v3184_v37  ;;  %v1073_v14 = vrot.slane %v2352_v6, %v3184_v37  ;;  %v1081_v15 = vrot.slane %v1074_v7, %v3184_v37  ;;  %v1089_v16 = vrot.slane %v2353_v8, %v3184_v37  ;;  %v1280_v6 = vld [vmem:[#allocation2] sm:$0xff] }
 0x1c0   : > { %v880_v17 = vrot.slane %v872_v9, %v3186_v44  ;;  %v887_v18 = vrot.slane %v873_v10, %v3186_v44  ;;  %v896_v19 = vrot.slane %v888_v11, %v3186_v44  ;;  %v903_v20 = vrot.slane %v889_v12, %v3186_v44 }
 0x1c1   : > { %v1090_v21 = vcombine.low %v1065_v13, %v1073_v14  ;;  %v1106_v22 = vcombine.low %v1081_v15, %v1089_v16  ;;  %v1091_v24 = vcombine.high %v1065_v13, %v1073_v14  ;;  %v1107_v25 = vcombine.high %v1081_v15, %v1089_v16 }
 0x1c2   : > { %v908_v26 = vcombine.low %v880_v17, %v887_v18  ;;  %v2350_v27 = vcombine.high %v880_v17, %v887_v18  ;;  %v924_v28 = vcombine.low %v896_v19, %v903_v20  ;;  %v2351_v29 = vcombine.high %v896_v19, %v903_v20 }
 0x1c3   : > { %v1098_v30 = vrot.slane %v1090_v21, %v3186_v44  ;;  %v1114_v31 = vrot.slane %v1106_v22, %v3186_v44  ;;  %v1105_v39 = vrot.slane %v1091_v24, %v3186_v44  ;;  %v1121_v40 = vrot.slane %v1107_v25, %v3186_v44 }
 0x1c4   : > { %v915_v32 = vrot.slane %v908_v26, %v3184_v37  ;;  %v923_v33 = vrot.slane %v2350_v27, %v3184_v37  ;;  %v931_v34 = vrot.slane %v924_v28, %v3184_v37  ;;  %v939_v35 = vrot.slane %v2351_v29, %v3184_v37 }
 0x1c5   : > { %v1122_v36 = vcombine.low %v1098_v30, %v1114_v31  ;;  %v1123_v38 = vcombine.high %v1098_v30, %v1114_v31  ;;  %v1124_v50 = vcombine.low %v1105_v39, %v1121_v40  ;;  %v1125_v51 = vcombine.high %v1105_v39, %v1121_v40 }
 0x1c6   : > { %v940_v41 = vcombine.low %v915_v32, %v923_v33  ;;  %v956_v42 = vcombine.low %v931_v34, %v939_v35  ;;  %v941_v52 = vcombine.high %v915_v32, %v923_v33  ;;  %v957_v53 = vcombine.high %v931_v34, %v939_v35  ;;  %v1132_v32 = vpop.permute.xlu0 %1131 }
 0x1c7   : > { %v1126_v43 = vpack.c.bf16 %v1122_v36, %v1122_v36  ;;  %v1127_v45 = vpack.c.bf16 %v1123_v38, %v1123_v38  ;;  %v1128_v56 = vpack.c.bf16 %v1124_v50, %v1124_v50  ;;  %v1129_v57 = vpack.c.bf16 %v1125_v51, %v1125_v51 }
 0x1c8   : > { %v948_v46 = vrot.slane %v940_v41, %v3186_v44  ;;  %v964_v47 = vrot.slane %v956_v42, %v3186_v44  ;;  %v955_v60 = vrot.slane %v941_v52, %v3186_v44  ;;  %v971_v61 = vrot.slane %v957_v53, %v3186_v44 }
 0x1c9   : > { %v1286_v48 = vsel %vm1281_vm2, %v1126_v43, 0  ;;  %v1332_v49 = vsel %vm1281_vm2, %v1127_v45, 0  ;;  %v1378_v62 = vsel %vm1281_vm2, %v1128_v56, 0  ;;  %v1424_v63 = vsel %vm1281_vm2, %v1129_v57, 0 }
 0x1ca   : > { %2456 = vmatpush3.bf16.xpose.msra.mxu1 %v1286_v48  ;;  %2462 = vmatpush3.bf16.xpose.msra.mxu0 %v1332_v49  ;;  %v972_v54 = vcombine.low %v948_v46, %v964_v47  ;;  %v973_v55 = vcombine.high %v948_v46, %v964_v47  ;;  %v974_v1 = vcombine.low %v955_v60, %v971_v61 }
 0x1cb   : > { %2467 = vmatprep.subr.bf16.mxu1 %v2900_v0  ;;  %2473 = vmatprep.subr.bf16.mxu0 %v2900_v0  ;;  %v975_v2 = vcombine.high %v955_v60, %v971_v61 }
 0x1cc   : > { %v976_v58 = vpack.c.bf16 %v972_v54, %v972_v54  ;;  %v977_v59 = vpack.c.bf16 %v973_v55, %v973_v55  ;;  %v978_v4 = vpack.c.bf16 %v974_v1, %v974_v1 }
 0x1cd   : > { %v979_v5 = vpack.c.bf16 %v975_v2, %v975_v2 }
 0x1d1   : > { %2458 = vmatmul.mubr.msk.bf16.vlgmr.msra.gmra.mxu1 %vm1281_vm2, %v976_v58  ;;  %2464 = vmatmul.mubr.msk.bf16.vlgmr.msra.gmra.mxu0 %vm1281_vm2, %v977_v59 }
 0x1d2   : > { %2468 = vmatpush3.bf16.xpose.msra.mxu1 %v1378_v62  ;;  %2474 = vmatpush3.bf16.xpose.msra.mxu0 %v1424_v63 }
 0x1d3   : > { %2469 = vmatprep.mubr.msk.bf16.mxu1 %vm2901_vm0, %v2900_v0  ;;  %2475 = vmatprep.mubr.msk.bf16.mxu0 %vm2901_vm0, %v2900_v0 }
 0x1d4   : > { %2479 = vmatprep.subr.bf16.mxu1 %v2900_v0  ;;  %2485 = vmatprep.subr.bf16.mxu0 %v2900_v0 }
 0x1d9   : > { %2470 = vmatmul.mubr.msk.bf16.vlgmr.msra.gmra.mxu1 %vm1281_vm2, %v978_v4  ;;  %2476 = vmatmul.mubr.msk.bf16.vlgmr.msra.gmra.mxu0 %vm1281_vm2, %v979_v5 }
 0x1da   : > { %2481 = vmatprep.mubr.msk.bf16.mxu1 %vm2901_vm0, %v2900_v0  ;;  %2487 = vmatprep.mubr.msk.bf16.mxu0 %vm2901_vm0, %v2900_v0 }
 0x291   : > { %v1322_v7 = vpop.f32.mrf.mxu1  ;;  %v1368_v8 = vpop.f32.mrf.mxu0 }
 0x292   : > { %v1323_v9 = vadd.f32 %v1322_v7, %v1280_v6  ;;  %v1369_v10 = vadd.f32 %v1368_v8, %v1280_v6 }
 0x293   : > { %v2459_v11 = vpop.f32.mrf.mxu1  ;;  %v2465_v12 = vpop.f32.mrf.mxu0 }
 0x294   : > { %v1466_v13 = vsel %vm1281_vm2, %v1323_v9, -inf  ;;  %v1469_v14 = vsel %vm1281_vm2, %v1369_v10, -inf }
 0x295   : > { %v1325_v15 = vpop.f32.mrf.mxu1  ;;  %1467 = vmax.xlane.f32.xlu0 %v1466_v13  ;;  %1470 = vmax.xlane.f32.xlu1 %v1469_v14  ;;  %v1371_v16 = vpop.f32.mrf.mxu0 }
 0x297   : > { %v2460_v17 = vpop.f32.mrf.mxu1  ;;  %v2466_v18 = vpop.f32.mrf.mxu0 }
 0x299   : > { %v1414_v19 = vpop.f32.mrf.mxu1  ;;  %v1460_v20 = vpop.f32.mrf.mxu0 }
 0x29a   : > { %v3246_v28 = vadd.f32 %v1414_v19, %v1280_v6  ;;  %v3248_v29 = vadd.f32 %v1460_v20, %v1280_v6 }
 0x29b   : > { %v2471_v21 = vpop.f32.mrf.mxu1  ;;  %v2477_v22 = vpop.f32.mrf.mxu0 }
 0x29c   : > { %v1472_v30 = vsel %vm1281_vm2, %v3246_v28, -inf  ;;  %v1475_v31 = vsel %vm1281_vm2, %v3248_v29, -inf }
 0x29d   : > { %v1417_v24 = vpop.f32.mrf.mxu1  ;;  %v1463_v25 = vpop.f32.mrf.mxu0 }
 0x29f   : > { %v2472_v26 = vpop.f32.mrf.mxu1  ;;  %v2478_v27 = vpop.f32.mrf.mxu0 }
 0x2a6   : > { %1134 = vrot.lane.b32.xlu1 %v3181_v23, %s2904_s30  ;;  %s627_s30 = sand.u32 1, %s2885_s28  }
 0x2a7   : > { %s2336_s3 = sshll.u32 %s627_s30, 3  ;;  %s2200_s20 = scalar_lea.sflag [#allocation4], %s627_s30 }
 0x2ab   : > { %1137 = vrot.lane.b32.xlu0 %v3181_v23, %s2902_s27 }
 0x2ca   : > { %1473 = vmax.xlane.f32.xlu1 %v1472_v30  ;;  %1476 = vmax.xlane.f32.xlu0 %v1475_v31 }
 0x31e   : > { %v3254_v33 = vpop.xlane.xlu0 %1467  ;;  %v3256_v34 = vpop.xlane.xlu1 %1470 }
 0x31f   : > { %v1490_v35 = vsub.f32 %v1323_v9, %v3254_v33  ;;  %v1491_v36 = vsub.f32 %v1369_v10, %v3256_v34 }
 0x321   : > { %v1494_v38 = vmul.f32 1.442695, %v1490_v35  ;;  %v1496_v39 = vmul.f32 1.442695, %v1491_v36 }
 0x322   : > { %v1138_v40 = vpop.permute.xlu0 %1137  ;;  %v1135_v41 = vpop.permute.xlu1 %1134 }
 0x323   : > { %v1156_v42 = vcombine.low %v1132_v32, %v1138_v40  ;;  %v1157_v43 = vcombine.high %v1132_v32, %v1138_v40  ;;  %v1140_v45 = vcombine.low %v3181_v23, %v1135_v41  ;;  %2657 = vpow2.f32 %v1494_v38 }
 0x324   : > { %v1141_v46 = vcombine.high %v3181_v23, %v1135_v41  ;;  %2659 = vpow2.f32 %v1496_v39 }
 0x325   : > { %v1164_v47 = vrot.slane %v1156_v42, %v3184_v37  ;;  %v1171_v48 = vrot.slane %v1157_v43, %v3184_v37  ;;  %v1148_v49 = vrot.slane %v1140_v45, %v3184_v37 }
 0x326   : > { %v1155_v50 = vrot.slane %v1141_v46, %v3184_v37 }
 0x327   : > { %v1172_v51 = vcombine.low %v1148_v49, %v1164_v47  ;;  %v1173_v52 = vcombine.high %v1148_v49, %v1164_v47 }
 0x328   : > { %v1188_v53 = vcombine.low %v1155_v50, %v1171_v48  ;;  %v1189_v54 = vcombine.high %v1155_v50, %v1171_v48 }
 0x329   : > { %v1180_v55 = vrot.slane %v1172_v51, %v3186_v44  ;;  %v1187_v56 = vrot.slane %v1173_v52, %v3186_v44  ;;  %v1478_v51 = vsub.f32 -inf, %v3254_v33 }
 0x32a   : > { %v1196_v57 = vrot.slane %v1188_v53, %v3186_v44  ;;  %v1203_v23 = vrot.slane %v1189_v54, %v3186_v44 }
 0x32b   : > { %v1208_v58 = vcombine.low %v1180_v55, %v1187_v56  ;;  %v2354_v59 = vcombine.high %v1180_v55, %v1187_v56  ;;  %v1479_v55 = vsub.f32 -inf, %v3256_v34 }
 0x32c   : > { %v1224_v60 = vcombine.low %v1196_v57, %v1203_v23  ;;  %v2355_v61 = vcombine.high %v1196_v57, %v1203_v23 }
 0x32d   : > { %v1215_v62 = vrot.slane %v1208_v58, %v3184_v37  ;;  %v1223_v63 = vrot.slane %v2354_v59, %v3184_v37  ;;  %v1482_v58 = vmul.f32 1.442695, %v1478_v51 }
 0x32e   : > { %v1231_v1 = vrot.slane %v1224_v60, %v3184_v37  ;;  %v1239_v2 = vrot.slane %v2355_v61, %v3184_v37  ;;  %v1484_v60 = vmul.f32 1.442695, %v1479_v55 }
 0x32f   : > { %v1240_v4 = vcombine.low %v1215_v62, %v1223_v63  ;;  %v1241_v5 = vcombine.high %v1215_v62, %v1223_v63 }
 0x330   : > { %v1256_v6 = vcombine.low %v1231_v1, %v1239_v2  ;;  %v1257_v7 = vcombine.high %v1231_v1, %v1239_v2  ;;  %v2658_v8 = vpop.eup %2657 }
 0x331   : > { %v1248_v9 = vrot.slane %v1240_v4, %v3186_v44  ;;  %v1255_v10 = vrot.slane %v1241_v5, %v3186_v44  ;;  %v1506_v11 = vsel %vm1281_vm2, %v2658_v8, 0.0  ;;  %v2660_v14 = vpop.eup %2659  ;;  %v1522_v27 = vpack.c.bf16 %v2658_v8, %v2658_v8 }
 0x332   : > { %v1264_v12 = vrot.slane %v1256_v6, %v3186_v44  ;;  %v1271_v13 = vrot.slane %v1257_v7, %v3186_v44  ;;  %1507 = vadd.xlane.f32.xlu0 %v1506_v11  ;;  %v1509_v15 = vsel %vm1281_vm2, %v2660_v14, 0.0  ;;  %v1523_v30 = vpack.c.bf16 %v2660_v14, %v2660_v14 }
 0x333   : > { %1510 = vadd.xlane.f32.xlu1 %v1509_v15 }
 0x334   : > { %v1272_v16 = vcombine.low %v1248_v9, %v1264_v12  ;;  %v1273_v17 = vcombine.high %v1248_v9, %v1264_v12  ;;  %v1274_v18 = vcombine.low %v1255_v10, %v1271_v13  ;;  %v1275_v19 = vcombine.high %v1255_v10, %v1271_v13 }
 0x336   : > { %v1276_v20 = vpack.c.bf16 %v1272_v16, %v1272_v16  ;;  %v1277_v21 = vpack.c.bf16 %v1273_v17, %v1273_v17  ;;  %v1278_v25 = vpack.c.bf16 %v1274_v18, %v1274_v18  ;;  %v1279_v26 = vpack.c.bf16 %v1275_v19, %v1275_v19 }
 0x338   : > { %v1531_v22 = vsel %vm1529_vm3, %v1276_v20, 0  ;;  %v1577_v24 = vsel %vm1529_vm3, %v1277_v21, 0  ;;  %v1623_v31 = vsel %vm1529_vm3, %v1278_v25, 0  ;;  %v1669_v32 = vsel %vm1529_vm3, %v1279_v26, 0 }
 0x339   : > { %2480 = vmatpush3.bf16.msra.mxu1 %v1531_v22  ;;  %2486 = vmatpush3.bf16.msra.mxu0 %v1577_v24 }
 0x33a   : > { %2491 = vmatprep.subr.bf16.mxu1 %v2900_v0  ;;  %2497 = vmatprep.subr.bf16.mxu0 %v2900_v0 }
 0x33c   : > { %2482 = vmatmul.mubr.msk.bf16.vlgmr.msra.gmra.mxu1 %vm1281_vm2, %v1522_v27  ;;  %2488 = vmatmul.mubr.msk.bf16.vlgmr.msra.gmra.mxu0 %vm1281_vm2, %v1523_v30 }
 0x33d   : > { %2492 = vmatpush3.bf16.msra.mxu1 %v1623_v31  ;;  %2498 = vmatpush3.bf16.msra.mxu0 %v1669_v32 }
 0x33e   : > { %2493 = vmatprep.mubr.msk.bf16.mxu1 %vm2901_vm0, %v2900_v0  ;;  %2499 = vmatprep.mubr.msk.bf16.mxu0 %vm2901_vm0, %v2900_v0 }
 0x33f   : > { %2503 = vmatprep.subr.bf16.mxu1 %v2900_v0  ;;  %2511 = vmatprep.subr.bf16.mxu0 %v2900_v0 }
 0x353   : > { %v1474_v35 = vpop.xlane.xlu1 %1473  ;;  %v1477_v36 = vpop.xlane.xlu0 %1476 }
 0x354   : > { %v1492_v38 = vsub.f32 %v3246_v28, %v1474_v35  ;;  %v1493_v39 = vsub.f32 %v3248_v29, %v1477_v36  ;;  %v1480_v52 = vsub.f32 -inf, %v1474_v35  ;;  %v1481_v56 = vsub.f32 -inf, %v1477_v36 }
 0x356   : > { %v1498_v40 = vmul.f32 1.442695, %v1492_v38  ;;  %v1500_v41 = vmul.f32 1.442695, %v1493_v39  ;;  %v1486_v59 = vmul.f32 1.442695, %v1480_v52 }
 0x357   : > { %v1488_v61 = vmul.f32 1.442695, %v1481_v56  ;;  %v2646_v56 = vld [vmem:[%s3437_s8] sm:$0xff]  }
 0x358   : > { %2661 = vpow2.f32 %v1498_v40 }
 0x359   : > { %2663 = vpow2.f32 %v1500_v41 }
 0x35a   : > { %2665 = vpow2.f32 %v1482_v58 }
 0x35b   : > { %2667 = vpow2.f32 %v1486_v59 }
 0x35c   : > { %2669 = vpow2.f32 %v1484_v60 }
 0x35d   : > { %2671 = vpow2.f32 %v1488_v61 }
 0x365   : > { %v2662_v42 = vpop.eup %2661 }
 0x366   : > { %v1512_v43 = vsel %vm1281_vm2, %v2662_v42, 0.0  ;;  %v1524_v45 = vpack.c.bf16 %v2662_v42, %v2662_v42  ;;  %v2664_v46 = vpop.eup %2663 }
 0x367   : > { %1513 = vadd.xlane.f32.xlu0 %v1512_v43  ;;  %v1515_v47 = vsel %vm1281_vm2, %v2664_v46, 0.0  ;;  %v1525_v48 = vpack.c.bf16 %v2664_v46, %v2664_v46  ;;  %v2666_v63 = vpop.eup %2665 }
 0x368   : > { %2494 = vmatmul.mubr.msk.bf16.vlgmr.msra.gmra.mxu1 %vm1281_vm2, %v1524_v45  ;;  %1516 = vadd.xlane.f32.xlu1 %v1515_v47  ;;  %v2668_v1 = vpop.eup %2667  ;;  %v1502_v5 = vmul.f32 0.0, %v2666_v63 }
 0x369   : > { %2507 = vmatprep.mubr.msk.bf16.mxu1 %vm2901_vm0, %v2900_v0  ;;  %2500 = vmatmul.mubr.msk.bf16.vlgmr.msra.gmra.mxu0 %vm1281_vm2, %v1525_v48  ;;  %v2670_v2 = vpop.eup %2669  ;;  %v1504_v34 = vmul.f32 0.0, %v2668_v1 }
 0x36a   : > { %2515 = vmatprep.mubr.msk.bf16.mxu0 %vm2901_vm0, %v2900_v0  ;;  %v2672_v4 = vpop.eup %2671  ;;  %v1503_v7 = vmul.f32 0.0, %v2670_v2 }
 0x36b   : > { %v1505_v10 = vmul.f32 0.0, %v2672_v4 }
 0x3bb   : > { %v1508_v62 = vpop.xlane.xlu0 %1507 }
 0x3bc   : > { %v1511_v33 = vpop.xlane.xlu1 %1510  ;;  %v1518_v8 = vadd.f32 %v1508_v62, %v1502_v5 }
 0x3bd   : > { %v1519_v12 = vadd.f32 %v1511_v33, %v1503_v7 }
 0x3be   : > { %2673 = vrcp.f32 %v1518_v8 }
 0x3cb   : > { %v2674_v16 = vpop.eup %2673 }
 0x3f0   : > { %v1514_v6 = vpop.xlane.xlu0 %1513 }
 0x3f1   : > { %v1517_v9 = vpop.xlane.xlu1 %1516  ;;  %v1520_v11 = vadd.f32 %v1514_v6, %v1504_v34 }
 0x3f2   : > { %v1521_v13 = vadd.f32 %v1517_v9, %v1505_v10 }
 0x3f3   : > { %2675 = vrcp.f32 %v1520_v11 }
 0x3f4   : > { %2677 = vrcp.f32 %v1519_v12 }
 0x3f5   : > { %2679 = vrcp.f32 %v1521_v13 }
 0x3fc   : > { %v1567_v28 = vpop.f32.mrf.mxu1  ;;  %v1613_v29 = vpop.f32.mrf.mxu0 }
 0x3fd   : > { %v1711_v14 = vadd.f32 %v1567_v28, %v1502_v5  ;;  %v1712_v17 = vadd.f32 %v1613_v29, %v1503_v7  ;;  %v2645_v28 = vld [vmem:[%s3437_s8 + $0x8] sm:$0xff]  }
 0x3fe   : > { %v2483_v49 = vpop.f32.mrf.mxu1  ;;  %v2489_v50 = vpop.f32.mrf.mxu0  ;;  %2504 = vmatpush3.bf16.msra.mxu1 %v2645_v28  ;;  %v2649_v28 = vld [vmem:[%s3443_s14 + $0x38] sm:$0xff]  }
 0x3ff   : > { %v1719_v24 = vmul.f32 %v2674_v16, %v1711_v14  ;;  %2505 = vmatprep.subr.bf16.mxu1 %v2900_v0 }
 0x400   : > { %v1570_v53 = vpop.f32.mrf.mxu1  ;;  %v1616_v54 = vpop.f32.mrf.mxu0 }
 0x401   : > { %v2676_v19 = vpop.eup %2675 }
 0x402   : > { %v2484_v57 = vpop.f32.mrf.mxu1  ;;  %v2490_v23 = vpop.f32.mrf.mxu0  ;;  %2506 = vmatpush3.bf16.msra.mxu1 %v2646_v56 }
 0x403   : > { %v2678_v22 = vpop.eup %2677  ;;  %2519 = vmatprep.subr.bf16.mxu1 %v2900_v0 }
 0x404   : > { %v2680_v27 = vpop.eup %2679  ;;  %v1720_v32 = vmul.f32 %v2678_v22, %v1712_v17  ;;  %v2366_v17 = vld [vmem:[#allocation10] ss:$0 sm:$0xff] }
 0x428   : > { %v1659_v15 = vpop.f32.mrf.mxu1 }
 0x429   : > { %v1713_v18 = vadd.f32 %v1659_v15, %v1504_v34  ;;  %v1705_v20 = vpop.f32.mrf.mxu0 }
 0x42a   : > { %v2495_v21 = vpop.f32.mrf.mxu1  ;;  %v1714_v26 = vadd.f32 %v1705_v20, %v1505_v10 }
 0x42b   : > { %v1721_v25 = vmul.f32 %v2676_v19, %v1713_v18  ;;  %v2501_v30 = vpop.f32.mrf.mxu0 }
 0x42c   : > { %v1662_v31 = vpop.f32.mrf.mxu1  ;;  %v1722_v38 = vmul.f32 %v2680_v27, %v1714_v26  ;;  %v2647_v27 = vld [vmem:[%s3441_s12 + $0x8] sm:$0xff]   ;;  %v2648_v30 = vld [vmem:[%s3441_s12] sm:$0xff]  }
 0x42d   : > { %v1723_v35 = vcombine.low %v1719_v24, %v1721_v25  ;;  %v1724_v36 = vcombine.high %v1719_v24, %v1721_v25  ;;  %v1708_v39 = vpop.f32.mrf.mxu0  ;;  %2512 = vmatpush3.bf16.msra.mxu0 %v2647_v27 }
 0x42e   : > { %v2496_v40 = vpop.f32.mrf.mxu1  ;;  %v1739_v43 = vcombine.low %v1720_v32, %v1722_v38  ;;  %v1740_v45 = vcombine.high %v1720_v32, %v1722_v38  ;;  %2513 = vmatprep.subr.bf16.mxu0 %v2900_v0 }
 0x42f   : > { %v1731_v41 = vrot.slane %v1723_v35, %v3184_v37  ;;  %v1738_v42 = vrot.slane %v1724_v36, %v3184_v37  ;;  %v2502_v46 = vpop.f32.mrf.mxu0 }
 0x430   : > { %v1747_v47 = vrot.slane %v1739_v43, %v3184_v37  ;;  %v1754_v48 = vrot.slane %v1740_v45, %v3184_v37  ;;  %v2371_v45 = vld [vmem:[%s3440_s11] ss:$0 sm:$0xff] }
 0x431   : > { %2514 = vmatpush3.bf16.msra.mxu0 %v2648_v30 }
 0x432   : > { %v1755_v29 = vcombine.low %v1731_v41, %v1747_v47  ;;  %v1756_v49 = vcombine.high %v1731_v41, %v1747_v47  ;;  %v1771_v50 = vcombine.low %v1738_v42, %v1754_v48  ;;  %v1772_v51 = vcombine.high %v1738_v42, %v1754_v48  ;;  %v2370_v41 = vld [vmem:[%s3439_s10] ss:$0 sm:$0xff] }
 0x434   : > { %v1763_v52 = vrot.slane %v1755_v29, %v3186_v44  ;;  %v1770_v53 = vrot.slane %v1756_v49, %v3186_v44  ;;  %v1779_v54 = vrot.slane %v1771_v50, %v3186_v44  ;;  %v1786_v55 = vrot.slane %v1772_v51, %v3186_v44  ;;  %v2650_v29 = vld [vmem:[%s3443_s14 + $0x30] sm:$0xff]   ;;  %v2651_v49 = vld [vmem:[%s3443_s14 + $0x28] sm:$0xff]   ;;  %v2652_v50 = vld [vmem:[%s3443_s14 + $0x20] sm:$0xff]  }
 0x435   : > { %v2653_v51 = vld [vmem:[%s3443_s14 + $0x18] sm:$0xff]  }
 0x436   : > { %v1791_v57 = vcombine.low %v1763_v52, %v1770_v53  ;;  %v2364_v23 = vcombine.high %v1763_v52, %v1770_v53  ;;  %v1807_v58 = vcombine.low %v1779_v54, %v1786_v55  ;;  %v2365_v59 = vcombine.high %v1779_v54, %v1786_v55  ;;  %v2654_v52 = vld [vmem:[%s3443_s14 + $0x10] sm:$0xff]   ;;  %v2655_v53 = vld [vmem:[%s3443_s14 + $0x8] sm:$0xff]   ;;  %v2656_v54 = vld [vmem:[%s3443_s14] sm:$0xff]  }
 0x437   : > { %v2372_v55 = vld [vmem:[%s3442_s13] ss:$0 sm:$0xff] }
 0x438   : > { %v1798_v60 = vrot.slane %v1791_v57, %v3184_v37  ;;  %v1806_v61 = vrot.slane %v2364_v23, %v3184_v37  ;;  %v1814_v62 = vrot.slane %v1807_v58, %v3184_v37  ;;  %v1822_v63 = vrot.slane %v2365_v59, %v3184_v37 }
 0x43a   : > { %v1824_v1 = vcombine.high %v1798_v60, %v1806_v61  ;;  %v1840_v33 = vcombine.high %v1814_v62, %v1822_v63  ;;  %v1823_v2 = vcombine.low %v1798_v60, %v1806_v61  ;;  %v1839_v4 = vcombine.low %v1814_v62, %v1822_v63 }
 0x43c   : > { %v1838_v5 = vrot.slane %v1824_v1, %v3186_v44  ;;  %v1854_v6 = vrot.slane %v1840_v33, %v3186_v44  ;;  %v1831_v34 = vrot.slane %v1823_v2, %v3186_v44  ;;  %v1847_v7 = vrot.slane %v1839_v4, %v3186_v44 }
 0x43e   : > { %v1857_v8 = vcombine.low %v1838_v5, %v1854_v6  ;;  %v1856_v9 = vcombine.high %v1831_v34, %v1847_v7  ;;  %v1858_v10 = vcombine.high %v1838_v5, %v1854_v6  ;;  %v1855_v11 = vcombine.low %v1831_v34, %v1847_v7  ;;  %v2376_v6 = vld [vmem:[%s3444_s15] ss:$0 sm:$0xff] }
 0x440   : > { %1864 = vrot.lane.b32.xlu1 %v1857_v8, %s2907_s21  ;;  %1860 = vrot.lane.b32.xlu0 %v1856_v9, %s2908_s22  ;;  %s2388_s22 = sshll.u32 %s3027_s0, 7  ;;  %s2825_s21 = sshll.u32 %s2910_s24, 4  ;;  %s2826_s21 = int_to_ptr.vmem [resolvable:$false] %s2825_s21 }
 0x441   : > { %s2211_s29 = scalar_lea.hbm %s3447_s18, %s2388_s22  ;;  %s2827_s0 = scalar_lea.vmem %s2826_s21, 256 }
 0x444   : > { %1868 = vrot.lane.b32.xlu1 %v1858_v10, %s2909_s25  ;;  %s629_s25 = scalar_lea.vmem [#allocation11], %s2336_s3 }
 0x445   : > { %s2213_s19 = sshll.u32 %s629_s25, 4  ;;  %s2214_s19 = int_to_ptr.vmem [resolvable:$true] %s2213_s19 }
 0x446   : > { %s2821_s1 = scalar_lea.vmem %s2214_s19, 128  ;;  %p2828_p10 = scmp.lt.s32.totalorder %s2214_s19, %s2826_s21 }
 0x447   : > { %p2822_p4 = scmp.ne.s32.totalorder %s2214_s19, %s2821_s1  ;;  %p2829_p8 = scmp.lt.s32.totalorder %s2827_s0, %s2821_s1 }
 0x449   : > { %p2823_p5 = pnand %p2822_p4, %p3485_p7  ;;  %p2830_p11 = por %p2829_p8, %p2828_p10 }
 0x44b   : > { %p2824_p6 = pneg %p2823_p5 }
 0x44d   : > { %p2831_p0 = pnand %p2830_p11, %p2824_p6 }
 0x4b2   : > { %v1865_v37 = vpop.permute.xlu1 %1864  ;;  %v1861_v12 = vpop.permute.xlu0 %1860 }
 0x4b3   : > { %v1871_v13 = vsel %vm1281_vm2, %v1855_v11, %v1861_v12 }
 0x4b4   : > { %v1873_v15 = vsel %vm1872_vm4, %v1871_v13, %v1865_v37 }
 0x4b6   : > { %v1869_v14 = vpop.permute.xlu1 %1868 }
 0x4b7   : > { %v1875_v16 = vsel %vm1874_vm5, %v1873_v15, %v1869_v14 }
 0x4b8   : > { %v1876_v44 = vpack.c.bf16 %v1875_v16, %v1875_v16 }
 0x4ba   : > { %2508 = vmatmul.mubr.msk.bf16.vlgmr.msra.gmra.mxu1 %vm660_vm1, %v1876_v44 }
 0x4bb   : > { %2535 = vmatprep.mubr.msk.bf16.mxu1 %vm2901_vm0, %v2900_v0  ;;  %2520 = vmatpush3.bf16.msra.mxu1 %v2649_v28 }
 0x4bc   : > { %2521 = vmatprep.subr.bf16.mxu1 %v2900_v0 }
 0x4bf   : > { %2522 = vmatpush3.bf16.msra.mxu1 %v2650_v29 }
 0x4c0   : > { %2523 = vmatprep.subr.bf16.mxu1 %v2900_v0 }
 0x4c3   : > { %2524 = vmatpush3.bf16.msra.mxu1 %v2651_v49 }
 0x4c4   : > { %2525 = vmatprep.subr.bf16.mxu1 %v2900_v0 }
 0x4c7   : > { %2526 = vmatpush3.bf16.msra.mxu1 %v2652_v50 }
 0x4c8   : > { %2527 = vmatprep.subr.bf16.mxu1 %v2900_v0 }
 0x4cb   : > { %2528 = vmatpush3.bf16.msra.mxu1 %v2653_v51 }
 0x4cc   : > { %2529 = vmatprep.subr.bf16.mxu1 %v2900_v0 }
 0x4cf   : > { %2530 = vmatpush3.bf16.msra.mxu1 %v2654_v52 }
 0x4d0   : > { %2531 = vmatprep.subr.bf16.mxu1 %v2900_v0 }
 0x4d3   : > { %2532 = vmatpush3.bf16.msra.mxu1 %v2655_v53 }
 0x4d4   : > { %2533 = vmatprep.subr.bf16.mxu1 %v2900_v0 }
 0x4d7   : > { %2534 = vmatpush3.bf16.msra.mxu1 %v2656_v54 }
 0x57a   : > { %v1937_v18 = vpop.f32.mrf.mxu1 }
 0x57b   : > { %v1938_v19 = vadd.f32 %v2366_v17, %v1937_v18 }
 0x57c   : > { %v2509_v20 = vpop.f32.mrf.mxu1 }
 0x57d   : > { %v1943_v21 = vadd.f32 %v1938_v19, %v3146_v3  ;;  %v2385_v20 = vld [vmem:[%s3445_s16] ss:$0 sm:$0xff] }
 0x57e   : > { %v1940_v22 = vpop.f32.mrf.mxu1 }
 0x57f   : > { %v1946_v24 = vmul.f32 %v1943_v21, %v1943_v21  ;;  %v1968_v42 = vmul.f32 %v2370_v41, %v1943_v21 }
 0x580   : > { %v2510_v25 = vpop.f32.mrf.mxu1 }
 0x581   : > { %v1947_v26 = vsel %vm660_vm1, %v1946_v24, 0.0  ;;  %v2386_v24 = vld [vmem:[%s3446_s17] ss:$0 sm:$0xff] }
 0x582   : > { %1948 = vadd.xlane.f32.xlu0 %v1947_v26 }
 0x60b   : > { %v1949_v31 = vpop.xlane.xlu0 %1948 }
 0x60c   : > { %v1951_v3 = vmul.f32 0.03125, %v1949_v31 }
 0x60e   : > { %2681 = vrsqrt.f32 %v1951_v3  ;;  %vm1954_vm6 = vcmp.eq.f32.partialorder %v1951_v3, inf  ;;  %v1957_v36 = vand.u32 2147483648, %v1951_v3  ;;  %vm1956_vm7 = vcmp.eq.f32.partialorder %v1951_v3, 0.0 }
 0x61b   : > { %v2682_v32 = vpop.eup %2681 }
 0x61c   : > { %v1953_v35 = vmul.f32 %v2682_v32, %v1951_v3 }
 0x61e   : > { %v1955_v38 = vsel %vm1954_vm6, %v1951_v3, %v1953_v35 }
 0x61f   : > { %v1958_v39 = vsel %vm1956_vm7, %v1957_v36, %v1955_v38 }
 0x620   : > { %v1959_v40 = vadd.f32 1e-08, %v1958_v39 }
 0x622   : > { %2683 = vrcp.f32 %v1959_v40 }
 0x62f   : > { %v2684_v43 = vpop.eup %2683 }
 0x630   : > { %v1969_v46 = vmul.f32 %v2684_v43, %v1968_v42 }
 0x632   : > { %v1976_v47 = vadd.f32 %v2371_v45, %v1969_v46 }
 0x634   : > { %v1977_v48 = vpack.c.bf16 %v1976_v47, %v1976_v47 }
 0x636   : > { %2516 = vmatmul.mubr.msk.bf16.vlgmr.msra.gmra.mxu0 %vm660_vm1, %v1977_v48 }
 0x6f6   : > { %v2038_v56 = vpop.f32.mrf.mxu0 }
 0x6f7   : > { %v2039_v57 = vadd.f32 %v2372_v55, %v2038_v56 }
 0x6f8   : > { %v2517_v23 = vpop.f32.mrf.mxu0 }
 0x6f9   : > { %v2045_v58 = vmul.f32 0.044715, %v2039_v57  ;;  %v2044_v2 = vmul.f32 0.5, %v2039_v57 }
 0x6fa   : > { %v2041_v59 = vpop.f32.mrf.mxu0 }
 0x6fb   : > { %v2046_v60 = vmul.f32 %v2045_v58, %v2039_v57 }
 0x6fc   : > { %v2518_v61 = vpop.f32.mrf.mxu0 }
 0x6fd   : > { %v2047_v62 = vmul.f32 %v2046_v60, %v2039_v57 }
 0x6ff   : > { %v2048_v63 = vadd.f32 %v2047_v62, %v2039_v57 }
 0x701   : > { %v2049_v1 = vmul.f32 0.7978846, %v2048_v63 }
 0x703   : > { %2685 = vtanh.f32 %v2049_v1 }
 0x710   : > { %v2686_v33 = vpop.eup %2685 }
 0x711   : > { %v2051_v4 = vadd.f32 1.0, %v2686_v33 }
 0x713   : > { %v2052_v0 = vmul.f32 %v2051_v4, %v2044_v2 }
 0x715   : > { %v2053_v5 = vpack.c.bf16 %v2052_v0, %v2052_v0 }
 0x717   : > { %2536 = vmatmul.mubr.bf16.vlgmr.msra.gmra.mxu1 %v2053_v5 }
 0x7d7   : > { %v2159_v34 = vpop.f32.mrf.mxu1 }
 0x7d8   : > { %v2160_v7 = vadd.f32 %v2376_v6, %v2159_v34 }
 0x7d9   : > { %v2537_v8 = vpop.f32.mrf.mxu1 }
 0x7da   : > { %v2165_v9 = vadd.f32 %v2160_v7, %v1976_v47 }
 0x7db   : > { %v2162_v10 = vpop.f32.mrf.mxu1 }
 0x7dc   : > { %v2168_v11 = vmul.f32 %v2165_v9, %v2165_v9  ;;  %v2189_v21 = vmul.f32 %v2385_v20, %v2165_v9 }
 0x7dd   : > { %v2538_v37 = vpop.f32.mrf.mxu1 }
 0x7de   : > { %v2169_v12 = vsel %vm660_vm1, %v2168_v11, 0.0 }
 0x7df   : > { %2170 = vadd.xlane.f32.xlu1 %v2169_v12 }
 0x868   : > { %v2171_v13 = vpop.xlane.xlu1 %2170 }
 0x869   : > { %v2172_v14 = vmul.f32 0.03125, %v2171_v13 }
 0x86b   : > { %2687 = vrsqrt.f32 %v2172_v14  ;;  %vm2175_vm8 = vcmp.eq.f32.partialorder %v2172_v14, inf  ;;  %v2178_v44 = vand.u32 2147483648, %v2172_v14  ;;  %vm2177_vm9 = vcmp.eq.f32.partialorder %v2172_v14, 0.0 }
 0x878   : > { %v2688_v15 = vpop.eup %2687 }
 0x879   : > { %v2174_v16 = vmul.f32 %v2688_v15, %v2172_v14 }
 0x87b   : > { %v2176_v17 = vsel %vm2175_vm8, %v2172_v14, %v2174_v16 }
 0x87c   : > { %v2179_v18 = vsel %vm2177_vm9, %v2178_v44, %v2176_v17 }
 0x87d   : > { %v2180_v19 = vadd.f32 1e-08, %v2179_v18 }
 0x87f   : > { %2689 = vrcp.f32 %v2180_v19 }
 0x88c   : > { %v2690_v22 = vpop.eup %2689 }
 0x88d   : > { %v2190_v25 = vmul.f32 %v2690_v22, %v2189_v21 }
 0x88f   : > { %v2197_v26 = vadd.f32 %v2386_v24, %v2190_v25 }
 0x891   : > { %2198 = vst.msk [vmem:[%s629_s25] sm:$0xff] %vm660_vm1, %v2197_v26 }
 0x892   : > { %2834 = shalt.err (!%p2831_p0)
}
 0x893   : > { %s2835_s3 = scalar_lea.hbm %s2211_s29, 128  ;;  %s2839_s25 = scalar_lea.hbm %s3447_s18, 256 }
 0x894   : > { %p2836_p13 = scmp.ne.s32.totalorder %s2211_s29, %s2835_s3  ;;  %p2840_p9 = scmp.lt.s32.totalorder %s2211_s29, %s3447_s18 }
 0x895   : > { %p2841_p12 = scmp.lt.s32.totalorder %s2839_s25, %s2835_s3 }
 0x896   : > { %p2837_p1 = pnand %p2836_p13, %p3485_p7 }
 0x897   : > { %p2842_p3 = por %p2841_p12, %p2840_p9 }
 0x898   : > { %p2838_p2 = pneg %p2837_p1 }
 0x89a   : > { %p2843_p4 = pnand %p2842_p3, %p2838_p2 }
 0x89c   : > { %2846 = shalt.err (!%p2843_p4)
}
 0x89d   : > { %2559 = dma.vmem_to_hbm [thread:$0]  (%p3485_p7), %s2214_s19, 128, %s2211_s29, %s2200_s20  }
 0x89e PF: > { %s3486_s1 = sld [smem:[#allocation18_spill]] }
 0x89f   : > { %s3487_s24 = sld [smem:[#allocation16_spill]] }
 0x8a0   : > { %s3488_s21 = sld [smem:[#allocation21_spill]] }
 0x8a4   : > { %p2591_p5 = scmp.ge.s32.totalorder %s3486_s1, 2 }
 0x8a5   : > { %s2225_s0 = sand.u32 1, %s3487_s24  }
 0x8a6   : > { %p3489_p6 = scmp.ne.s32.totalorder %s3488_s21, 0  ;;  %s2226_s30 = scalar_lea.sflag [#allocation4], %s2225_s0 }
 0x8a8   : > { %p2578_p10 = pnand %p2591_p5, %p3489_p6 }
 0x8aa   : > { %p2579_p8 = pneg %p2578_p10 }
 0x8ac   : > { %2876 = dma.done.wait (%p2579_p8), %s2226_s30, 128  }
 0x8ad   : > { %2878 = vsyncadd (%p2579_p8), %s2226_s30, 4294967168  ;;  %s3490_s30 = sld [smem:[#allocation19_spill]]  ;;  %s3493_s27 = smov %s2885_s28 }
 0x8ae   : > { %s3491_s3 = sld [smem:[#allocation17_spill]] }
 0x8af   : > { %s3492_s29 = sld [smem:[#allocation20_spill]] }
 0x8b3   : > { %p31_p11 = scmp.ge.s32.totalorder %s3490_s30, 4  }
 0x8b4   : > { %s3494_s28 = smov %s3491_s3 }
 0x8b5   :  { %33 = sbr.rel (!%p31_p11) target bundleno = 11 (0xb), region = 148 }
 0x8ba   :  { %2231 = vsyncpa [#allocation3], 1 }
 0x8bb   :  { %2233 = vsyncpa [#allocation3 + $0x1], 1 }
 0x8bc   :  { %2234 = vsyncpa [#allocation6], 1 }
 0x8bd   :  { %2235 = vsyncpa [#allocation9], 1 }
 0x8be   :  { %2236 = vsyncpa [#allocation4], 1 }
 0x8bf   :  { %2238 = vsyncpa [#allocation4 + $0x1], 1 }

// kernel: tpu_custom_call.1
= control target key start
LH: loop header
LB: loop body
LE: loop exit
PB: predicated region body
PF: predicated region fallthrough
CT: control target
= control target key end

     0   :  { %s3429_s0 = inlined_call_operand.vmem [shape: f32[2,8,32], index: 0, kind: input, shape index: {}]   ;;  %s3430_s1 = inlined_call_operand.hbm [shape: f32[8,8], index: 1, kind: input, shape index: {}]   ;;  %s3431_s2 = inlined_call_operand.vmem [shape: bf16[32,32], index: 2, kind: input, shape index: {}]   ;;  %s3432_s3 = inlined_call_operand.hbm [shape: f32[1,32], index: 3, kind: input, shape index: {}]   ;;  %s3433_s4 = inlined_call_operand.vmem [shape: bf16[32,32], index: 4, kind: input, shape index: {}]   ;;  %s3434_s5 = inlined_call_operand.hbm [shape: f32[1,32], index: 5, kind: input, shape index: {}]   ;;  %s3435_s6 = inlined_call_operand.vmem [shape: bf16[32,32], index: 6, kind: input, shape index: {}]   ;;  %s3436_s7 = inlined_call_operand.hbm [shape: f32[1,32], index: 7, kind: input, shape index: {}]   ;;  %s3437_s8 = inlined_call_operand.vmem [shape: bf16[32,32], index: 8, kind: input, shape index: {}]   ;;  %s3438_s9 = inlined_call_operand.hbm [shape: f32[1,32], index: 9, kind: input, shape index: {}]   ;;  %s3439_s10 = inlined_call_operand.vmem [shape: f32[1,32], index: 10, kind: input, shape index: {}]   ;;  %s3440_s11 = inlined_call_operand.vmem [shape: f32[1,32], index: 11, kind: input, shape index: {}]   ;;  %s3441_s12 = inlined_call_operand.vmem [shape: bf16[32,128], index: 12, kind: input, shape index: {}]   ;;  %s3442_s13 = inlined_call_operand.vmem [shape: f32[1,128], index: 13, kind: input, shape index: {}]   ;;  %s3443_s14 = inlined_call_operand.vmem [shape: bf16[128,32], index: 14, kind: input, shape index: {}]   ;;  %s3444_s15 = inlined_call_operand.vmem [shape: f32[1,32], index: 15, kind: input, shape index: {}]   ;;  %s3445_s16 = inlined_call_operand.vmem [shape: f32[1,32], index: 16, kind: input, shape index: {}]   ;;  %s3446_s17 = inlined_call_operand.vmem [shape: f32[1,32], index: 17, kind: input, shape index: {}]   ;;  %s3447_s18 = inlined_call_operand.hbm [shape: f32[2,8,32], index: 18, kind: output, shape index: {}]  }
   0x1   :  { %3458 = sst [smem:[#allocation22_spill]] %s3429_s0 }
   0x2   :  { %3459 = sst [smem:[#allocation23_spill]] %s3430_s1 }
   0x3   :  { %3460 = sst [smem:[#allocation24_spill]] %s3431_s2 }
   0x4   :  { %3461 = sst [smem:[#allocation25_spill]] %s3432_s3 }
   0x5   :  { %23 = vsyncpa [#allocation3], 0 }
   0x6   :  { %24 = vsyncpa [#allocation6], 0 }
   0x7   :  { %25 = vsyncpa [#allocation9], 0 }
   0x8   :  { %26 = vsyncpa [#allocation4], 0 }
   0x9   :  { %28 = vsyncpa [#allocation4 + $0x1], 0  ;;  %s3006_s27 = smov 0   ;;  %s3008_s28 = smov 0  }
   0xa   :  { %s3010_s29 = smov 0   ;;  %s3012_s30 = smov 0  }
   0xb LB: > { %3462 = sst [smem:[#allocation16_spill]] %s2881_s27  ;;  %s3027_s0 = sadd.s32 4294967295, %s2893_s30   ;;  %s2893_s30 = sphi %s3012_s30, %s3490_s30   ;;  %s2889_s29 = sphi %s3010_s29, %s3492_s29   ;;  %s2885_s28 = sphi %s3008_s28, %s3494_s28   ;;  %s2881_s27 = sphi %s3006_s27, %s3493_s27  }
   0xc   : > { %3463 = sst [smem:[#allocation17_spill]] %s2889_s29  ;;  %s2322_s19 = sadd.s32 4294967294, %s2893_s30  }
   0xd   : > { %3464 = sst [smem:[#allocation18_spill]] %s2893_s30  ;;  %s3031_s1 = sadd.s32 1, %s2893_s30  }
   0xe   : > { %3465 = sst [smem:[#allocation19_spill]] %s3031_s1  ;;  %s424_s20 = sadd.s32 1, %s2889_s29 }
   0xf   : > { %s421_s21 = ssub.s32 %s2893_s30, %s3031_s1  ;;  %p434_p0 = scmp.ne.s32.totalorder %s2889_s29, %s2885_s28 }
  0x10   : > { %p422_p1 = scmp.eq.s32.totalorder %s421_s21, 0  ;;  %p435_p2 = scmp.eq.s32.totalorder %s3027_s0, 1 }
  0x11   : > { %p440_p3 = scmp.ne.s32.totalorder %s2885_s28, %s2881_s27  ;;  %p441_p4 = scmp.eq.s32.totalorder %s2322_s19, 1 }
  0x12   : > { %s3042_s22 = scalar_select %p422_p1, %s2889_s29, %s424_s20  }
  0x13   : > { %p3044_p5 = por %p435_p2, %p434_p0  ;;  %p3048_p6 = por %p441_p4, %p440_p3 }
  0x14   : > { %3466 = sst [smem:[#allocation20_spill]] %s3042_s22  ;;  %p2323_p7 = scmp.ge.s32.totalorder %s2893_s30, 1 }
  0x15   : > { %s3467_s2 = scalar_select %p3044_p5, 1, 0 }
  0x16   : > { %s3468_s23 = scalar_select %p3048_p6, 1, 0 }
  0x17   : > { %p448_p8 = scmp.lt.s32.totalorder %s2893_s30, 3  ;;  %p3454_p9 = scmp.eq.s32.totalorder %s3027_s0, 0 }
  0x18   : > { %3469 = sst [smem:[#allocation21_spill]] %s3468_s23  ;;  %s2895_s25 = smov [#allocation5]  }
  0x19   : > { %p3055_p10 = pnand %p2323_p7, %p448_p8  ;;  %s475_s26 = sshll.u32 %s2895_s25, 4  ;;  %s476_s26 = int_to_ptr.vmem [resolvable:$true] %s475_s26 }
  0x1a   : > { %s2896_s19 = smov [#allocation8]   ;;  %s2897_s22 = smov [#allocation2]  }
  0x1b   : > { %s3470_s24 = scalar_select %p3055_p10, 1, 0 }
  0x1c   : > { %p2561_p11 = pneg %p3055_p10  ;;  %s503_s20 = sshll.u32 %s2896_s19, 4  ;;  %s504_s20 = int_to_ptr.vmem [resolvable:$true] %s503_s20 }
  0x1d   : > { %s461_s29 = sshll.u32 %s2897_s22, 4  ;;  %s2702_s25 = scalar_lea.vmem %s476_s26, 16  ;;  %s3067_s29 = int_to_ptr.vmem [resolvable:$true] %s461_s29 }
  0x1e   : > { %p3063_p12 = pnand %p3454_p9, %p2561_p11  ;;  %p2703_p0 = scmp.ne.s32.totalorder %s476_s26, %s2702_s25 }
  0x1f   : > { %s2709_s19 = scalar_lea.vmem %s476_s26, 32  ;;  %p2710_p3 = scmp.lt.s32.totalorder %s476_s26, %s476_s26 }
  0x20   : > { %p3071_p13 = pneg %p3063_p12  ;;  %p2711_p4 = scmp.lt.s32.totalorder %s2709_s19, %s2702_s25 }
  0x22   : > { %p2705_p1 = pnand %p2703_p0, %p3071_p13  ;;  %p2712_p7 = por %p2711_p4, %p2710_p3 }
  0x24   : > { %p2706_p2 = pneg %p2705_p1 }
  0x26   : > { %p2713_p8 = pnand %p2712_p7, %p2706_p2 }
  0x28   : > { %2716 = shalt.err (!%p2713_p8)
}
  0x29   : > { %s3473_s3 = sld [smem:[#allocation25_spill]]  ;;  %s2728_s27 = scalar_lea.vmem %s504_s20, 16 }
  0x2a   : > { %p2729_p11 = scmp.ne.s32.totalorder %s504_s20, %s2728_s27  ;;  %s2735_s30 = scalar_lea.vmem %s504_s20, 32 }
  0x2b   : > { %p2736_p0 = scmp.lt.s32.totalorder %s504_s20, %s504_s20  ;;  %p2737_p1 = scmp.lt.s32.totalorder %s2735_s30, %s2728_s27 }
  0x2c   : > { %p2731_p9 = pnand %p2729_p11, %p3071_p13 }
  0x2d   : > { %p2738_p5 = por %p2737_p1, %p2736_p0 }
  0x2e   : > { %p2732_p6 = pneg %p2731_p9 }
  0x2f   : > { %2567 = dma.hbm_to_vmem [thread:$0]  (!%p3063_p12), %s3473_s3, 16, %s476_s26, [#allocation6]  }
  0x30   : > { %p2739_p10 = pnand %p2738_p5, %p2732_p6 }
  0x32   : > { %2742 = shalt.err (!%p2739_p10)
}
  0x33   : > { %2573 = dma.hbm_to_vmem [thread:$0]  (!%p3063_p12), %s3436_s7, 16, %s504_s20, [#allocation9]  }
  0x34   : > { %s2754_s23 = scalar_lea.vmem %s3067_s29, 128  ;;  %p2762_p4 = scmp.lt.s32.totalorder %s3067_s29, %s3067_s29 }
  0x35   : > { %p2755_p2 = scmp.ne.s32.totalorder %s3067_s29, %s2754_s23  ;;  %p2763_p7 = scmp.lt.s32.totalorder %s2754_s23, %s2754_s23 }
  0x37   : > { %p2757_p9 = pnand %p2755_p2, %p3071_p13  ;;  %p2764_p5 = por %p2763_p7, %p2762_p4 }
  0x39   : > { %p2758_p3 = pneg %p2757_p9 }
  0x3b   : > { %p2765_p6 = pnand %p2764_p5, %p2758_p3 }
  0x3d   : > { %2768 = shalt.err (!%p2765_p6)
}
  0x3e   : > { %s3474_s26 = sld [smem:[#allocation23_spill]]  ;;  %s2898_s20 = smov [#allocation7]  }
  0x3f   : > { %s489_s22 = sshll.u32 %s2898_s20, 4  ;;  %s2899_s25 = smov [#allocation10]   ;;  %s490_s22 = int_to_ptr.vmem [resolvable:$true] %s489_s22 }
  0x40   : > { %s517_s19 = sshll.u32 %s2899_s25, 4  ;;  %s2780_s3 = scalar_lea.vmem %s490_s22, 16  ;;  %s518_s19 = int_to_ptr.vmem [resolvable:$true] %s517_s19 }
  0x41   : > { %p2781_p10 = scmp.ne.s32.totalorder %s490_s22, %s2780_s3  ;;  %s2787_s23 = scalar_lea.vmem %s490_s22, 32 }
  0x42   : > { %p2788_p0 = scmp.lt.s32.totalorder %s490_s22, %s490_s22  ;;  %p2789_p1 = scmp.lt.s32.totalorder %s2787_s23, %s2780_s3 }
  0x43   : > { %p2783_p8 = pnand %p2781_p10, %p3071_p13 }
  0x44   : > { %2564 = dma.hbm_to_vmem [thread:$0]  (!%p3063_p12), %s3474_s26, 128, %s3067_s29, [#allocation3]  }
  0x45   : > { %p2784_p11 = pneg %p2783_p8  ;;  %p2790_p2 = por %p2789_p1, %p2788_p0 }
  0x47   : > { %p2791_p9 = pnand %p2790_p2, %p2784_p11 }
  0x49   : > { %2794 = shalt.err (!%p2791_p9)
}
  0x4a   : > { %2570 = dma.hbm_to_vmem [thread:$0]  (!%p3063_p12), %s3434_s5, 16, %s490_s22, [#allocation6]  }
  0x4b   : > { %s2806_s30 = scalar_lea.vmem %s518_s19, 16  ;;  %s2813_s26 = scalar_lea.vmem %s518_s19, 32 }
  0x4c   : > { %p2807_p3 = scmp.ne.s32.totalorder %s518_s19, %s2806_s30  ;;  %p2814_p5 = scmp.lt.s32.totalorder %s518_s19, %s518_s19 }
  0x4d   : > { %p2815_p6 = scmp.lt.s32.totalorder %s2813_s26, %s2806_s30 }
  0x4e   : > { %p2809_p4 = pnand %p2807_p3, %p3071_p13 }
  0x4f   : > { %p2816_p10 = por %p2815_p6, %p2814_p5 }
  0x50   : > { %p2810_p7 = pneg %p2809_p4 }
  0x52   : > { %p2817_p8 = pnand %p2816_p10, %p2810_p7 }
  0x54   : > { %2820 = shalt.err (!%p2817_p8)
}
  0x55   : > { %2576 = dma.hbm_to_vmem [thread:$0]  (!%p3063_p12), %s3438_s9, 16, %s518_s19, [#allocation9]  }
  0x56   : > { %p3475_p11 = scmp.ne.s32.totalorder %s3470_s24, 0 }
  0x57   : > { %p3476_p0 = scmp.eq.s32.totalorder (!%p3475_p11), %s3027_s0, 0 }
  0x58   : > { %561 = sbr.rel (%p3475_p11) target bundleno = 2206 (0x89e), region = 92 }
  0x5d   : > { %2864 = dma.done.wait (%p3476_p0), [#allocation3], 128   ;;  %p3477_p13 = pmov %p3476_p0 }
  0x5e   : > { %p3478_p1 = pmov %p3476_p0 }
  0x5f   : > { %2866 = vsyncadd (%p3477_p13), [#allocation3], 4294967168 }
  0x60   : > { %2868 = dma.done.wait (%p3478_p1), [#allocation6], 32   ;;  %p3479_p2 = pmov %p3476_p0 }
  0x61   : > { %p3480_p9 = pmov %p3476_p0 }
  0x62   : > { %2870 = vsyncadd (%p3479_p2), [#allocation6], 4294967264 }
  0x63   : > { %2872 = dma.done.wait (%p3480_p9), [#allocation9], 32   ;;  %p3481_p12 = pmov %p3476_p0 }
  0x64   : > { %p630_p3 = scmp.lt.s32.totalorder %s3027_s0, 1  ;;  %v2900_v0 = vmov 0.0   ;;  %vm2901_vm0 = vmmov 0   ;;  %s3482_s25 = sld [smem:[#allocation22_spill]]  ;;  %vm660_vm1 = vcmask 261120   ;;  %v2641_v4 = vld [vmem:[%s3433_s4 + $0x8] sm:$0xff]   ;;  %v845_v29 = vlaneseq }
  0x65   : > { %2874 = vsyncadd (%p3481_p12), [#allocation9], 4294967264  ;;  %2431 = vmatprep.subr.bf16.mxu0 %v2900_v0  ;;  %2435 = vmatprep.mubr.msk.bf16.mxu0 %vm2901_vm0, %v2900_v0  ;;  %s3483_s29 = sld [smem:[#allocation24_spill]]  ;;  %v2642_v6 = vld [vmem:[%s3433_s4] sm:$0xff]   ;;  %v2643_v7 = vld [vmem:[%s3435_s6 + $0x8] sm:$0xff]   ;;  %s2902_s27 = smov 104  }
  0x66   : > { %s631_s1 = scalar_select %p630_p3, %s3027_s0, 1  ;;  %2455 = vmatprep.subr.bf16.mxu1 %v2900_v0  ;;  %2457 = vmatprep.mubr.msk.bf16.mxu1 %vm2901_vm0, %v2900_v0  ;;  %v2644_v8 = vld [vmem:[%s3435_s6] sm:$0xff]   ;;  %v2342_v13 = vld [vmem:[#allocation7] ss:$0 sm:$0xff]  ;;  %v2338_v16 = vld [vmem:[#allocation5] ss:$0 sm:$0xff] }
  0x67   : > { %s2904_s30 = smov 112   ;;  %v2346_v21 = vld [vmem:[#allocation8] ss:$0 sm:$0xff]  ;;  %v2905_v27 = vmov 1983009808   ;;  %v846_v33 = vshrl.u32 %v845_v29, 7 }
  0x68   : > { %s2337_s24 = sshll.u32 %s631_s1, 3  ;;  %v843_v28 = vunpack.c.l.s4 %v2905_v27  ;;  %v2906_v30 = vmov 1934713408   ;;  %vm1281_vm2 = vcmask 64512   ;;  %vm1529_vm3 = vcmask 1043456   ;;  %s2907_s21 = smov 16  }
  0x69   : > { %v875_v31 = vunpack.c.l.s4 %v2906_v30  ;;  %s2908_s22 = smov 8   ;;  %vm1872_vm4 = vcmask 130048   ;;  %vm1874_vm5 = vcmask 195584   ;;  %p3485_p7 = scmp.ne.s32.totalorder %s3467_s2, 0 }
  0x6a   : > { %s633_s19 = scalar_lea.vmem %s3482_s25, %s2337_s24  ;;  %v844_v32 = vunpack.c.0.s8 %v843_v28  ;;  %s2909_s25 = smov 24  }
  0x6b   : > { %s3484_s26 = smov %s3483_s29  ;;  %v2639_v1 = vld [vmem:[%s3483_s29 + $0x8] sm:$0xff]   ;;  %v3146_v3 = vld [vmem:[%s633_s19] sm:$0xff]  ;;  %s2903_s29 = smov 120   ;;  %v876_v36 = vunpack.c.0.s8 %v875_v31 }
  0x6c   : > { %v2640_v2 = vld [vmem:[%s3484_s26] sm:$0xff]   ;;  %2432 = vmatpush3.bf16.msra.mxu0 %v2639_v1  ;;  %v636_v5 = vpack.c.bf16 %v3146_v3, %v3146_v3  ;;  %v3184_v37 = vsub.s32 %v844_v32, %v846_v33  ;;  %s2910_s24 = smov [#allocation11]  }
  0x6d   : > { %2433 = vmatprep.subr.bf16.mxu0 %v2900_v0  ;;  %v3186_v44 = vsub.s32 %v876_v36, %v846_v33 }
  0x70   : > { %2434 = vmatpush3.bf16.msra.mxu0 %v2640_v2 }
  0x71   : > { %2439 = vmatprep.subr.bf16.mxu0 %v2900_v0 }
  0x73   : > { %2436 = vmatmul.mubr.msk.bf16.vlgmr.msra.gmra.mxu0 %vm660_vm1, %v636_v5 }
  0x74   : > { %2440 = vmatpush3.bf16.msra.mxu0 %v2641_v4  ;;  %2443 = vmatprep.mubr.msk.bf16.mxu0 %vm2901_vm0, %v2900_v0 }
  0x75   : > { %2441 = vmatprep.subr.bf16.mxu0 %v2900_v0 }
  0x78   : > { %2442 = vmatpush3.bf16.msra.mxu0 %v2642_v6 }
  0x79   : > { %2447 = vmatprep.subr.bf16.mxu0 %v2900_v0 }
  0x7b   : > { %2444 = vmatmul.mubr.msk.bf16.vlgmr.msra.gmra.mxu0 %vm660_vm1, %v636_v5 }
  0x7c   : > { %2451 = vmatprep.mubr.msk.bf16.mxu0 %vm2901_vm0, %v2900_v0  ;;  %2448 = vmatpush3.bf16.msra.mxu0 %v2643_v7 }
  0x7d   : > { %2449 = vmatprep.subr.bf16.mxu0 %v2900_v0 }
  0x80   : > { %2450 = vmatpush3.bf16.msra.mxu0 %v2644_v8 }
  0x81   : > { %2461 = vmatprep.subr.bf16.mxu0 %v2900_v0 }
  0x83   : > { %2452 = vmatmul.mubr.msk.bf16.vlgmr.msra.gmra.mxu0 %vm660_vm1, %v636_v5 }
  0x84   : > { %2463 = vmatprep.mubr.msk.bf16.mxu0 %vm2901_vm0, %v2900_v0 }
 0x133   : > { %v698_v9 = vpop.f32.mrf.mxu0 }
 0x134   : > { %v699_v19 = vadd.f32 %v2338_v16, %v698_v9 }
 0x135   : > { %v2437_v10 = vpop.f32.mrf.mxu0 }
 0x137   : > { %v701_v11 = vpop.f32.mrf.mxu0 }
 0x139   : > { %v2438_v12 = vpop.f32.mrf.mxu0 }
 0x13b   : > { %v761_v14 = vpop.f32.mrf.mxu0 }
 0x13c   : > { %v762_v15 = vadd.f32 %v2342_v13, %v761_v14 }
 0x13d   : > { %v2445_v17 = vpop.f32.mrf.mxu0 }
 0x13e   : > { %987 = vrot.lane.b32.xlu1 %v762_v15, %s2902_s27  ;;  %981 = vrot.lane.b32.xlu0 %v762_v15, %s2903_s29 }
 0x13f   : > { %v764_v18 = vpop.f32.mrf.mxu0 }
 0x141   : > { %v2446_v20 = vpop.f32.mrf.mxu0 }
 0x142   : > { %831 = vrot.lane.b32.xlu1 %v699_v19, %s2903_s29  ;;  %984 = vrot.lane.b32.xlu0 %v762_v15, %s2904_s30 }
 0x143   : > { %v824_v22 = vpop.f32.mrf.mxu0 }
 0x144   : > { %v3181_v23 = vadd.f32 %v2346_v21, %v824_v22 }
 0x145   : > { %v2453_v24 = vpop.f32.mrf.mxu0 }
 0x146   : > { %837 = vrot.lane.b32.xlu1 %v699_v19, %s2902_s27  ;;  %834 = vrot.lane.b32.xlu0 %v699_v19, %s2904_s30 }
 0x147   : > { %v827_v25 = vpop.f32.mrf.mxu0 }
 0x149   : > { %v2454_v26 = vpop.f32.mrf.mxu0 }
 0x14a   : > { %1131 = vrot.lane.b32.xlu0 %v3181_v23, %s2903_s29 }
 0x1b0   : > { %v988_v34 = vpop.permute.xlu1 %987  ;;  %v982_v35 = vpop.permute.xlu0 %981 }
 0x1b1   : > { %v1006_v38 = vcombine.low %v982_v35, %v988_v34  ;;  %v1007_v39 = vcombine.high %v982_v35, %v988_v34 }
 0x1b3   : > { %v1014_v45 = vrot.slane %v1006_v38, %v3184_v37  ;;  %v1021_v46 = vrot.slane %v1007_v39, %v3184_v37 }
 0x1b4   : > { %v832_v40 = vpop.permute.xlu1 %831  ;;  %v985_v41 = vpop.permute.xlu0 %984 }
 0x1b5   : > { %v990_v42 = vcombine.low %v762_v15, %v985_v41  ;;  %v991_v43 = vcombine.high %v762_v15, %v985_v41 }
 0x1b7   : > { %v998_v47 = vrot.slane %v990_v42, %v3184_v37  ;;  %v1005_v48 = vrot.slane %v991_v43, %v3184_v37 }
 0x1b8   : > { %v838_v49 = vpop.permute.xlu1 %837  ;;  %v835_v50 = vpop.permute.xlu0 %834 }
 0x1b9   : > { %v1022_v51 = vcombine.low %v998_v47, %v1014_v45  ;;  %v1023_v52 = vcombine.high %v998_v47, %v1014_v45  ;;  %v1038_v53 = vcombine.low %v1005_v48, %v1021_v46  ;;  %v1039_v54 = vcombine.high %v1005_v48, %v1021_v46 }
 0x1ba   : > { %v856_v55 = vcombine.low %v832_v40, %v838_v49  ;;  %v857_v56 = vcombine.high %v832_v40, %v838_v49  ;;  %v840_v57 = vcombine.low %v699_v19, %v835_v50  ;;  %v841_v58 = vcombine.high %v699_v19, %v835_v50 }
 0x1bb   : > { %v1030_v59 = vrot.slane %v1022_v51, %v3186_v44  ;;  %v1037_v60 = vrot.slane %v1023_v52, %v3186_v44  ;;  %v1046_v61 = vrot.slane %v1038_v53, %v3186_v44  ;;  %v1053_v62 = vrot.slane %v1039_v54, %v3186_v44 }
 0x1bc   : > { %v864_v63 = vrot.slane %v856_v55, %v3184_v37  ;;  %v871_v1 = vrot.slane %v857_v56, %v3184_v37  ;;  %v848_v2 = vrot.slane %v840_v57, %v3184_v37  ;;  %v855_v4 = vrot.slane %v841_v58, %v3184_v37 }
 0x1bd   : > { %v1058_v5 = vcombine.low %v1030_v59, %v1037_v60  ;;  %v2352_v6 = vcombine.high %v1030_v59, %v1037_v60  ;;  %v1074_v7 = vcombine.low %v1046_v61, %v1053_v62  ;;  %v2353_v8 = vcombine.high %v1046_v61, %v1053_v62 }
 0x1be   : > { %v872_v9 = vcombine.low %v848_v2, %v864_v63  ;;  %v873_v10 = vcombine.high %v848_v2, %v864_v63  ;;  %v888_v11 = vcombine.low %v855_v4, %v871_v1  ;;  %v889_v12 = vcombine.high %v855_v4, %v871_v1 }
 0x1bf   : > { %v1065_v13 = vrot.slane %v1058_v5, %v3184_v37  ;;  %v1073_v14 = vrot.slane %v2352_v6, %v3184_v37  ;;  %v1081_v15 = vrot.slane %v1074_v7, %v3184_v37  ;;  %v1089_v16 = vrot.slane %v2353_v8, %v3184_v37  ;;  %v1280_v6 = vld [vmem:[#allocation2] sm:$0xff] }
 0x1c0   : > { %v880_v17 = vrot.slane %v872_v9, %v3186_v44  ;;  %v887_v18 = vrot.slane %v873_v10, %v3186_v44  ;;  %v896_v19 = vrot.slane %v888_v11, %v3186_v44  ;;  %v903_v20 = vrot.slane %v889_v12, %v3186_v44 }
 0x1c1   : > { %v1090_v21 = vcombine.low %v1065_v13, %v1073_v14  ;;  %v1106_v22 = vcombine.low %v1081_v15, %v1089_v16  ;;  %v1091_v24 = vcombine.high %v1065_v13, %v1073_v14  ;;  %v1107_v25 = vcombine.high %v1081_v15, %v1089_v16 }
 0x1c2   : > { %v908_v26 = vcombine.low %v880_v17, %v887_v18  ;;  %v2350_v27 = vcombine.high %v880_v17, %v887_v18  ;;  %v924_v28 = vcombine.low %v896_v19, %v903_v20  ;;  %v2351_v29 = vcombine.high %v896_v19, %v903_v20 }
 0x1c3   : > { %v1098_v30 = vrot.slane %v1090_v21, %v3186_v44  ;;  %v1114_v31 = vrot.slane %v1106_v22, %v3186_v44  ;;  %v1105_v39 = vrot.slane %v1091_v24, %v3186_v44  ;;  %v1121_v40 = vrot.slane %v1107_v25, %v3186_v44 }
 0x1c4   : > { %v915_v32 = vrot.slane %v908_v26, %v3184_v37  ;;  %v923_v33 = vrot.slane %v2350_v27, %v3184_v37  ;;  %v931_v34 = vrot.slane %v924_v28, %v3184_v37  ;;  %v939_v35 = vrot.slane %v2351_v29, %v3184_v37 }
 0x1c5   : > { %v1122_v36 = vcombine.low %v1098_v30, %v1114_v31  ;;  %v1123_v38 = vcombine.high %v1098_v30, %v1114_v31  ;;  %v1124_v50 = vcombine.low %v1105_v39, %v1121_v40  ;;  %v1125_v51 = vcombine.high %v1105_v39, %v1121_v40 }
 0x1c6   : > { %v940_v41 = vcombine.low %v915_v32, %v923_v33  ;;  %v956_v42 = vcombine.low %v931_v34, %v939_v35  ;;  %v941_v52 = vcombine.high %v915_v32, %v923_v33  ;;  %v957_v53 = vcombine.high %v931_v34, %v939_v35  ;;  %v1132_v32 = vpop.permute.xlu0 %1131 }
 0x1c7   : > { %v1126_v43 = vpack.c.bf16 %v1122_v36, %v1122_v36  ;;  %v1127_v45 = vpack.c.bf16 %v1123_v38, %v1123_v38  ;;  %v1128_v56 = vpack.c.bf16 %v1124_v50, %v1124_v50  ;;  %v1129_v57 = vpack.c.bf16 %v1125_v51, %v1125_v51 }
 0x1c8   : > { %v948_v46 = vrot.slane %v940_v41, %v3186_v44  ;;  %v964_v47 = vrot.slane %v956_v42, %v3186_v44  ;;  %v955_v60 = vrot.slane %v941_v52, %v3186_v44  ;;  %v971_v61 = vrot.slane %v957_v53, %v3186_v44 }
 0x1c9   : > { %v1286_v48 = vsel %vm1281_vm2, %v1126_v43, 0  ;;  %v1332_v49 = vsel %vm1281_vm2, %v1127_v45, 0  ;;  %v1378_v62 = vsel %vm1281_vm2, %v1128_v56, 0  ;;  %v1424_v63 = vsel %vm1281_vm2, %v1129_v57, 0 }
 0x1ca   : > { %2456 = vmatpush3.bf16.xpose.msra.mxu1 %v1286_v48  ;;  %2462 = vmatpush3.bf16.xpose.msra.mxu0 %v1332_v49  ;;  %v972_v54 = vcombine.low %v948_v46, %v964_v47  ;;  %v973_v55 = vcombine.high %v948_v46, %v964_v47  ;;  %v974_v1 = vcombine.low %v955_v60, %v971_v61 }
 0x1cb   : > { %2467 = vmatprep.subr.bf16.mxu1 %v2900_v0  ;;  %2473 = vmatprep.subr.bf16.mxu0 %v2900_v0  ;;  %v975_v2 = vcombine.high %v955_v60, %v971_v61 }
 0x1cc   : > { %v976_v58 = vpack.c.bf16 %v972_v54, %v972_v54  ;;  %v977_v59 = vpack.c.bf16 %v973_v55, %v973_v55  ;;  %v978_v4 = vpack.c.bf16 %v974_v1, %v974_v1 }
 0x1cd   : > { %v979_v5 = vpack.c.bf16 %v975_v2, %v975_v2 }
 0x1d1   : > { %2458 = vmatmul.mubr.msk.bf16.vlgmr.msra.gmra.mxu1 %vm1281_vm2, %v976_v58  ;;  %2464 = vmatmul.mubr.msk.bf16.vlgmr.msra.gmra.mxu0 %vm1281_vm2, %v977_v59 }
 0x1d2   : > { %2468 = vmatpush3.bf16.xpose.msra.mxu1 %v1378_v62  ;;  %2474 = vmatpush3.bf16.xpose.msra.mxu0 %v1424_v63 }
 0x1d3   : > { %2469 = vmatprep.mubr.msk.bf16.mxu1 %vm2901_vm0, %v2900_v0  ;;  %2475 = vmatprep.mubr.msk.bf16.mxu0 %vm2901_vm0, %v2900_v0 }
 0x1d4   : > { %2479 = vmatprep.subr.bf16.mxu1 %v2900_v0  ;;  %2485 = vmatprep.subr.bf16.mxu0 %v2900_v0 }
 0x1d9   : > { %2470 = vmatmul.mubr.msk.bf16.vlgmr.msra.gmra.mxu1 %vm1281_vm2, %v978_v4  ;;  %2476 = vmatmul.mubr.msk.bf16.vlgmr.msra.gmra.mxu0 %vm1281_vm2, %v979_v5 }
 0x1da   : > { %2481 = vmatprep.mubr.msk.bf16.mxu1 %vm2901_vm0, %v2900_v0  ;;  %2487 = vmatprep.mubr.msk.bf16.mxu0 %vm2901_vm0, %v2900_v0 }
 0x291   : > { %v1322_v7 = vpop.f32.mrf.mxu1  ;;  %v1368_v8 = vpop.f32.mrf.mxu0 }
 0x292   : > { %v1323_v9 = vadd.f32 %v1322_v7, %v1280_v6  ;;  %v1369_v10 = vadd.f32 %v1368_v8, %v1280_v6 }
 0x293   : > { %v2459_v11 = vpop.f32.mrf.mxu1  ;;  %v2465_v12 = vpop.f32.mrf.mxu0 }
 0x294   : > { %v1466_v13 = vsel %vm1281_vm2, %v1323_v9, -inf  ;;  %v1469_v14 = vsel %vm1281_vm2, %v1369_v10, -inf }
 0x295   : > { %v1325_v15 = vpop.f32.mrf.mxu1  ;;  %1467 = vmax.xlane.f32.xlu0 %v1466_v13  ;;  %1470 = vmax.xlane.f32.xlu1 %v1469_v14  ;;  %v1371_v16 = vpop.f32.mrf.mxu0 }
 0x297   : > { %v2460_v17 = vpop.f32.mrf.mxu1  ;;  %v2466_v18 = vpop.f32.mrf.mxu0 }
 0x299   : > { %v1414_v19 = vpop.f32.mrf.mxu1  ;;  %v1460_v20 = vpop.f32.mrf.mxu0 }
 0x29a   : > { %v3246_v28 = vadd.f32 %v1414_v19, %v1280_v6  ;;  %v3248_v29 = vadd.f32 %v1460_v20, %v1280_v6 }
 0x29b   : > { %v2471_v21 = vpop.f32.mrf.mxu1  ;;  %v2477_v22 = vpop.f32.mrf.mxu0 }
 0x29c   : > { %v1472_v30 = vsel %vm1281_vm2, %v3246_v28, -inf  ;;  %v1475_v31 = vsel %vm1281_vm2, %v3248_v29, -inf }
 0x29d   : > { %v1417_v24 = vpop.f32.mrf.mxu1  ;;  %v1463_v25 = vpop.f32.mrf.mxu0 }
 0x29f   : > { %v2472_v26 = vpop.f32.mrf.mxu1  ;;  %v2478_v27 = vpop.f32.mrf.mxu0 }
 0x2a6   : > { %1134 = vrot.lane.b32.xlu1 %v3181_v23, %s2904_s30  ;;  %s627_s30 = sand.u32 1, %s2885_s28  }
 0x2a7   : > { %s2336_s3 = sshll.u32 %s627_s30, 3  ;;  %s2200_s20 = scalar_lea.sflag [#allocation4], %s627_s30 }
 0x2ab   : > { %1137 = vrot.lane.b32.xlu0 %v3181_v23, %s2902_s27 }
 0x2ca   : > { %1473 = vmax.xlane.f32.xlu1 %v1472_v30  ;;  %1476 = vmax.xlane.f32.xlu0 %v1475_v31 }
 0x31e   : > { %v3254_v33 = vpop.xlane.xlu0 %1467  ;;  %v3256_v34 = vpop.xlane.xlu1 %1470 }
 0x31f   : > { %v1490_v35 = vsub.f32 %v1323_v9, %v3254_v33  ;;  %v1491_v36 = vsub.f32 %v1369_v10, %v3256_v34 }
 0x321   : > { %v1494_v38 = vmul.f32 1.442695, %v1490_v35  ;;  %v1496_v39 = vmul.f32 1.442695, %v1491_v36 }
 0x322   : > { %v1138_v40 = vpop.permute.xlu0 %1137  ;;  %v1135_v41 = vpop.permute.xlu1 %1134 }
 0x323   : > { %v1156_v42 = vcombine.low %v1132_v32, %v1138_v40  ;;  %v1157_v43 = vcombine.high %v1132_v32, %v1138_v40  ;;  %v1140_v45 = vcombine.low %v3181_v23, %v1135_v41  ;;  %2657 = vpow2.f32 %v1494_v38 }
 0x324   : > { %v1141_v46 = vcombine.high %v3181_v23, %v1135_v41  ;;  %2659 = vpow2.f32 %v1496_v39 }
 0x325   : > { %v1164_v47 = vrot.slane %v1156_v42, %v3184_v37  ;;  %v1171_v48 = vrot.slane %v1157_v43, %v3184_v37  ;;  %v1148_v49 = vrot.slane %v1140_v45, %v3184_v37 }
 0x326   : > { %v1155_v50 = vrot.slane %v1141_v46, %v3184_v37 }
 0x327   : > { %v1172_v51 = vcombine.low %v1148_v49, %v1164_v47  ;;  %v1173_v52 = vcombine.high %v1148_v49, %v1164_v47 }
 0x328   : > { %v1188_v53 = vcombine.low %v1155_v50, %v1171_v48  ;;  %v1189_v54 = vcombine.high %v1155_v50, %v1171_v48 }
 0x329   : > { %v1180_v55 = vrot.slane %v1172_v51, %v3186_v44  ;;  %v1187_v56 = vrot.slane %v1173_v52, %v3186_v44  ;;  %v1478_v51 = vsub.f32 -inf, %v3254_v33 }
 0x32a   : > { %v1196_v57 = vrot.slane %v1188_v53, %v3186_v44  ;;  %v1203_v23 = vrot.slane %v1189_v54, %v3186_v44 }
 0x32b   : > { %v1208_v58 = vcombine.low %v1180_v55, %v1187_v56  ;;  %v2354_v59 = vcombine.high %v1180_v55, %v1187_v56  ;;  %v1479_v55 = vsub.f32 -inf, %v3256_v34 }
 0x32c   : > { %v1224_v60 = vcombine.low %v1196_v57, %v1203_v23  ;;  %v2355_v61 = vcombine.high %v1196_v57, %v1203_v23 }
 0x32d   : > { %v1215_v62 = vrot.slane %v1208_v58, %v3184_v37  ;;  %v1223_v63 = vrot.slane %v2354_v59, %v3184_v37  ;;  %v1482_v58 = vmul.f32 1.442695, %v1478_v51 }
 0x32e   : > { %v1231_v1 = vrot.slane %v1224_v60, %v3184_v37  ;;  %v1239_v2 = vrot.slane %v2355_v61, %v3184_v37  ;;  %v1484_v60 = vmul.f32 1.442695, %v1479_v55 }
 0x32f   : > { %v1240_v4 = vcombine.low %v1215_v62, %v1223_v63  ;;  %v1241_v5 = vcombine.high %v1215_v62, %v1223_v63 }
 0x330   : > { %v1256_v6 = vcombine.low %v1231_v1, %v1239_v2  ;;  %v1257_v7 = vcombine.high %v1231_v1, %v1239_v2  ;;  %v2658_v8 = vpop.eup %2657 }
 0x331   : > { %v1248_v9 = vrot.slane %v1240_v4, %v3186_v44  ;;  %v1255_v10 = vrot.slane %v1241_v5, %v3186_v44  ;;  %v1506_v11 = vsel %vm1281_vm2, %v2658_v8, 0.0  ;;  %v2660_v14 = vpop.eup %2659  ;;  %v1522_v27 = vpack.c.bf16 %v2658_v8, %v2658_v8 }
 0x332   : > { %v1264_v12 = vrot.slane %v1256_v6, %v3186_v44  ;;  %v1271_v13 = vrot.slane %v1257_v7, %v3186_v44  ;;  %1507 = vadd.xlane.f32.xlu0 %v1506_v11  ;;  %v1509_v15 = vsel %vm1281_vm2, %v2660_v14, 0.0  ;;  %v1523_v30 = vpack.c.bf16 %v2660_v14, %v2660_v14 }
 0x333   : > { %1510 = vadd.xlane.f32.xlu1 %v1509_v15 }
 0x334   : > { %v1272_v16 = vcombine.low %v1248_v9, %v1264_v12  ;;  %v1273_v17 = vcombine.high %v1248_v9, %v1264_v12  ;;  %v1274_v18 = vcombine.low %v1255_v10, %v1271_v13  ;;  %v1275_v19 = vcombine.high %v1255_v10, %v1271_v13 }
 0x336   : > { %v1276_v20 = vpack.c.bf16 %v1272_v16, %v1272_v16  ;;  %v1277_v21 = vpack.c.bf16 %v1273_v17, %v1273_v17  ;;  %v1278_v25 = vpack.c.bf16 %v1274_v18, %v1274_v18  ;;  %v1279_v26 = vpack.c.bf16 %v1275_v19, %v1275_v19 }
 0x338   : > { %v1531_v22 = vsel %vm1529_vm3, %v1276_v20, 0  ;;  %v1577_v24 = vsel %vm1529_vm3, %v1277_v21, 0  ;;  %v1623_v31 = vsel %vm1529_vm3, %v1278_v25, 0  ;;  %v1669_v32 = vsel %vm1529_vm3, %v1279_v26, 0 }
 0x339   : > { %2480 = vmatpush3.bf16.msra.mxu1 %v1531_v22  ;;  %2486 = vmatpush3.bf16.msra.mxu0 %v1577_v24 }
 0x33a   : > { %2491 = vmatprep.subr.bf16.mxu1 %v2900_v0  ;;  %2497 = vmatprep.subr.bf16.mxu0 %v2900_v0 }
 0x33c   : > { %2482 = vmatmul.mubr.msk.bf16.vlgmr.msra.gmra.mxu1 %vm1281_vm2, %v1522_v27  ;;  %2488 = vmatmul.mubr.msk.bf16.vlgmr.msra.gmra.mxu0 %vm1281_vm2, %v1523_v30 }
 0x33d   : > { %2492 = vmatpush3.bf16.msra.mxu1 %v1623_v31  ;;  %2498 = vmatpush3.bf16.msra.mxu0 %v1669_v32 }
 0x33e   : > { %2493 = vmatprep.mubr.msk.bf16.mxu1 %vm2901_vm0, %v2900_v0  ;;  %2499 = vmatprep.mubr.msk.bf16.mxu0 %vm2901_vm0, %v2900_v0 }
 0x33f   : > { %2503 = vmatprep.subr.bf16.mxu1 %v2900_v0  ;;  %2511 = vmatprep.subr.bf16.mxu0 %v2900_v0 }
 0x353   : > { %v1474_v35 = vpop.xlane.xlu1 %1473  ;;  %v1477_v36 = vpop.xlane.xlu0 %1476 }
 0x354   : > { %v1492_v38 = vsub.f32 %v3246_v28, %v1474_v35  ;;  %v1493_v39 = vsub.f32 %v3248_v29, %v1477_v36  ;;  %v1480_v52 = vsub.f32 -inf, %v1474_v35  ;;  %v1481_v56 = vsub.f32 -inf, %v1477_v36 }
 0x356   : > { %v1498_v40 = vmul.f32 1.442695, %v1492_v38  ;;  %v1500_v41 = vmul.f32 1.442695, %v1493_v39  ;;  %v1486_v59 = vmul.f32 1.442695, %v1480_v52 }
 0x357   : > { %v1488_v61 = vmul.f32 1.442695, %v1481_v56  ;;  %v2646_v56 = vld [vmem:[%s3437_s8] sm:$0xff]  }
 0x358   : > { %2661 = vpow2.f32 %v1498_v40 }
 0x359   : > { %2663 = vpow2.f32 %v1500_v41 }
 0x35a   : > { %2665 = vpow2.f32 %v1482_v58 }
 0x35b   : > { %2667 = vpow2.f32 %v1486_v59 }
 0x35c   : > { %2669 = vpow2.f32 %v1484_v60 }
 0x35d   : > { %2671 = vpow2.f32 %v1488_v61 }
 0x365   : > { %v2662_v42 = vpop.eup %2661 }
 0x366   : > { %v1512_v43 = vsel %vm1281_vm2, %v2662_v42, 0.0  ;;  %v1524_v45 = vpack.c.bf16 %v2662_v42, %v2662_v42  ;;  %v2664_v46 = vpop.eup %2663 }
 0x367   : > { %1513 = vadd.xlane.f32.xlu0 %v1512_v43  ;;  %v1515_v47 = vsel %vm1281_vm2, %v2664_v46, 0.0  ;;  %v1525_v48 = vpack.c.bf16 %v2664_v46, %v2664_v46  ;;  %v2666_v63 = vpop.eup %2665 }
 0x368   : > { %2494 = vmatmul.mubr.msk.bf16.vlgmr.msra.gmra.mxu1 %vm1281_vm2, %v1524_v45  ;;  %1516 = vadd.xlane.f32.xlu1 %v1515_v47  ;;  %v2668_v1 = vpop.eup %2667  ;;  %v1502_v5 = vmul.f32 0.0, %v2666_v63 }
 0x369   : > { %2507 = vmatprep.mubr.msk.bf16.mxu1 %vm2901_vm0, %v2900_v0  ;;  %2500 = vmatmul.mubr.msk.bf16.vlgmr.msra.gmra.mxu0 %vm1281_vm2, %v1525_v48  ;;  %v2670_v2 = vpop.eup %2669  ;;  %v1504_v34 = vmul.f32 0.0, %v2668_v1 }
 0x36a   : > { %2515 = vmatprep.mubr.msk.bf16.mxu0 %vm2901_vm0, %v2900_v0  ;;  %v2672_v4 = vpop.eup %2671  ;;  %v1503_v7 = vmul.f32 0.0, %v2670_v2 }
 0x36b   : > { %v1505_v10 = vmul.f32 0.0, %v2672_v4 }
 0x3bb   : > { %v1508_v62 = vpop.xlane.xlu0 %1507 }
 0x3bc   : > { %v1511_v33 = vpop.xlane.xlu1 %1510  ;;  %v1518_v8 = vadd.f32 %v1508_v62, %v1502_v5 }
 0x3bd   : > { %v1519_v12 = vadd.f32 %v1511_v33, %v1503_v7 }
 0x3be   : > { %2673 = vrcp.f32 %v1518_v8 }
 0x3cb   : > { %v2674_v16 = vpop.eup %2673 }
 0x3f0   : > { %v1514_v6 = vpop.xlane.xlu0 %1513 }
 0x3f1   : > { %v1517_v9 = vpop.xlane.xlu1 %1516  ;;  %v1520_v11 = vadd.f32 %v1514_v6, %v1504_v34 }
 0x3f2   : > { %v1521_v13 = vadd.f32 %v1517_v9, %v1505_v10 }
 0x3f3   : > { %2675 = vrcp.f32 %v1520_v11 }
 0x3f4   : > { %2677 = vrcp.f32 %v1519_v12 }
 0x3f5   : > { %2679 = vrcp.f32 %v1521_v13 }
 0x3fc   : > { %v1567_v28 = vpop.f32.mrf.mxu1  ;;  %v1613_v29 = vpop.f32.mrf.mxu0 }
 0x3fd   : > { %v1711_v14 = vadd.f32 %v1567_v28, %v1502_v5  ;;  %v1712_v17 = vadd.f32 %v1613_v29, %v1503_v7  ;;  %v2645_v28 = vld [vmem:[%s3437_s8 + $0x8] sm:$0xff]  }
 0x3fe   : > { %v2483_v49 = vpop.f32.mrf.mxu1  ;;  %v2489_v50 = vpop.f32.mrf.mxu0  ;;  %2504 = vmatpush3.bf16.msra.mxu1 %v2645_v28  ;;  %v2649_v28 = vld [vmem:[%s3443_s14 + $0x38] sm:$0xff]  }
 0x3ff   : > { %v1719_v24 = vmul.f32 %v2674_v16, %v1711_v14  ;;  %2505 = vmatprep.subr.bf16.mxu1 %v2900_v0 }
 0x400   : > { %v1570_v53 = vpop.f32.mrf.mxu1  ;;  %v1616_v54 = vpop.f32.mrf.mxu0 }
 0x401   : > { %v2676_v19 = vpop.eup %2675 }
 0x402   : > { %v2484_v57 = vpop.f32.mrf.mxu1  ;;  %v2490_v23 = vpop.f32.mrf.mxu0  ;;  %2506 = vmatpush3.bf16.msra.mxu1 %v2646_v56 }
 0x403   : > { %v2678_v22 = vpop.eup %2677  ;;  %2519 = vmatprep.subr.bf16.mxu1 %v2900_v0 }
 0x404   : > { %v2680_v27 = vpop.eup %2679  ;;  %v1720_v32 = vmul.f32 %v2678_v22, %v1712_v17  ;;  %v2366_v17 = vld [vmem:[#allocation10] ss:$0 sm:$0xff] }
 0x428   : > { %v1659_v15 = vpop.f32.mrf.mxu1 }
 0x429   : > { %v1713_v18 = vadd.f32 %v1659_v15, %v1504_v34  ;;  %v1705_v20 = vpop.f32.mrf.mxu0 }
 0x42a   : > { %v2495_v21 = vpop.f32.mrf.mxu1  ;;  %v1714_v26 = vadd.f32 %v1705_v20, %v1505_v10 }
 0x42b   : > { %v1721_v25 = vmul.f32 %v2676_v19, %v1713_v18  ;;  %v2501_v30 = vpop.f32.mrf.mxu0 }
 0x42c   : > { %v1662_v31 = vpop.f32.mrf.mxu1  ;;  %v1722_v38 = vmul.f32 %v2680_v27, %v1714_v26  ;;  %v2647_v27 = vld [vmem:[%s3441_s12 + $0x8] sm:$0xff]   ;;  %v2648_v30 = vld [vmem:[%s3441_s12] sm:$0xff]  }
 0x42d   : > { %v1723_v35 = vcombine.low %v1719_v24, %v1721_v25  ;;  %v1724_v36 = vcombine.high %v1719_v24, %v1721_v25  ;;  %v1708_v39 = vpop.f32.mrf.mxu0  ;;  %2512 = vmatpush3.bf16.msra.mxu0 %v2647_v27 }
 0x42e   : > { %v2496_v40 = vpop.f32.mrf.mxu1  ;;  %v1739_v43 = vcombine.low %v1720_v32, %v1722_v38  ;;  %v1740_v45 = vcombine.high %v1720_v32, %v1722_v38  ;;  %2513 = vmatprep.subr.bf16.mxu0 %v2900_v0 }
 0x42f   : > { %v1731_v41 = vrot.slane %v1723_v35, %v3184_v37  ;;  %v1738_v42 = vrot.slane %v1724_v36, %v3184_v37  ;;  %v2502_v46 = vpop.f32.mrf.mxu0 }
 0x430   : > { %v1747_v47 = vrot.slane %v1739_v43, %v3184_v37  ;;  %v1754_v48 = vrot.slane %v1740_v45, %v3184_v37  ;;  %v2371_v45 = vld [vmem:[%s3440_s11] ss:$0 sm:$0xff] }
 0x431   : > { %2514 = vmatpush3.bf16.msra.mxu0 %v2648_v30 }
 0x432   : > { %v1755_v29 = vcombine.low %v1731_v41, %v1747_v47  ;;  %v1756_v49 = vcombine.high %v1731_v41, %v1747_v47  ;;  %v1771_v50 = vcombine.low %v1738_v42, %v1754_v48  ;;  %v1772_v51 = vcombine.high %v1738_v42, %v1754_v48  ;;  %v2370_v41 = vld [vmem:[%s3439_s10] ss:$0 sm:$0xff] }
 0x434   : > { %v1763_v52 = vrot.slane %v1755_v29, %v3186_v44  ;;  %v1770_v53 = vrot.slane %v1756_v49, %v3186_v44  ;;  %v1779_v54 = vrot.slane %v1771_v50, %v3186_v44  ;;  %v1786_v55 = vrot.slane %v1772_v51, %v3186_v44  ;;  %v2650_v29 = vld [vmem:[%s3443_s14 + $0x30] sm:$0xff]   ;;  %v2651_v49 = vld [vmem:[%s3443_s14 + $0x28] sm:$0xff]   ;;  %v2652_v50 = vld [vmem:[%s3443_s14 + $0x20] sm:$0xff]  }
 0x435   : > { %v2653_v51 = vld [vmem:[%s3443_s14 + $0x18] sm:$0xff]  }
 0x436   : > { %v1791_v57 = vcombine.low %v1763_v52, %v1770_v53  ;;  %v2364_v23 = vcombine.high %v1763_v52, %v1770_v53  ;;  %v1807_v58 = vcombine.low %v1779_v54, %v1786_v55  ;;  %v2365_v59 = vcombine.high %v1779_v54, %v1786_v55  ;;  %v2654_v52 = vld [vmem:[%s3443_s14 + $0x10] sm:$0xff]   ;;  %v2655_v53 = vld [vmem:[%s3443_s14 + $0x8] sm:$0xff]   ;;  %v2656_v54 = vld [vmem:[%s3443_s14] sm:$0xff]  }
 0x437   : > { %v2372_v55 = vld [vmem:[%s3442_s13] ss:$0 sm:$0xff] }
 0x438   : > { %v1798_v60 = vrot.slane %v1791_v57, %v3184_v37  ;;  %v1806_v61 = vrot.slane %v2364_v23, %v3184_v37  ;;  %v1814_v62 = vrot.slane %v1807_v58, %v3184_v37  ;;  %v1822_v63 = vrot.slane %v2365_v59, %v3184_v37 }
 0x43a   : > { %v1824_v1 = vcombine.high %v1798_v60, %v1806_v61  ;;  %v1840_v33 = vcombine.high %v1814_v62, %v1822_v63  ;;  %v1823_v2 = vcombine.low %v1798_v60, %v1806_v61  ;;  %v1839_v4 = vcombine.low %v1814_v62, %v1822_v63 }
 0x43c   : > { %v1838_v5 = vrot.slane %v1824_v1, %v3186_v44  ;;  %v1854_v6 = vrot.slane %v1840_v33, %v3186_v44  ;;  %v1831_v34 = vrot.slane %v1823_v2, %v3186_v44  ;;  %v1847_v7 = vrot.slane %v1839_v4, %v3186_v44 }
 0x43e   : > { %v1857_v8 = vcombine.low %v1838_v5, %v1854_v6  ;;  %v1856_v9 = vcombine.high %v1831_v34, %v1847_v7  ;;  %v1858_v10 = vcombine.high %v1838_v5, %v1854_v6  ;;  %v1855_v11 = vcombine.low %v1831_v34, %v1847_v7  ;;  %v2376_v6 = vld [vmem:[%s3444_s15] ss:$0 sm:$0xff] }
 0x440   : > { %1864 = vrot.lane.b32.xlu1 %v1857_v8, %s2907_s21  ;;  %1860 = vrot.lane.b32.xlu0 %v1856_v9, %s2908_s22  ;;  %s2388_s22 = sshll.u32 %s3027_s0, 7  ;;  %s2825_s21 = sshll.u32 %s2910_s24, 4  ;;  %s2826_s21 = int_to_ptr.vmem [resolvable:$false] %s2825_s21 }
 0x441   : > { %s2211_s29 = scalar_lea.hbm %s3447_s18, %s2388_s22  ;;  %s2827_s0 = scalar_lea.vmem %s2826_s21, 256 }
 0x444   : > { %1868 = vrot.lane.b32.xlu1 %v1858_v10, %s2909_s25  ;;  %s629_s25 = scalar_lea.vmem [#allocation11], %s2336_s3 }
 0x445   : > { %s2213_s19 = sshll.u32 %s629_s25, 4  ;;  %s2214_s19 = int_to_ptr.vmem [resolvable:$true] %s2213_s19 }
 0x446   : > { %s2821_s1 = scalar_lea.vmem %s2214_s19, 128  ;;  %p2828_p10 = scmp.lt.s32.totalorder %s2214_s19, %s2826_s21 }
 0x447   : > { %p2822_p4 = scmp.ne.s32.totalorder %s2214_s19, %s2821_s1  ;;  %p2829_p8 = scmp.lt.s32.totalorder %s2827_s0, %s2821_s1 }
 0x449   : > { %p2823_p5 = pnand %p2822_p4, %p3485_p7  ;;  %p2830_p11 = por %p2829_p8, %p2828_p10 }
 0x44b   : > { %p2824_p6 = pneg %p2823_p5 }
 0x44d   : > { %p2831_p0 = pnand %p2830_p11, %p2824_p6 }
 0x4b2   : > { %v1865_v37 = vpop.permute.xlu1 %1864  ;;  %v1861_v12 = vpop.permute.xlu0 %1860 }
 0x4b3   : > { %v1871_v13 = vsel %vm1281_vm2, %v1855_v11, %v1861_v12 }
 0x4b4   : > { %v1873_v15 = vsel %vm1872_vm4, %v1871_v13, %v1865_v37 }
 0x4b6   : > { %v1869_v14 = vpop.permute.xlu1 %1868 }
 0x4b7   : > { %v1875_v16 = vsel %vm1874_vm5, %v1873_v15, %v1869_v14 }
 0x4b8   : > { %v1876_v44 = vpack.c.bf16 %v1875_v16, %v1875_v16 }
 0x4ba   : > { %2508 = vmatmul.mubr.msk.bf16.vlgmr.msra.gmra.mxu1 %vm660_vm1, %v1876_v44 }
 0x4bb   : > { %2535 = vmatprep.mubr.msk.bf16.mxu1 %vm2901_vm0, %v2900_v0  ;;  %2520 = vmatpush3.bf16.msra.mxu1 %v2649_v28 }
 0x4bc   : > { %2521 = vmatprep.subr.bf16.mxu1 %v2900_v0 }
 0x4bf   : > { %2522 = vmatpush3.bf16.msra.mxu1 %v2650_v29 }
 0x4c0   : > { %2523 = vmatprep.subr.bf16.mxu1 %v2900_v0 }
 0x4c3   : > { %2524 = vmatpush3.bf16.msra.mxu1 %v2651_v49 }
 0x4c4   : > { %2525 = vmatprep.subr.bf16.mxu1 %v2900_v0 }
 0x4c7   : > { %2526 = vmatpush3.bf16.msra.mxu1 %v2652_v50 }
 0x4c8   : > { %2527 = vmatprep.subr.bf16.mxu1 %v2900_v0 }
 0x4cb   : > { %2528 = vmatpush3.bf16.msra.mxu1 %v2653_v51 }
 0x4cc   : > { %2529 = vmatprep.subr.bf16.mxu1 %v2900_v0 }
 0x4cf   : > { %2530 = vmatpush3.bf16.msra.mxu1 %v2654_v52 }
 0x4d0   : > { %2531 = vmatprep.subr.bf16.mxu1 %v2900_v0 }
 0x4d3   : > { %2532 = vmatpush3.bf16.msra.mxu1 %v2655_v53 }
 0x4d4   : > { %2533 = vmatprep.subr.bf16.mxu1 %v2900_v0 }
 0x4d7   : > { %2534 = vmatpush3.bf16.msra.mxu1 %v2656_v54 }
 0x57a   : > { %v1937_v18 = vpop.f32.mrf.mxu1 }
 0x57b   : > { %v1938_v19 = vadd.f32 %v2366_v17, %v1937_v18 }
 0x57c   : > { %v2509_v20 = vpop.f32.mrf.mxu1 }
 0x57d   : > { %v1943_v21 = vadd.f32 %v1938_v19, %v3146_v3  ;;  %v2385_v20 = vld [vmem:[%s3445_s16] ss:$0 sm:$0xff] }
 0x57e   : > { %v1940_v22 = vpop.f32.mrf.mxu1 }
 0x57f   : > { %v1946_v24 = vmul.f32 %v1943_v21, %v1943_v21  ;;  %v1968_v42 = vmul.f32 %v2370_v41, %v1943_v21 }
 0x580   : > { %v2510_v25 = vpop.f32.mrf.mxu1 }
 0x581   : > { %v1947_v26 = vsel %vm660_vm1, %v1946_v24, 0.0  ;;  %v2386_v24 = vld [vmem:[%s3446_s17] ss:$0 sm:$0xff] }
 0x582   : > { %1948 = vadd.xlane.f32.xlu0 %v1947_v26 }
 0x60b   : > { %v1949_v31 = vpop.xlane.xlu0 %1948 }
 0x60c   : > { %v1951_v3 = vmul.f32 0.03125, %v1949_v31 }
 0x60e   : > { %2681 = vrsqrt.f32 %v1951_v3  ;;  %vm1954_vm6 = vcmp.eq.f32.partialorder %v1951_v3, inf  ;;  %v1957_v36 = vand.u32 2147483648, %v1951_v3  ;;  %vm1956_vm7 = vcmp.eq.f32.partialorder %v1951_v3, 0.0 }
 0x61b   : > { %v2682_v32 = vpop.eup %2681 }
 0x61c   : > { %v1953_v35 = vmul.f32 %v2682_v32, %v1951_v3 }
 0x61e   : > { %v1955_v38 = vsel %vm1954_vm6, %v1951_v3, %v1953_v35 }
 0x61f   : > { %v1958_v39 = vsel %vm1956_vm7, %v1957_v36, %v1955_v38 }
 0x620   : > { %v1959_v40 = vadd.f32 1e-08, %v1958_v39 }
 0x622   : > { %2683 = vrcp.f32 %v1959_v40 }
 0x62f   : > { %v2684_v43 = vpop.eup %2683 }
 0x630   : > { %v1969_v46 = vmul.f32 %v2684_v43, %v1968_v42 }
 0x632   : > { %v1976_v47 = vadd.f32 %v2371_v45, %v1969_v46 }
 0x634   : > { %v1977_v48 = vpack.c.bf16 %v1976_v47, %v1976_v47 }
 0x636   : > { %2516 = vmatmul.mubr.msk.bf16.vlgmr.msra.gmra.mxu0 %vm660_vm1, %v1977_v48 }
 0x6f6   : > { %v2038_v56 = vpop.f32.mrf.mxu0 }
 0x6f7   : > { %v2039_v57 = vadd.f32 %v2372_v55, %v2038_v56 }
 0x6f8   : > { %v2517_v23 = vpop.f32.mrf.mxu0 }
 0x6f9   : > { %v2045_v58 = vmul.f32 0.044715, %v2039_v57  ;;  %v2044_v2 = vmul.f32 0.5, %v2039_v57 }
 0x6fa   : > { %v2041_v59 = vpop.f32.mrf.mxu0 }
 0x6fb   : > { %v2046_v60 = vmul.f32 %v2045_v58, %v2039_v57 }
 0x6fc   : > { %v2518_v61 = vpop.f32.mrf.mxu0 }
 0x6fd   : > { %v2047_v62 = vmul.f32 %v2046_v60, %v2039_v57 }
 0x6ff   : > { %v2048_v63 = vadd.f32 %v2047_v62, %v2039_v57 }
 0x701   : > { %v2049_v1 = vmul.f32 0.7978846, %v2048_v63 }
 0x703   : > { %2685 = vtanh.f32 %v2049_v1 }
 0x710   : > { %v2686_v33 = vpop.eup %2685 }
 0x711   : > { %v2051_v4 = vadd.f32 1.0, %v2686_v33 }
 0x713   : > { %v2052_v0 = vmul.f32 %v2051_v4, %v2044_v2 }
 0x715   : > { %v2053_v5 = vpack.c.bf16 %v2052_v0, %v2052_v0 }
 0x717   : > { %2536 = vmatmul.mubr.bf16.vlgmr.msra.gmra.mxu1 %v2053_v5 }
 0x7d7   : > { %v2159_v34 = vpop.f32.mrf.mxu1 }
 0x7d8   : > { %v2160_v7 = vadd.f32 %v2376_v6, %v2159_v34 }
 0x7d9   : > { %v2537_v8 = vpop.f32.mrf.mxu1 }
 0x7da   : > { %v2165_v9 = vadd.f32 %v2160_v7, %v1976_v47 }
 0x7db   : > { %v2162_v10 = vpop.f32.mrf.mxu1 }
 0x7dc   : > { %v2168_v11 = vmul.f32 %v2165_v9, %v2165_v9  ;;  %v2189_v21 = vmul.f32 %v2385_v20, %v2165_v9 }
 0x7dd   : > { %v2538_v37 = vpop.f32.mrf.mxu1 }
 0x7de   : > { %v2169_v12 = vsel %vm660_vm1, %v2168_v11, 0.0 }
 0x7df   : > { %2170 = vadd.xlane.f32.xlu1 %v2169_v12 }
 0x868   : > { %v2171_v13 = vpop.xlane.xlu1 %2170 }
 0x869   : > { %v2172_v14 = vmul.f32 0.03125, %v2171_v13 }
 0x86b   : > { %2687 = vrsqrt.f32 %v2172_v14  ;;  %vm2175_vm8 = vcmp.eq.f32.partialorder %v2172_v14, inf  ;;  %v2178_v44 = vand.u32 2147483648, %v2172_v14  ;;  %vm2177_vm9 = vcmp.eq.f32.partialorder %v2172_v14, 0.0 }
 0x878   : > { %v2688_v15 = vpop.eup %2687 }
 0x879   : > { %v2174_v16 = vmul.f32 %v2688_v15, %v2172_v14 }
 0x87b   : > { %v2176_v17 = vsel %vm2175_vm8, %v2172_v14, %v2174_v16 }
 0x87c   : > { %v2179_v18 = vsel %vm2177_vm9, %v2178_v44, %v2176_v17 }
 0x87d   : > { %v2180_v19 = vadd.f32 1e-08, %v2179_v18 }
 0x87f   : > { %2689 = vrcp.f32 %v2180_v19 }
 0x88c   : > { %v2690_v22 = vpop.eup %2689 }
 0x88d   : > { %v2190_v25 = vmul.f32 %v2690_v22, %v2189_v21 }
 0x88f   : > { %v2197_v26 = vadd.f32 %v2386_v24, %v2190_v25 }
 0x891   : > { %2198 = vst.msk [vmem:[%s629_s25] sm:$0xff] %vm660_vm1, %v2197_v26 }
 0x892   : > { %2834 = shalt.err (!%p2831_p0)
}
 0x893   : > { %s2835_s3 = scalar_lea.hbm %s2211_s29, 128  ;;  %s2839_s25 = scalar_lea.hbm %s3447_s18, 256 }
 0x894   : > { %p2836_p13 = scmp.ne.s32.totalorder %s2211_s29, %s2835_s3  ;;  %p2840_p9 = scmp.lt.s32.totalorder %s2211_s29, %s3447_s18 }
 0x895   : > { %p2841_p12 = scmp.lt.s32.totalorder %s2839_s25, %s2835_s3 }
 0x896   : > { %p2837_p1 = pnand %p2836_p13, %p3485_p7 }
 0x897   : > { %p2842_p3 = por %p2841_p12, %p2840_p9 }
 0x898   : > { %p2838_p2 = pneg %p2837_p1 }
 0x89a   : > { %p2843_p4 = pnand %p2842_p3, %p2838_p2 }
 0x89c   : > { %2846 = shalt.err (!%p2843_p4)
}
 0x89d   : > { %2559 = dma.vmem_to_hbm [thread:$0]  (%p3485_p7), %s2214_s19, 128, %s2211_s29, %s2200_s20  }
 0x89e PF: > { %s3486_s1 = sld [smem:[#allocation18_spill]] }
 0x89f   : > { %s3487_s24 = sld [smem:[#allocation16_spill]] }
 0x8a0   : > { %s3488_s21 = sld [smem:[#allocation21_spill]] }
 0x8a4   : > { %p2591_p5 = scmp.ge.s32.totalorder %s3486_s1, 2 }
 0x8a5   : > { %s2225_s0 = sand.u32 1, %s3487_s24  }
 0x8a6   : > { %p3489_p6 = scmp.ne.s32.totalorder %s3488_s21, 0  ;;  %s2226_s30 = scalar_lea.sflag [#allocation4], %s2225_s0 }
 0x8a8   : > { %p2578_p10 = pnand %p2591_p5, %p3489_p6 }
 0x8aa   : > { %p2579_p8 = pneg %p2578_p10 }
 0x8ac   : > { %2876 = dma.done.wait (%p2579_p8), %s2226_s30, 128  }
 0x8ad   : > { %2878 = vsyncadd (%p2579_p8), %s2226_s30, 4294967168  ;;  %s3490_s30 = sld [smem:[#allocation19_spill]]  ;;  %s3493_s27 = smov %s2885_s28 }
 0x8ae   : > { %s3491_s3 = sld [smem:[#allocation17_spill]] }
 0x8af   : > { %s3492_s29 = sld [smem:[#allocation20_spill]] }
 0x8b3   : > { %p31_p11 = scmp.ge.s32.totalorder %s3490_s30, 4  }
 0x8b4   : > { %s3494_s28 = smov %s3491_s3 }
 0x8b5   :  { %33 = sbr.rel (!%p31_p11) target bundleno = 11 (0xb), region = 148 }
 0x8ba   :  { %2231 = vsyncpa [#allocation3], 1 }
 0x8bb   :  { %2233 = vsyncpa [#allocation3 + $0x1], 1 }
 0x8bc   :  { %2234 = vsyncpa [#allocation6], 1 }
 0x8bd   :  { %2235 = vsyncpa [#allocation9], 1 }
 0x8be   :  { %2236 = vsyncpa [#allocation4], 1 }
 0x8bf   :  { %2238 = vsyncpa [#allocation4 + $0x1], 1 }

</bundles_post_ra>
